<compile_context>
chip_gen: v6e
topology: v6e:2x2x1
jax: 0.10.0
libtpu: 0.0.40
codegen_flags: <defaults>
</compile_context>

<pallas_src>
import jax
import jax.numpy as jnp
from jax.experimental import pallas as pl
from jax.experimental.pallas import tpu as pltpu


# ------------------------------ Pallas kernel ------------------------------ #
def _mm_bias_relu_kernel(x_ref, w_ref, b_ref, o_ref):
    # x_ref: (M, K) bf16, w_ref: (K, N) bf16, b_ref: (1, N) f32, o_ref: (M, N) f32
    acc = jnp.dot(x_ref[...], w_ref[...], preferred_element_type=jnp.float32)
    o_ref[...] = jnp.maximum(acc + b_ref[...], 0.0)


def matmul_bias_relu(x, w, b):
    """relu(x @ w + b), batched over leading (stream [, phase]) axes.

    x: (S, [P,] M, K), w: (S, [P,] K, N), b: (S, 1, N).
    Leading axes become a parallel grid; blocks are the full un-padded
    matrices (block_shape == array dims satisfies the (8,128) rule).
    """
    *lead, M, K = x.shape
    lead = tuple(lead)
    N = w.shape[-1]
    nl = len(lead)

    def full_map(*idx):
        return tuple(idx) + (0, 0)

    def bias_map(*idx):
        return (idx[0], 0, 0)

    return pl.pallas_call(
        _mm_bias_relu_kernel,
        out_shape=jax.ShapeDtypeStruct(lead + (M, N), jnp.float32),
        grid=lead,
        in_specs=[
            pl.BlockSpec((None,) * nl + (M, K), full_map),
            pl.BlockSpec((None,) * nl + (K, N), full_map),
            pl.BlockSpec((None, 1, N), bias_map),
        ],
        out_specs=pl.BlockSpec((None,) * nl + (M, N), full_map),
        compiler_params=pltpu.CompilerParams(
            dimension_semantics=("parallel",) * nl),
    )(x.astype(jnp.bfloat16), w.astype(jnp.bfloat16), b.astype(jnp.float32))


# --------------------------- XLA-side conv glue ----------------------------- #
def _im2col(x, kh, kw, stride, padding):
    """x: (B, C, H, W) -> (B*OH*OW, C*kh*kw); row layout (ci, dy, dx), ci slowest."""
    B, C, H, W = x.shape
    if padding:
        x = jnp.pad(x, ((0, 0), (0, 0), (padding, padding), (padding, padding)))
    OH = (H + 2 * padding - kh) // stride + 1
    OW = (W + 2 * padding - kw) // stride + 1
    cols = []
    for dy in range(kh):
        for dx in range(kw):
            cols.append(x[:, :,
                          dy:dy + stride * (OH - 1) + 1:stride,
                          dx:dx + stride * (OW - 1) + 1:stride])
    p = jnp.stack(cols, axis=0).reshape(kh, kw, B, C, OH, OW)
    p = p.transpose(2, 4, 5, 3, 0, 1)                       # (B, OH, OW, C, kh, kw)
    return p.reshape(B * OH * OW, C * kh * kw), OH, OW


def conv_block(x, w, b, k, stride, padding):
    """Conv2d + bias + ReLU on stacked streams.  x: (S,N,Cin,H,W), w: (S,K,Cout)."""
    S, N, Cin, H, W = x.shape
    Cout = w.shape[-1]
    patches, OH, OW = _im2col(x.reshape(S * N, Cin, H, W), k, k, stride, padding)
    patches = patches.reshape(S, N * OH * OW, Cin * k * k)
    out = matmul_bias_relu(patches, w, b)                   # (S, M, Cout) f32
    return out.reshape(S, N, OH, OW, Cout).transpose(0, 1, 4, 2, 3)


def deconv_s2_block(x, w, b):
    """ConvTranspose2d(k=4, s=2, p=1) + bias + ReLU via 4-phase decomposition.

    Output pixel (2j+py, 2i+px) only uses kernel taps ky in {3,1} (py=0) or
    {2,0} (py=1) (same for x), so each phase is a dense 2x2-tap conv on the
    UNdilated input -> 4 small matmuls, phase axis folded into the grid.
    x: (S, N, Cin, H, W); w: (S, 4, Cin*4, Cout); b: (S, 1, Cout).
    """
    S, N, Cin, H, W = x.shape
    Cout = w.shape[-1]
    xp = jnp.pad(x.reshape(S * N, Cin, H, W), ((0, 0), (0, 0), (1, 1), (1, 1)))
    phases = []
    for py in (0, 1):
        for px in (0, 1):
            xs = xp[:, :, py:py + H + 1, px:px + W + 1]     # one-sided zero pad
            p, _, _ = _im2col(xs, 2, 2, 1, 0)               # (S*N*H*W, Cin*4)
            phases.append(p.reshape(S, N * H * W, Cin * 4))
    patches = jnp.stack(phases, axis=1)                     # (S, 4, M, Cin*4)
    out = matmul_bias_relu(patches, w, b)                   # (S, 4, M, Cout)
    out = out.reshape(S, 2, 2, N, H, W, Cout)               # (S, py, px, n, h, w, c)
    out = out.transpose(0, 3, 6, 4, 1, 5, 2)                # (S, n, c, h, py, w, px)
    return out.reshape(S, N, Cout, 2 * H, 2 * W)


# ----------------------------- parameters ----------------------------------- #
def _conv_init(key, cout, cin, k):
    k1, k2 = jax.random.split(key)
    bound = 1.0 / float(cin * k * k) ** 0.5
    w = jax.random.uniform(k1, (cout, cin, k, k), jnp.float32, -bound, bound)
    b = jax.random.uniform(k2, (cout,), jnp.float32, -bound, bound)
    return w, b


def _convT_init(key, cin, cout, k):
    k1, k2 = jax.random.split(key)
    bound = 1.0 / float(cout * k * k) ** 0.5
    w = jax.random.uniform(k1, (cin, cout, k, k), jnp.float32, -bound, bound)
    b = jax.random.uniform(k2, (cout,), jnp.float32, -bound, bound)
    return w, b


# ----- weight packing: done ONCE at init, nothing re-packed per forward ----- #
def _pack_conv(w, b):
    cout, cin, kh, kw = w.shape
    return w.reshape(cout, cin * kh * kw).T, b.reshape(1, cout)


def _pack_convT_s1_p1(w, b):
    # stride-1 ConvTranspose(k=3, p=1) == Conv(k=3, p=1) with flipped kernel.
    cin, cout, kh, kw = w.shape
    wc = jnp.flip(w, axis=(2, 3)).transpose(1, 0, 2, 3)     # (Cout, Cin, kh, kw)
    return wc.reshape(cout, cin * kh * kw).T, b.reshape(1, cout)


_PHASE_TAPS = (jnp.array([3, 1]), jnp.array([2, 0]))        # even / odd output parity


def _pack_convT_s2_p1(w, b):
    # stride-2, k=4, p=1 ConvTranspose -> 4 dense 2x2-tap phase matrices.
    cin, cout, kh, kw = w.shape
    mats = []
    for py in (0, 1):
        for px in (0, 1):
            ws = w[:, :, _PHASE_TAPS[py], :][:, :, :, _PHASE_TAPS[px]]  # (Cin,Cout,2,2)
            mats.append(ws.transpose(0, 2, 3, 1).reshape(cin * 4, cout))
    return jnp.stack(mats, axis=0), b.reshape(1, cout)       # (4, Cin*4, Cout)


def init_params(key):
    keys = jax.random.split(key, 12)

    def stream_raw(ks):
        return {
            "c1": _conv_init(ks[0], 10, 1, 4),
            "c2": _conv_init(ks[1], 20, 10, 3),
            "c3": _conv_init(ks[2], 30, 20, 4),
            "d1": _convT_init(ks[3], 30, 20, 4),
            "d2": _convT_init(ks[4], 20, 10, 3),
            "d3": _convT_init(ks[5], 10, 1, 4),
        }

    s1, s2 = stream_raw(keys[:6]), stream_raw(keys[6:])

    def stacked(pack, name):
        w1, b1 = pack(*s1[name])
        w2, b2 = pack(*s2[name])
        # weights stored in bf16 for the MXU (f32 accumulate in-kernel); bias f32
        return (jnp.stack([w1, w2]).astype(jnp.bfloat16),
                jnp.stack([b1, b2]).astype(jnp.float32))

    params = {}
    for name in ("c1", "c2", "c3"):
        params[name + "_w"], params[name + "_b"] = stacked(_pack_conv, name)
    params["d1_w"], params["d1_b"] = stacked(_pack_convT_s2_p1, "d1")
    params["d2_w"], params["d2_b"] = stacked(_pack_convT_s1_p1, "d2")
    params["d3_w"], params["d3_b"] = stacked(_pack_convT_s2_p1, "d3")
    # model1/model2 Linear layers and the 2000x2000 `weight` parameter exist in
    # the PyTorch module but are never used by forward(); intentionally dropped.
    return params


# ------------------------------ forward pass -------------------------------- #
@jax.jit
def networks_forward(params, input1, input2):
    x = jnp.stack([input1, input2], axis=0)                 # (2, N, 1, 28, 28)
    # encoders (both streams stacked on the parallel grid axis)
    x = conv_block(x, params["c1_w"], params["c1_b"], k=4, stride=2, padding=1)  # 28->14
    x = conv_block(x, params["c2_w"], params["c2_b"], k=3, stride=1, padding=1)  # 14->14
    x = conv_block(x, params["c3_w"], params["c3_b"], k=4, stride=2, padding=1)  # 14->7
    # decoders
    x = deconv_s2_block(x, params["d1_w"], params["d1_b"])                       # 7->14
    x = conv_block(x, params["d2_w"], params["d2_b"], k=3, stride=1, padding=1)  # 14->14
    x = deconv_s2_block(x, params["d3_w"], params["d3_b"])                       # 14->28
    return x[0], x[1]


if __name__ == "__main__":
    key = jax.random.PRNGKey(0)
    kp, k1, k2 = jax.random.split(key, 3)
    params = init_params(kp)

    # Fashion-MNIST-like inputs: batch=2, 1 channel, 28x28 (NCHW)
    input1 = jax.random.normal(k1, (2, 1, 28, 28), jnp.float32)
    input2 = jax.random.normal(k2, (2, 1, 28, 28), jnp.float32)

    out1, out2 = networks_forward(params, input1, input2)
    out1 = jax.block_until_ready(out1)
    out2 = jax.block_until_ready(out2)

    assert out1.shape == (2, 1, 28, 28), out1.shape
    assert out2.shape == (2, 1, 28, 28), out2.shape
    assert bool(jnp.all(out1 >= 0)) and bool(jnp.all(out2 >= 0))  # final ReLU
    print("KERNEL_OK")
</pallas_src>

<mosaic_0001>
module attributes {stable_mosaic.version = 11 : i64} {
  func.func @_mm_bias_relu_kernel(%arg0: i32, %arg1: memref<1x392x16xbf16, #tpu.memory_space<vmem>>, %arg2: memref<1x16x10xbf16, #tpu.memory_space<vmem>>, %arg3: memref<1x1x10xf32, #tpu.memory_space<vmem>>, %arg4: memref<1x392x10xf32, #tpu.memory_space<vmem>>) attributes {dimension_semantics = [#tpu.dimension_semantics<parallel>], iteration_bounds = array<i64: 2>, scalar_prefetch = 0 : i64, scratch_operands = 0 : i64, tpu.core_type = #tpu.core_type<tc>, window_params = [{transform_indices = @transform_0, window_bounds = array<i64: 1, 392, 16>}, {transform_indices = @transform_1, window_bounds = array<i64: 1, 16, 10>}, {transform_indices = @transform_2, window_bounds = array<i64: 1, 1, 10>}, {transform_indices = @transform_3, window_bounds = array<i64: 1, 392, 10>}]} {
    %c0 = arith.constant 0 : index
    %c0_0 = arith.constant 0 : index
    %c0_1 = arith.constant 0 : index
    %0 = vector.load %arg1[%c0, %c0_0, %c0_1] : memref<1x392x16xbf16, #tpu.memory_space<vmem>>, vector<1x392x16xbf16>
    %1 = vector.shape_cast %0 : vector<1x392x16xbf16> to vector<392x16xbf16>
    %c0_2 = arith.constant 0 : index
    %c0_3 = arith.constant 0 : index
    %c0_4 = arith.constant 0 : index
    %2 = vector.load %arg2[%c0_2, %c0_3, %c0_4] : memref<1x16x10xbf16, #tpu.memory_space<vmem>>, vector<1x16x10xbf16>
    %3 = vector.shape_cast %2 : vector<1x16x10xbf16> to vector<16x10xbf16>
    %cst = arith.constant dense<0.000000e+00> : vector<392x10xf32>
    %4 = tpu.matmul %1, %3, %cst {dimension_numbers = #tpu.dot_dimension_numbers<[1], [0], [0], [1], [0, 0, 1, 1], [], []>} : vector<392x16xbf16>, vector<16x10xbf16>, vector<392x10xf32> -> vector<392x10xf32>
    %c0_5 = arith.constant 0 : index
    %c0_6 = arith.constant 0 : index
    %c0_7 = arith.constant 0 : index
    %5 = vector.load %arg3[%c0_5, %c0_6, %c0_7] : memref<1x1x10xf32, #tpu.memory_space<vmem>>, vector<1x1x10xf32>
    %6 = vector.shape_cast %5 : vector<1x1x10xf32> to vector<1x10xf32>
    %7 = vector.broadcast %6 : vector<1x10xf32> to vector<392x10xf32>
    %8 = arith.addf %4, %7 : vector<392x10xf32>
    %cst_8 = arith.constant 0.000000e+00 : f32
    %9 = vector.broadcast %cst_8 : f32 to vector<392x10xf32>
    %10 = arith.maximumf %8, %9 : vector<392x10xf32>
    %c0_9 = arith.constant 0 : index
    %c0_10 = arith.constant 0 : index
    %c0_11 = arith.constant 0 : index
    %11 = vector.load %arg4[%c0_9, %c0_10, %c0_11] : memref<1x392x10xf32, #tpu.memory_space<vmem>>, vector<1x392x10xf32>
    %12 = vector.shape_cast %11 : vector<1x392x10xf32> to vector<392x10xf32>
    %13 = vector.shape_cast %10 : vector<392x10xf32> to vector<1x392x10xf32>
    tpu.vector_store %arg4[%c0_9, %c0_10, %c0_11], %13 {strides = array<i32>} : memref<1x392x10xf32, #tpu.memory_space<vmem>>, vector<1x392x10xf32>,
    return
  }
  func.func @transform_0(%arg0: i32) -> (i32, i32, i32) {
    %c0_i32 = arith.constant 0 : i32
    %c0_i32_0 = arith.constant 0 : i32
    %c0_i32_1 = arith.constant 0 : i32
    return %arg0, %c0_i32, %c0_i32_0 : i32, i32, i32
  }
  func.func @transform_1(%arg0: i32) -> (i32, i32, i32) {
    %c0_i32 = arith.constant 0 : i32
    %c0_i32_0 = arith.constant 0 : i32
    %c0_i32_1 = arith.constant 0 : i32
    return %arg0, %c0_i32, %c0_i32_0 : i32, i32, i32
  }
  func.func @transform_2(%arg0: i32) -> (i32, i32, i32) {
    %c0_i32 = arith.constant 0 : i32
    %c0_i32_0 = arith.constant 0 : i32
    %c0_i32_1 = arith.constant 0 : i32
    return %arg0, %c0_i32, %c0_i32_0 : i32, i32, i32
  }
  func.func @transform_3(%arg0: i32) -> (i32, i32, i32) {
    %c0_i32 = arith.constant 0 : i32
    %c0_i32_0 = arith.constant 0 : i32
    %c0_i32_1 = arith.constant 0 : i32
    return %arg0, %c0_i32, %c0_i32_0 : i32, i32, i32
  }
}

module attributes {stable_mosaic.version = 11 : i64} {
  func.func @_mm_bias_relu_kernel(%arg0: i32, %arg1: memref<1x392x90xbf16, #tpu.memory_space<vmem>>, %arg2: memref<1x90x20xbf16, #tpu.memory_space<vmem>>, %arg3: memref<1x1x20xf32, #tpu.memory_space<vmem>>, %arg4: memref<1x392x20xf32, #tpu.memory_space<vmem>>) attributes {dimension_semantics = [#tpu.dimension_semantics<parallel>], iteration_bounds = array<i64: 2>, scalar_prefetch = 0 : i64, scratch_operands = 0 : i64, tpu.core_type = #tpu.core_type<tc>, window_params = [{transform_indices = @transform_0, window_bounds = array<i64: 1, 392, 90>}, {transform_indices = @transform_1, window_bounds = array<i64: 1, 90, 20>}, {transform_indices = @transform_2, window_bounds = array<i64: 1, 1, 20>}, {transform_indices = @transform_3, window_bounds = array<i64: 1, 392, 20>}]} {
    %c0 = arith.constant 0 : index
    %c0_0 = arith.constant 0 : index
    %c0_1 = arith.constant 0 : index
    %0 = vector.load %arg1[%c0, %c0_0, %c0_1] : memref<1x392x90xbf16, #tpu.memory_space<vmem>>, vector<1x392x90xbf16>
    %1 = vector.shape_cast %0 : vector<1x392x90xbf16> to vector<392x90xbf16>
    %c0_2 = arith.constant 0 : index
    %c0_3 = arith.constant 0 : index
    %c0_4 = arith.constant 0 : index
    %2 = vector.load %arg2[%c0_2, %c0_3, %c0_4] : memref<1x90x20xbf16, #tpu.memory_space<vmem>>, vector<1x90x20xbf16>
    %3 = vector.shape_cast %2 : vector<1x90x20xbf16> to vector<90x20xbf16>
    %cst = arith.constant dense<0.000000e+00> : vector<392x20xf32>
    %4 = tpu.matmul %1, %3, %cst {dimension_numbers = #tpu.dot_dimension_numbers<[1], [0], [0], [1], [0, 0, 1, 1], [], []>} : vector<392x90xbf16>, vector<90x20xbf16>, vector<392x20xf32> -> vector<392x20xf32>
    %c0_5 = arith.constant 0 : index
    %c0_6 = arith.constant 0 : index
    %c0_7 = arith.constant 0 : index
    %5 = vector.load %arg3[%c0_5, %c0_6, %c0_7] : memref<1x1x20xf32, #tpu.memory_space<vmem>>, vector<1x1x20xf32>
    %6 = vector.shape_cast %5 : vector<1x1x20xf32> to vector<1x20xf32>
    %7 = vector.broadcast %6 : vector<1x20xf32> to vector<392x20xf32>
    %8 = arith.addf %4, %7 : vector<392x20xf32>
    %cst_8 = arith.constant 0.000000e+00 : f32
    %9 = vector.broadcast %cst_8 : f32 to vector<392x20xf32>
    %10 = arith.maximumf %8, %9 : vector<392x20xf32>
    %c0_9 = arith.constant 0 : index
    %c0_10 = arith.constant 0 : index
    %c0_11 = arith.constant 0 : index
    %11 = vector.load %arg4[%c0_9, %c0_10, %c0_11] : memref<1x392x20xf32, #tpu.memory_space<vmem>>, vector<1x392x20xf32>
    %12 = vector.shape_cast %11 : vector<1x392x20xf32> to vector<392x20xf32>
    %13 = vector.shape_cast %10 : vector<392x20xf32> to vector<1x392x20xf32>
    tpu.vector_store %arg4[%c0_9, %c0_10, %c0_11], %13 {strides = array<i32>} : memref<1x392x20xf32, #tpu.memory_space<vmem>>, vector<1x392x20xf32>,
    return
  }
  func.func @transform_0(%arg0: i32) -> (i32, i32, i32) {
    %c0_i32 = arith.constant 0 : i32
    %c0_i32_0 = arith.constant 0 : i32
    %c0_i32_1 = arith.constant 0 : i32
    return %arg0, %c0_i32, %c0_i32_0 : i32, i32, i32
  }
  func.func @transform_1(%arg0: i32) -> (i32, i32, i32) {
    %c0_i32 = arith.constant 0 : i32
    %c0_i32_0 = arith.constant 0 : i32
    %c0_i32_1 = arith.constant 0 : i32
    return %arg0, %c0_i32, %c0_i32_0 : i32, i32, i32
  }
  func.func @transform_2(%arg0: i32) -> (i32, i32, i32) {
    %c0_i32 = arith.constant 0 : i32
    %c0_i32_0 = arith.constant 0 : i32
    %c0_i32_1 = arith.constant 0 : i32
    return %arg0, %c0_i32, %c0_i32_0 : i32, i32, i32
  }
  func.func @transform_3(%arg0: i32) -> (i32, i32, i32) {
    %c0_i32 = arith.constant 0 : i32
    %c0_i32_0 = arith.constant 0 : i32
    %c0_i32_1 = arith.constant 0 : i32
    return %arg0, %c0_i32, %c0_i32_0 : i32, i32, i32
  }
}

module attributes {stable_mosaic.version = 11 : i64} {
  func.func @_mm_bias_relu_kernel(%arg0: i32, %arg1: memref<1x98x320xbf16, #tpu.memory_space<vmem>>, %arg2: memref<1x320x30xbf16, #tpu.memory_space<vmem>>, %arg3: memref<1x1x30xf32, #tpu.memory_space<vmem>>, %arg4: memref<1x98x30xf32, #tpu.memory_space<vmem>>) attributes {dimension_semantics = [#tpu.dimension_semantics<parallel>], iteration_bounds = array<i64: 2>, scalar_prefetch = 0 : i64, scratch_operands = 0 : i64, tpu.core_type = #tpu.core_type<tc>, window_params = [{transform_indices = @transform_0, window_bounds = array<i64: 1, 98, 320>}, {transform_indices = @transform_1, window_bounds = array<i64: 1, 320, 30>}, {transform_indices = @transform_2, window_bounds = array<i64: 1, 1, 30>}, {transform_indices = @transform_3, window_bounds = array<i64: 1, 98, 30>}]} {
    %c0 = arith.constant 0 : index
    %c0_0 = arith.constant 0 : index
    %c0_1 = arith.constant 0 : index
    %0 = vector.load %arg1[%c0, %c0_0, %c0_1] : memref<1x98x320xbf16, #tpu.memory_space<vmem>>, vector<1x98x320xbf16>
    %1 = vector.shape_cast %0 : vector<1x98x320xbf16> to vector<98x320xbf16>
    %c0_2 = arith.constant 0 : index
    %c0_3 = arith.constant 0 : index
    %c0_4 = arith.constant 0 : index
    %2 = vector.load %arg2[%c0_2, %c0_3, %c0_4] : memref<1x320x30xbf16, #tpu.memory_space<vmem>>, vector<1x320x30xbf16>
    %3 = vector.shape_cast %2 : vector<1x320x30xbf16> to vector<320x30xbf16>
    %cst = arith.constant dense<0.000000e+00> : vector<98x30xf32>
    %4 = tpu.matmul %1, %3, %cst {dimension_numbers = #tpu.dot_dimension_numbers<[1], [0], [0], [1], [0, 0, 1, 1], [], []>} : vector<98x320xbf16>, vector<320x30xbf16>, vector<98x30xf32> -> vector<98x30xf32>
    %c0_5 = arith.constant 0 : index
    %c0_6 = arith.constant 0 : index
    %c0_7 = arith.constant 0 : index
    %5 = vector.load %arg3[%c0_5, %c0_6, %c0_7] : memref<1x1x30xf32, #tpu.memory_space<vmem>>, vector<1x1x30xf32>
    %6 = vector.shape_cast %5 : vector<1x1x30xf32> to vector<1x30xf32>
    %7 = vector.broadcast %6 : vector<1x30xf32> to vector<98x30xf32>
    %8 = arith.addf %4, %7 : vector<98x30xf32>
    %cst_8 = arith.constant 0.000000e+00 : f32
    %9 = vector.broadcast %cst_8 : f32 to vector<98x30xf32>
    %10 = arith.maximumf %8, %9 : vector<98x30xf32>
    %c0_9 = arith.constant 0 : index
    %c0_10 = arith.constant 0 : index
    %c0_11 = arith.constant 0 : index
    %11 = vector.load %arg4[%c0_9, %c0_10, %c0_11] : memref<1x98x30xf32, #tpu.memory_space<vmem>>, vector<1x98x30xf32>
    %12 = vector.shape_cast %11 : vector<1x98x30xf32> to vector<98x30xf32>
    %13 = vector.shape_cast %10 : vector<98x30xf32> to vector<1x98x30xf32>
    tpu.vector_store %arg4[%c0_9, %c0_10, %c0_11], %13 {strides = array<i32>} : memref<1x98x30xf32, #tpu.memory_space<vmem>>, vector<1x98x30xf32>,
    return
  }
  func.func @transform_0(%arg0: i32) -> (i32, i32, i32) {
    %c0_i32 = arith.constant 0 : i32
    %c0_i32_0 = arith.constant 0 : i32
    %c0_i32_1 = arith.constant 0 : i32
    return %arg0, %c0_i32, %c0_i32_0 : i32, i32, i32
  }
  func.func @transform_1(%arg0: i32) -> (i32, i32, i32) {
    %c0_i32 = arith.constant 0 : i32
    %c0_i32_0 = arith.constant 0 : i32
    %c0_i32_1 = arith.constant 0 : i32
    return %arg0, %c0_i32, %c0_i32_0 : i32, i32, i32
  }
  func.func @transform_2(%arg0: i32) -> (i32, i32, i32) {
    %c0_i32 = arith.constant 0 : i32
    %c0_i32_0 = arith.constant 0 : i32
    %c0_i32_1 = arith.constant 0 : i32
    return %arg0, %c0_i32, %c0_i32_0 : i32, i32, i32
  }
  func.func @transform_3(%arg0: i32) -> (i32, i32, i32) {
    %c0_i32 = arith.constant 0 : i32
    %c0_i32_0 = arith.constant 0 : i32
    %c0_i32_1 = arith.constant 0 : i32
    return %arg0, %c0_i32, %c0_i32_0 : i32, i32, i32
  }
}

module attributes {stable_mosaic.version = 11 : i64} {
  func.func @_mm_bias_relu_kernel(%arg0: i32, %arg1: i32, %arg2: memref<1x1x98x120xbf16, #tpu.memory_space<vmem>>, %arg3: memref<1x1x120x20xbf16, #tpu.memory_space<vmem>>, %arg4: memref<1x1x20xf32, #tpu.memory_space<vmem>>, %arg5: memref<1x1x98x20xf32, #tpu.memory_space<vmem>>) attributes {dimension_semantics = [#tpu.dimension_semantics<parallel>, #tpu.dimension_semantics<parallel>], iteration_bounds = array<i64: 2, 4>, scalar_prefetch = 0 : i64, scratch_operands = 0 : i64, tpu.core_type = #tpu.core_type<tc>, window_params = [{transform_indices = @transform_0, window_bounds = array<i64: 1, 1, 98, 120>}, {transform_indices = @transform_1, window_bounds = array<i64: 1, 1, 120, 20>}, {transform_indices = @transform_2, window_bounds = array<i64: 1, 1, 20>}, {transform_indices = @transform_3, window_bounds = array<i64: 1, 1, 98, 20>}]} {
    %c0 = arith.constant 0 : index
    %c0_0 = arith.constant 0 : index
    %c0_1 = arith.constant 0 : index
    %c0_2 = arith.constant 0 : index
    %0 = vector.load %arg2[%c0, %c0_0, %c0_1, %c0_2] : memref<1x1x98x120xbf16, #tpu.memory_space<vmem>>, vector<1x1x98x120xbf16>
    %1 = vector.shape_cast %0 : vector<1x1x98x120xbf16> to vector<98x120xbf16>
    %c0_3 = arith.constant 0 : index
    %c0_4 = arith.constant 0 : index
    %c0_5 = arith.constant 0 : index
    %c0_6 = arith.constant 0 : index
    %2 = vector.load %arg3[%c0_3, %c0_4, %c0_5, %c0_6] : memref<1x1x120x20xbf16, #tpu.memory_space<vmem>>, vector<1x1x120x20xbf16>
    %3 = vector.shape_cast %2 : vector<1x1x120x20xbf16> to vector<120x20xbf16>
    %cst = arith.constant dense<0.000000e+00> : vector<98x20xf32>
    %4 = tpu.matmul %1, %3, %cst {dimension_numbers = #tpu.dot_dimension_numbers<[1], [0], [0], [1], [0, 0, 1, 1], [], []>} : vector<98x120xbf16>, vector<120x20xbf16>, vector<98x20xf32> -> vector<98x20xf32>
    %c0_7 = arith.constant 0 : index
    %c0_8 = arith.constant 0 : index
    %c0_9 = arith.constant 0 : index
    %5 = vector.load %arg4[%c0_7, %c0_8, %c0_9] : memref<1x1x20xf32, #tpu.memory_space<vmem>>, vector<1x1x20xf32>
    %6 = vector.shape_cast %5 : vector<1x1x20xf32> to vector<1x20xf32>
    %7 = vector.broadcast %6 : vector<1x20xf32> to vector<98x20xf32>
    %8 = arith.addf %4, %7 : vector<98x20xf32>
    %cst_10 = arith.constant 0.000000e+00 : f32
    %9 = vector.broadcast %cst_10 : f32 to vector<98x20xf32>
    %10 = arith.maximumf %8, %9 : vector<98x20xf32>
    %c0_11 = arith.constant 0 : index
    %c0_12 = arith.constant 0 : index
    %c0_13 = arith.constant 0 : index
    %c0_14 = arith.constant 0 : index
    %11 = vector.load %arg5[%c0_11, %c0_12, %c0_13, %c0_14] : memref<1x1x98x20xf32, #tpu.memory_space<vmem>>, vector<1x1x98x20xf32>
    %12 = vector.shape_cast %11 : vector<1x1x98x20xf32> to vector<98x20xf32>
    %13 = vector.shape_cast %10 : vector<98x20xf32> to vector<1x1x98x20xf32>
    tpu.vector_store %arg5[%c0_11, %c0_12, %c0_13, %c0_14], %13 {strides = array<i32>} : memref<1x1x98x20xf32, #tpu.memory_space<vmem>>, vector<1x1x98x20xf32>,
    return
  }
  func.func @transform_0(%arg0: i32, %arg1: i32) -> (i32, i32, i32, i32) {
    %c0_i32 = arith.constant 0 : i32
    %c0_i32_0 = arith.constant 0 : i32
    %c0_i32_1 = arith.constant 0 : i32
    return %arg0, %arg1, %c0_i32, %c0_i32_0 : i32, i32, i32, i32
  }
  func.func @transform_1(%arg0: i32, %arg1: i32) -> (i32, i32, i32, i32) {
    %c0_i32 = arith.constant 0 : i32
    %c0_i32_0 = arith.constant 0 : i32
    %c0_i32_1 = arith.constant 0 : i32
    return %arg0, %arg1, %c0_i32, %c0_i32_0 : i32, i32, i32, i32
  }
  func.func @transform_2(%arg0: i32, %arg1: i32) -> (i32, i32, i32) {
    %c0_i32 = arith.constant 0 : i32
    %c0_i32_0 = arith.constant 0 : i32
    %c0_i32_1 = arith.constant 0 : i32
    return %arg0, %c0_i32, %c0_i32_0 : i32, i32, i32
  }
  func.func @transform_3(%arg0: i32, %arg1: i32) -> (i32, i32, i32, i32) {
    %c0_i32 = arith.constant 0 : i32
    %c0_i32_0 = arith.constant 0 : i32
    %c0_i32_1 = arith.constant 0 : i32
    return %arg0, %arg1, %c0_i32, %c0_i32_0 : i32, i32, i32, i32
  }
}

module attributes {stable_mosaic.version = 11 : i64} {
  func.func @_mm_bias_relu_kernel(%arg0: i32, %arg1: memref<1x392x180xbf16, #tpu.memory_space<vmem>>, %arg2: memref<1x180x10xbf16, #tpu.memory_space<vmem>>, %arg3: memref<1x1x10xf32, #tpu.memory_space<vmem>>, %arg4: memref<1x392x10xf32, #tpu.memory_space<vmem>>) attributes {dimension_semantics = [#tpu.dimension_semantics<parallel>], iteration_bounds = array<i64: 2>, scalar_prefetch = 0 : i64, scratch_operands = 0 : i64, tpu.core_type = #tpu.core_type<tc>, window_params = [{transform_indices = @transform_0, window_bounds = array<i64: 1, 392, 180>}, {transform_indices = @transform_1, window_bounds = array<i64: 1, 180, 10>}, {transform_indices = @transform_2, window_bounds = array<i64: 1, 1, 10>}, {transform_indices = @transform_3, window_bounds = array<i64: 1, 392, 10>}]} {
    %c0 = arith.constant 0 : index
    %c0_0 = arith.constant 0 : index
    %c0_1 = arith.constant 0 : index
    %0 = vector.load %arg1[%c0, %c0_0, %c0_1] : memref<1x392x180xbf16, #tpu.memory_space<vmem>>, vector<1x392x180xbf16>
    %1 = vector.shape_cast %0 : vector<1x392x180xbf16> to vector<392x180xbf16>
    %c0_2 = arith.constant 0 : index
    %c0_3 = arith.constant 0 : index
    %c0_4 = arith.constant 0 : index
    %2 = vector.load %arg2[%c0_2, %c0_3, %c0_4] : memref<1x180x10xbf16, #tpu.memory_space<vmem>>, vector<1x180x10xbf16>
    %3 = vector.shape_cast %2 : vector<1x180x10xbf16> to vector<180x10xbf16>
    %cst = arith.constant dense<0.000000e+00> : vector<392x10xf32>
    %4 = tpu.matmul %1, %3, %cst {dimension_numbers = #tpu.dot_dimension_numbers<[1], [0], [0], [1], [0, 0, 1, 1], [], []>} : vector<392x180xbf16>, vector<180x10xbf16>, vector<392x10xf32> -> vector<392x10xf32>
    %c0_5 = arith.constant 0 : index
    %c0_6 = arith.constant 0 : index
    %c0_7 = arith.constant 0 : index
    %5 = vector.load %arg3[%c0_5, %c0_6, %c0_7] : memref<1x1x10xf32, #tpu.memory_space<vmem>>, vector<1x1x10xf32>
    %6 = vector.shape_cast %5 : vector<1x1x10xf32> to vector<1x10xf32>
    %7 = vector.broadcast %6 : vector<1x10xf32> to vector<392x10xf32>
    %8 = arith.addf %4, %7 : vector<392x10xf32>
    %cst_8 = arith.constant 0.000000e+00 : f32
    %9 = vector.broadcast %cst_8 : f32 to vector<392x10xf32>
    %10 = arith.maximumf %8, %9 : vector<392x10xf32>
    %c0_9 = arith.constant 0 : index
    %c0_10 = arith.constant 0 : index
    %c0_11 = arith.constant 0 : index
    %11 = vector.load %arg4[%c0_9, %c0_10, %c0_11] : memref<1x392x10xf32, #tpu.memory_space<vmem>>, vector<1x392x10xf32>
    %12 = vector.shape_cast %11 : vector<1x392x10xf32> to vector<392x10xf32>
    %13 = vector.shape_cast %10 : vector<392x10xf32> to vector<1x392x10xf32>
    tpu.vector_store %arg4[%c0_9, %c0_10, %c0_11], %13 {strides = array<i32>} : memref<1x392x10xf32, #tpu.memory_space<vmem>>, vector<1x392x10xf32>,
    return
  }
  func.func @transform_0(%arg0: i32) -> (i32, i32, i32) {
    %c0_i32 = arith.constant 0 : i32
    %c0_i32_0 = arith.constant 0 : i32
    %c0_i32_1 = arith.constant 0 : i32
    return %arg0, %c0_i32, %c0_i32_0 : i32, i32, i32
  }
  func.func @transform_1(%arg0: i32) -> (i32, i32, i32) {
    %c0_i32 = arith.constant 0 : i32
    %c0_i32_0 = arith.constant 0 : i32
    %c0_i32_1 = arith.constant 0 : i32
    return %arg0, %c0_i32, %c0_i32_0 : i32, i32, i32
  }
  func.func @transform_2(%arg0: i32) -> (i32, i32, i32) {
    %c0_i32 = arith.constant 0 : i32
    %c0_i32_0 = arith.constant 0 : i32
    %c0_i32_1 = arith.constant 0 : i32
    return %arg0, %c0_i32, %c0_i32_0 : i32, i32, i32
  }
  func.func @transform_3(%arg0: i32) -> (i32, i32, i32) {
    %c0_i32 = arith.constant 0 : i32
    %c0_i32_0 = arith.constant 0 : i32
    %c0_i32_1 = arith.constant 0 : i32
    return %arg0, %c0_i32, %c0_i32_0 : i32, i32, i32
  }
}

module attributes {stable_mosaic.version = 11 : i64} {
  func.func @_mm_bias_relu_kernel(%arg0: i32, %arg1: i32, %arg2: memref<1x1x392x40xbf16, #tpu.memory_space<vmem>>, %arg3: memref<1x1x40x1xbf16, #tpu.memory_space<vmem>>, %arg4: memref<1x1x1xf32, #tpu.memory_space<vmem>>, %arg5: memref<1x1x392x1xf32, #tpu.memory_space<vmem>>) attributes {dimension_semantics = [#tpu.dimension_semantics<parallel>, #tpu.dimension_semantics<parallel>], iteration_bounds = array<i64: 2, 4>, scalar_prefetch = 0 : i64, scratch_operands = 0 : i64, tpu.core_type = #tpu.core_type<tc>, window_params = [{transform_indices = @transform_0, window_bounds = array<i64: 1, 1, 392, 40>}, {transform_indices = @transform_1, window_bounds = array<i64: 1, 1, 40, 1>}, {transform_indices = @transform_2, window_bounds = array<i64: 1, 1, 1>}, {transform_indices = @transform_3, window_bounds = array<i64: 1, 1, 392, 1>}]} {
    %c0 = arith.constant 0 : index
    %c0_0 = arith.constant 0 : index
    %c0_1 = arith.constant 0 : index
    %c0_2 = arith.constant 0 : index
    %0 = vector.load %arg2[%c0, %c0_0, %c0_1, %c0_2] : memref<1x1x392x40xbf16, #tpu.memory_space<vmem>>, vector<1x1x392x40xbf16>
    %1 = vector.shape_cast %0 : vector<1x1x392x40xbf16> to vector<392x40xbf16>
    %c0_3 = arith.constant 0 : index
    %c0_4 = arith.constant 0 : index
    %c0_5 = arith.constant 0 : index
    %c0_6 = arith.constant 0 : index
    %2 = vector.load %arg3[%c0_3, %c0_4, %c0_5, %c0_6] : memref<1x1x40x1xbf16, #tpu.memory_space<vmem>>, vector<1x1x40x1xbf16>
    %3 = vector.shape_cast %2 : vector<1x1x40x1xbf16> to vector<40x1xbf16>
    %cst = arith.constant dense<0.000000e+00> : vector<392x1xf32>
    %4 = tpu.matmul %1, %3, %cst {dimension_numbers = #tpu.dot_dimension_numbers<[1], [0], [0], [1], [0, 0, 1, 1], [], []>} : vector<392x40xbf16>, vector<40x1xbf16>, vector<392x1xf32> -> vector<392x1xf32>
    %c0_7 = arith.constant 0 : index
    %c0_8 = arith.constant 0 : index
    %c0_9 = arith.constant 0 : index
    %5 = vector.load %arg4[%c0_7, %c0_8, %c0_9] : memref<1x1x1xf32, #tpu.memory_space<vmem>>, vector<1x1x1xf32>
    %6 = vector.shape_cast %5 : vector<1x1x1xf32> to vector<1x1xf32>
    %7 = vector.broadcast %6 : vector<1x1xf32> to vector<392x1xf32>
    %8 = arith.addf %4, %7 : vector<392x1xf32>
    %cst_10 = arith.constant 0.000000e+00 : f32
    %9 = vector.broadcast %cst_10 : f32 to vector<392x1xf32>
    %10 = arith.maximumf %8, %9 : vector<392x1xf32>
    %c0_11 = arith.constant 0 : index
    %c0_12 = arith.constant 0 : index
    %c0_13 = arith.constant 0 : index
    %c0_14 = arith.constant 0 : index
    %11 = vector.load %arg5[%c0_11, %c0_12, %c0_13, %c0_14] : memref<1x1x392x1xf32, #tpu.memory_space<vmem>>, vector<1x1x392x1xf32>
    %12 = vector.shape_cast %11 : vector<1x1x392x1xf32> to vector<392x1xf32>
    %13 = vector.shape_cast %10 : vector<392x1xf32> to vector<1x1x392x1xf32>
    tpu.vector_store %arg5[%c0_11, %c0_12, %c0_13, %c0_14], %13 {strides = array<i32>} : memref<1x1x392x1xf32, #tpu.memory_space<vmem>>, vector<1x1x392x1xf32>,
    return
  }
  func.func @transform_0(%arg0: i32, %arg1: i32) -> (i32, i32, i32, i32) {
    %c0_i32 = arith.constant 0 : i32
    %c0_i32_0 = arith.constant 0 : i32
    %c0_i32_1 = arith.constant 0 : i32
    return %arg0, %arg1, %c0_i32, %c0_i32_0 : i32, i32, i32, i32
  }
  func.func @transform_1(%arg0: i32, %arg1: i32) -> (i32, i32, i32, i32) {
    %c0_i32 = arith.constant 0 : i32
    %c0_i32_0 = arith.constant 0 : i32
    %c0_i32_1 = arith.constant 0 : i32
    return %arg0, %arg1, %c0_i32, %c0_i32_0 : i32, i32, i32, i32
  }
  func.func @transform_2(%arg0: i32, %arg1: i32) -> (i32, i32, i32) {
    %c0_i32 = arith.constant 0 : i32
    %c0_i32_0 = arith.constant 0 : i32
    %c0_i32_1 = arith.constant 0 : i32
    return %arg0, %c0_i32, %c0_i32_0 : i32, i32, i32
  }
  func.func @transform_3(%arg0: i32, %arg1: i32) -> (i32, i32, i32, i32) {
    %c0_i32 = arith.constant 0 : i32
    %c0_i32_0 = arith.constant 0 : i32
    %c0_i32_1 = arith.constant 0 : i32
    return %arg0, %arg1, %c0_i32, %c0_i32_0 : i32, i32, i32, i32
  }
}

</mosaic_0001>

<bundles_post_ra>
// kernel: networks_forward.6
= control target key start
LH: loop header
LB: loop body
LE: loop exit
PB: predicated region body
PF: predicated region fallthrough
CT: control target
= control target key end

     0   :  { %s1138_s12 = smov 0   ;;  %s1422_s0 = inlined_call_operand.vmem [shape: bf16[2,392,16], index: 0, kind: input, shape index: {}]   ;;  %s1423_s1 = inlined_call_operand.vmem [shape: bf16[2,16,10], index: 1, kind: input, shape index: {}]   ;;  %s1424_s2 = inlined_call_operand.vmem [shape: f32[2,1,10], index: 2, kind: input, shape index: {}]   ;;  %s1425_s3 = inlined_call_operand.vmem [shape: f32[2,392,10], index: 3, kind: output, shape index: {}]  }
   0x1 LB: > { %s876_s13 = sadd.s32 4294967295, %s1114_s12   ;;  %p880_p0 = scmp.ge.s32.totalorder %s1114_s12, 1  ;;  %s1114_s12 = sphi %s1138_s12, %s13_s12  }
   0x2   : > { %p155_p1 = scmp.lt.s32.totalorder %s1114_s12, 3 }
   0x4   : > { %p156_p2 = pnand %p880_p0, %p155_p1 }
   0x5   : > { %p187_p3 = scmp.lt.s32.totalorder (!%p156_p2), %s876_s13, 1 }
   0x6   : > { %159 = sbr.rel (%p156_p2) target bundleno = 316 (0x13c), region = 32 }
   0xb   : > { %v1116_v0 = vmov 0.0   ;;  %vm1117_vm0 = vmmov 0   ;;  %s1427_s13 = smov (!%p187_p3, %s876_s13), 1  ;;  %vm393_vm1 = vcmask 130048   ;;  %vm750_vm2 = vcmask 80896  }
   0xc   : > { %966 = vmatprep.subr.bf16.mxu0 %v1116_v0  ;;  %968 = vmatprep.mubr.msk.bf16.mxu0 %vm1117_vm0, %v1116_v0  ;;  %s939_s14 = sshll.u32 %s1427_s13, 3  ;;  %s1070_s15 = smul.u32 196, %s1427_s13 }
   0xd   : > { %1068 = vmatprep.subr.bf16.mxu1 %v1116_v0  ;;  %1020 = vmatprep.mubr.msk.bf16.mxu1 %vm1117_vm0, %v1116_v0  ;;  %s196_s18 = scalar_lea.vmem %s1423_s1, %s939_s14  ;;  %s199_s24 = scalar_lea.vmem %s1424_s2, %s1427_s13 }
   0xe   : > { %v1082_v1 = vld [vmem:[%s196_s18] sm:$0xff]   ;;  %s1162_s21 = scalar_lea.vmem %s1422_s0, %s1070_s15  ;;  %s1071_s25 = smul.u32 392, %s1427_s13 }
   0xf   : > { %v1083_v2 = vld [vmem:[%s1162_s21] sm:$0xff]   ;;  %967 = vmatpush3.bf16.msra.mxu0 %v1082_v1  ;;  %1069 = vmatpush3.bf16.msra.mxu1 %v1082_v1  ;;  %v1084_v3 = vld [vmem:[%s1162_s21 + $0x68] sm:$0xff]   ;;  %v1086_v5 = vld [vmem:[%s1162_s21 + $0x70] sm:$0xff]  }
  0x10   : > { %v1085_v4 = vld [vmem:[%s1162_s21 + $0x8] sm:$0xff]   ;;  %v1087_v6 = vld [vmem:[%s1162_s21 + $0x10] sm:$0xff]   ;;  %v1088_v7 = vld [vmem:[%s1162_s21 + $0x78] sm:$0xff]   ;;  %s1272_s28 = scalar_lea.vmem %s1425_s3, %s1071_s25 }
  0x11   : > { %v1089_v8 = vld [vmem:[%s1162_s21 + $0x18] sm:$0xff]   ;;  %v1090_v9 = vld [vmem:[%s1162_s21 + $0x80] sm:$0xff]   ;;  %v1092_v11 = vld [vmem:[%s1162_s21 + $0x88] sm:$0xff]  }
  0x12   : > { %969 = vmatmul.mubr.msk.bf16.vlgmr.msra.gmra.mxu0 %vm393_vm1, %v1083_v2  ;;  %1021 = vmatmul.mubr.msk.bf16.vlgmr.msra.gmra.mxu1 %vm393_vm1, %v1084_v3  ;;  %v1091_v10 = vld [vmem:[%s1162_s21 + $0x20] sm:$0xff]   ;;  %v1093_v12 = vld [vmem:[%s1162_s21 + $0x28] sm:$0xff]   ;;  %v1094_v13 = vld [vmem:[%s1162_s21 + $0x90] sm:$0xff]  }
  0x13   : > { %972 = vmatprep.mubr.msk.bf16.mxu0 %vm1117_vm0, %v1116_v0  ;;  %1024 = vmatprep.mubr.msk.bf16.mxu1 %vm1117_vm0, %v1116_v0  ;;  %v1095_v14 = vld [vmem:[%s1162_s21 + $0x30] sm:$0xff]   ;;  %v1096_v15 = vld [vmem:[%s1162_s21 + $0x98] sm:$0xff]   ;;  %v1098_v17 = vld [vmem:[%s1162_s21 + $0xa0] sm:$0xff]  }
  0x14   : > { %v1097_v16 = vld [vmem:[%s1162_s21 + $0x38] sm:$0xff]   ;;  %v1099_v18 = vld [vmem:[%s1162_s21 + $0x40] sm:$0xff]   ;;  %v1100_v19 = vld [vmem:[%s1162_s21 + $0xa8] sm:$0xff]  }
  0x15   : > { %v1101_v20 = vld [vmem:[%s1162_s21 + $0x48] sm:$0xff]   ;;  %v1102_v21 = vld [vmem:[%s1162_s21 + $0xb0] sm:$0xff]   ;;  %v1104_v23 = vld [vmem:[%s1162_s21 + $0xb8] sm:$0xff]  }
  0x16   : > { %v1103_v22 = vld [vmem:[%s1162_s21 + $0x50] sm:$0xff]   ;;  %v1105_v24 = vld [vmem:[%s1162_s21 + $0x58] sm:$0xff]   ;;  %v1106_v25 = vld [vmem:[%s1162_s21 + $0xc0] ss:$0 sps:$4 sm:$0xff]  }
  0x17   : > { %v1107_v26 = vld [vmem:[%s1162_s21 + $0x60] sm:$0xff]  }
  0x18   : > { %v1265_v27 = vld [vmem:[%s199_s24] ss:$0 sm:$0xff] }
  0x1a   : > { %973 = vmatmul.mubr.msk.bf16.gmra.mxu0 %vm393_vm1, %v1085_v4  ;;  %1025 = vmatmul.mubr.msk.bf16.gmra.mxu1 %vm393_vm1, %v1086_v5 }
  0x1b   : > { %976 = vmatprep.mubr.msk.bf16.mxu0 %vm1117_vm0, %v1116_v0  ;;  %1028 = vmatprep.mubr.msk.bf16.mxu1 %vm1117_vm0, %v1116_v0 }
  0x22   : > { %977 = vmatmul.mubr.msk.bf16.gmra.mxu0 %vm393_vm1, %v1087_v6  ;;  %1029 = vmatmul.mubr.msk.bf16.gmra.mxu1 %vm393_vm1, %v1088_v7 }
  0x23   : > { %980 = vmatprep.mubr.msk.bf16.mxu0 %vm1117_vm0, %v1116_v0  ;;  %1032 = vmatprep.mubr.msk.bf16.mxu1 %vm1117_vm0, %v1116_v0 }
  0x2a   : > { %981 = vmatmul.mubr.msk.bf16.gmra.mxu0 %vm393_vm1, %v1089_v8  ;;  %1033 = vmatmul.mubr.msk.bf16.gmra.mxu1 %vm393_vm1, %v1090_v9 }
  0x2b   : > { %984 = vmatprep.mubr.msk.bf16.mxu0 %vm1117_vm0, %v1116_v0  ;;  %1036 = vmatprep.mubr.msk.bf16.mxu1 %vm1117_vm0, %v1116_v0 }
  0x32   : > { %985 = vmatmul.mubr.msk.bf16.gmra.mxu0 %vm393_vm1, %v1091_v10  ;;  %1037 = vmatmul.mubr.msk.bf16.gmra.mxu1 %vm393_vm1, %v1092_v11 }
  0x33   : > { %988 = vmatprep.mubr.msk.bf16.mxu0 %vm1117_vm0, %v1116_v0  ;;  %1040 = vmatprep.mubr.msk.bf16.mxu1 %vm1117_vm0, %v1116_v0 }
  0x3a   : > { %989 = vmatmul.mubr.msk.bf16.gmra.mxu0 %vm393_vm1, %v1093_v12  ;;  %1041 = vmatmul.mubr.msk.bf16.gmra.mxu1 %vm393_vm1, %v1094_v13 }
  0x3b   : > { %992 = vmatprep.mubr.msk.bf16.mxu0 %vm1117_vm0, %v1116_v0  ;;  %1044 = vmatprep.mubr.msk.bf16.mxu1 %vm1117_vm0, %v1116_v0 }
  0x42   : > { %993 = vmatmul.mubr.msk.bf16.gmra.mxu0 %vm393_vm1, %v1095_v14  ;;  %1045 = vmatmul.mubr.msk.bf16.gmra.mxu1 %vm393_vm1, %v1096_v15 }
  0x43   : > { %996 = vmatprep.mubr.msk.bf16.mxu0 %vm1117_vm0, %v1116_v0  ;;  %1048 = vmatprep.mubr.msk.bf16.mxu1 %vm1117_vm0, %v1116_v0 }
  0x4a   : > { %997 = vmatmul.mubr.msk.bf16.gmra.mxu0 %vm393_vm1, %v1097_v16  ;;  %1049 = vmatmul.mubr.msk.bf16.gmra.mxu1 %vm393_vm1, %v1098_v17 }
  0x4b   : > { %1000 = vmatprep.mubr.msk.bf16.mxu0 %vm1117_vm0, %v1116_v0  ;;  %1052 = vmatprep.mubr.msk.bf16.mxu1 %vm1117_vm0, %v1116_v0 }
  0x52   : > { %1001 = vmatmul.mubr.msk.bf16.gmra.mxu0 %vm393_vm1, %v1099_v18  ;;  %1053 = vmatmul.mubr.msk.bf16.gmra.mxu1 %vm393_vm1, %v1100_v19 }
  0x53   : > { %1004 = vmatprep.mubr.msk.bf16.mxu0 %vm1117_vm0, %v1116_v0  ;;  %1056 = vmatprep.mubr.msk.bf16.mxu1 %vm1117_vm0, %v1116_v0 }
  0x5a   : > { %1005 = vmatmul.mubr.msk.bf16.gmra.mxu0 %vm393_vm1, %v1101_v20  ;;  %1057 = vmatmul.mubr.msk.bf16.gmra.mxu1 %vm393_vm1, %v1102_v21 }
  0x5b   : > { %1008 = vmatprep.mubr.msk.bf16.mxu0 %vm1117_vm0, %v1116_v0  ;;  %1060 = vmatprep.mubr.msk.bf16.mxu1 %vm1117_vm0, %v1116_v0 }
  0x62   : > { %1009 = vmatmul.mubr.msk.bf16.gmra.mxu0 %vm393_vm1, %v1103_v22  ;;  %1061 = vmatmul.mubr.msk.bf16.gmra.mxu1 %vm393_vm1, %v1104_v23 }
  0x63   : > { %1012 = vmatprep.mubr.msk.bf16.mxu0 %vm1117_vm0, %v1116_v0  ;;  %1064 = vmatprep.mubr.msk.bf16.mxu1 %vm1117_vm0, %v1116_v0 }
  0x6a   : > { %1013 = vmatmul.mubr.msk.bf16.gmra.mxu0 %vm393_vm1, %v1105_v24  ;;  %1065 = vmatmul.mubr.msk.bf16.gmra.mxu1 %vm393_vm1, %v1106_v25 }
  0x6b   : > { %1016 = vmatprep.mubr.msk.bf16.mxu0 %vm1117_vm0, %v1116_v0 }
  0x72   : > { %1017 = vmatmul.mubr.msk.bf16.gmra.mxu0 %vm393_vm1, %v1107_v26 }
  0xd2   : > { %v503_v28 = vpop.f32.mrf.mxu0  ;;  %v607_v29 = vpop.f32.mrf.mxu1 }
  0xd3   : > { %v504_v30 = vadd.f32 %v1265_v27, %v503_v28  ;;  %v608_v31 = vadd.f32 %v1265_v27, %v607_v29 }
  0xd4   : > { %v970_v32 = vpop.f32.mrf.mxu0  ;;  %v1022_v33 = vpop.f32.mrf.mxu1 }
  0xd5   : > { %v701_v34 = vmax.f32 %v504_v30, 0.0  ;;  %v727_v35 = vmax.f32 %v608_v31, 0.0 }
  0xd6   : > { %v506_v36 = vpop.f32.mrf.mxu0  ;;  %v610_v37 = vpop.f32.mrf.mxu1 }
  0xd7   : > { %751 = vst.msk [vmem:[%s1272_s28] sm:$0xff] %vm750_vm2, %v701_v34  ;;  %v507_v38 = vadd.f32 %v1265_v27, %v506_v36  ;;  %777 = vst.msk [vmem:[%s1272_s28 + $0xd0] sm:$0xff] %vm750_vm2, %v727_v35  ;;  %v611_v39 = vadd.f32 %v1265_v27, %v610_v37 }
  0xd8   : > { %v971_v40 = vpop.f32.mrf.mxu0  ;;  %v1023_v41 = vpop.f32.mrf.mxu1 }
  0xd9   : > { %v702_v42 = vmax.f32 %v507_v38, 0.0  ;;  %v728_v43 = vmax.f32 %v611_v39, 0.0 }
  0xda   : > { %v511_v44 = vpop.f32.mrf.mxu0  ;;  %v615_v45 = vpop.f32.mrf.mxu1 }
  0xdb   : > { %752 = vst.msk [vmem:[%s1272_s28 + $0x8] sm:$0xff] %vm750_vm2, %v702_v42  ;;  %v512_v46 = vadd.f32 %v1265_v27, %v511_v44  ;;  %778 = vst.msk [vmem:[%s1272_s28 + $0xd8] sm:$0xff] %vm750_vm2, %v728_v43  ;;  %v616_v47 = vadd.f32 %v1265_v27, %v615_v45 }
  0xdc   : > { %v974_v48 = vpop.f32.mrf.mxu0  ;;  %v1026_v49 = vpop.f32.mrf.mxu1 }
  0xdd   : > { %v703_v50 = vmax.f32 %v512_v46, 0.0  ;;  %v729_v51 = vmax.f32 %v616_v47, 0.0 }
  0xde   : > { %v514_v52 = vpop.f32.mrf.mxu0  ;;  %v618_v53 = vpop.f32.mrf.mxu1 }
  0xdf   : > { %753 = vst.msk [vmem:[%s1272_s28 + $0x10] sm:$0xff] %vm750_vm2, %v703_v50  ;;  %v515_v54 = vadd.f32 %v1265_v27, %v514_v52  ;;  %779 = vst.msk [vmem:[%s1272_s28 + $0xe0] sm:$0xff] %vm750_vm2, %v729_v51  ;;  %v619_v55 = vadd.f32 %v1265_v27, %v618_v53 }
  0xe0   : > { %v975_v56 = vpop.f32.mrf.mxu0  ;;  %v1027_v57 = vpop.f32.mrf.mxu1 }
  0xe1   : > { %v704_v58 = vmax.f32 %v515_v54, 0.0  ;;  %v730_v59 = vmax.f32 %v619_v55, 0.0 }
  0xe2   : > { %v519_v60 = vpop.f32.mrf.mxu0  ;;  %v623_v61 = vpop.f32.mrf.mxu1 }
  0xe3   : > { %754 = vst.msk [vmem:[%s1272_s28 + $0x18] sm:$0xff] %vm750_vm2, %v704_v58  ;;  %v520_v62 = vadd.f32 %v1265_v27, %v519_v60  ;;  %780 = vst.msk [vmem:[%s1272_s28 + $0xe8] sm:$0xff] %vm750_vm2, %v730_v59  ;;  %v624_v63 = vadd.f32 %v1265_v27, %v623_v61 }
  0xe4   : > { %v978_v0 = vpop.f32.mrf.mxu0  ;;  %v1030_v1 = vpop.f32.mrf.mxu1 }
  0xe5   : > { %v705_v2 = vmax.f32 %v520_v62, 0.0  ;;  %v731_v3 = vmax.f32 %v624_v63, 0.0 }
  0xe6   : > { %v522_v4 = vpop.f32.mrf.mxu0  ;;  %v626_v5 = vpop.f32.mrf.mxu1 }
  0xe7   : > { %755 = vst.msk [vmem:[%s1272_s28 + $0x20] sm:$0xff] %vm750_vm2, %v705_v2  ;;  %v523_v6 = vadd.f32 %v1265_v27, %v522_v4  ;;  %781 = vst.msk [vmem:[%s1272_s28 + $0xf0] sm:$0xff] %vm750_vm2, %v731_v3  ;;  %v627_v7 = vadd.f32 %v1265_v27, %v626_v5 }
  0xe8   : > { %v979_v8 = vpop.f32.mrf.mxu0  ;;  %v1031_v9 = vpop.f32.mrf.mxu1 }
  0xe9   : > { %v706_v10 = vmax.f32 %v523_v6, 0.0  ;;  %v732_v11 = vmax.f32 %v627_v7, 0.0 }
  0xea   : > { %v527_v12 = vpop.f32.mrf.mxu0  ;;  %v631_v13 = vpop.f32.mrf.mxu1 }
  0xeb   : > { %756 = vst.msk [vmem:[%s1272_s28 + $0x28] sm:$0xff] %vm750_vm2, %v706_v10  ;;  %v528_v14 = vadd.f32 %v1265_v27, %v527_v12  ;;  %782 = vst.msk [vmem:[%s1272_s28 + $0xf8] sm:$0xff] %vm750_vm2, %v732_v11  ;;  %v632_v15 = vadd.f32 %v1265_v27, %v631_v13 }
  0xec   : > { %v982_v16 = vpop.f32.mrf.mxu0  ;;  %v1034_v17 = vpop.f32.mrf.mxu1 }
  0xed   : > { %v707_v18 = vmax.f32 %v528_v14, 0.0  ;;  %v733_v19 = vmax.f32 %v632_v15, 0.0 }
  0xee   : > { %v530_v20 = vpop.f32.mrf.mxu0  ;;  %v634_v21 = vpop.f32.mrf.mxu1 }
  0xef   : > { %757 = vst.msk [vmem:[%s1272_s28 + $0x30] sm:$0xff] %vm750_vm2, %v707_v18  ;;  %v531_v22 = vadd.f32 %v1265_v27, %v530_v20  ;;  %783 = vst.msk [vmem:[%s1272_s28 + $0x100] sm:$0xff] %vm750_vm2, %v733_v19  ;;  %v635_v23 = vadd.f32 %v1265_v27, %v634_v21 }
  0xf0   : > { %v983_v24 = vpop.f32.mrf.mxu0  ;;  %v1035_v25 = vpop.f32.mrf.mxu1 }
  0xf1   : > { %v708_v26 = vmax.f32 %v531_v22, 0.0  ;;  %v734_v28 = vmax.f32 %v635_v23, 0.0 }
  0xf2   : > { %v535_v29 = vpop.f32.mrf.mxu0  ;;  %v639_v30 = vpop.f32.mrf.mxu1 }
  0xf3   : > { %758 = vst.msk [vmem:[%s1272_s28 + $0x38] sm:$0xff] %vm750_vm2, %v708_v26  ;;  %v536_v31 = vadd.f32 %v1265_v27, %v535_v29  ;;  %784 = vst.msk [vmem:[%s1272_s28 + $0x108] sm:$0xff] %vm750_vm2, %v734_v28  ;;  %v640_v32 = vadd.f32 %v1265_v27, %v639_v30 }
  0xf4   : > { %v986_v33 = vpop.f32.mrf.mxu0  ;;  %v1038_v34 = vpop.f32.mrf.mxu1 }
  0xf5   : > { %v709_v35 = vmax.f32 %v536_v31, 0.0  ;;  %v735_v36 = vmax.f32 %v640_v32, 0.0 }
  0xf6   : > { %v538_v37 = vpop.f32.mrf.mxu0  ;;  %v642_v38 = vpop.f32.mrf.mxu1 }
  0xf7   : > { %759 = vst.msk [vmem:[%s1272_s28 + $0x40] sm:$0xff] %vm750_vm2, %v709_v35  ;;  %v539_v39 = vadd.f32 %v1265_v27, %v538_v37  ;;  %785 = vst.msk [vmem:[%s1272_s28 + $0x110] sm:$0xff] %vm750_vm2, %v735_v36  ;;  %v643_v40 = vadd.f32 %v1265_v27, %v642_v38 }
  0xf8   : > { %v987_v41 = vpop.f32.mrf.mxu0  ;;  %v1039_v42 = vpop.f32.mrf.mxu1 }
  0xf9   : > { %v710_v43 = vmax.f32 %v539_v39, 0.0  ;;  %v736_v44 = vmax.f32 %v643_v40, 0.0 }
  0xfa   : > { %v543_v45 = vpop.f32.mrf.mxu0  ;;  %v647_v46 = vpop.f32.mrf.mxu1 }
  0xfb   : > { %760 = vst.msk [vmem:[%s1272_s28 + $0x48] sm:$0xff] %vm750_vm2, %v710_v43  ;;  %v544_v47 = vadd.f32 %v1265_v27, %v543_v45  ;;  %786 = vst.msk [vmem:[%s1272_s28 + $0x118] sm:$0xff] %vm750_vm2, %v736_v44  ;;  %v648_v48 = vadd.f32 %v1265_v27, %v647_v46 }
  0xfc   : > { %v990_v49 = vpop.f32.mrf.mxu0  ;;  %v1042_v50 = vpop.f32.mrf.mxu1 }
  0xfd   : > { %v711_v51 = vmax.f32 %v544_v47, 0.0  ;;  %v737_v52 = vmax.f32 %v648_v48, 0.0 }
  0xfe   : > { %v546_v53 = vpop.f32.mrf.mxu0  ;;  %v650_v54 = vpop.f32.mrf.mxu1 }
  0xff   : > { %761 = vst.msk [vmem:[%s1272_s28 + $0x50] sm:$0xff] %vm750_vm2, %v711_v51  ;;  %v547_v55 = vadd.f32 %v1265_v27, %v546_v53  ;;  %787 = vst.msk [vmem:[%s1272_s28 + $0x120] sm:$0xff] %vm750_vm2, %v737_v52  ;;  %v651_v56 = vadd.f32 %v1265_v27, %v650_v54 }
 0x100   : > { %v991_v57 = vpop.f32.mrf.mxu0  ;;  %v1043_v58 = vpop.f32.mrf.mxu1 }
 0x101   : > { %v712_v59 = vmax.f32 %v547_v55, 0.0  ;;  %v738_v60 = vmax.f32 %v651_v56, 0.0 }
 0x102   : > { %v551_v61 = vpop.f32.mrf.mxu0  ;;  %v655_v62 = vpop.f32.mrf.mxu1 }
 0x103   : > { %762 = vst.msk [vmem:[%s1272_s28 + $0x58] sm:$0xff] %vm750_vm2, %v712_v59  ;;  %v552_v63 = vadd.f32 %v1265_v27, %v551_v61  ;;  %788 = vst.msk [vmem:[%s1272_s28 + $0x128] sm:$0xff] %vm750_vm2, %v738_v60  ;;  %v656_v0 = vadd.f32 %v1265_v27, %v655_v62 }
 0x104   : > { %v994_v1 = vpop.f32.mrf.mxu0  ;;  %v1046_v2 = vpop.f32.mrf.mxu1 }
 0x105   : > { %v713_v3 = vmax.f32 %v552_v63, 0.0  ;;  %v739_v4 = vmax.f32 %v656_v0, 0.0 }
 0x106   : > { %v554_v5 = vpop.f32.mrf.mxu0  ;;  %v658_v6 = vpop.f32.mrf.mxu1 }
 0x107   : > { %763 = vst.msk [vmem:[%s1272_s28 + $0x60] sm:$0xff] %vm750_vm2, %v713_v3  ;;  %v555_v7 = vadd.f32 %v1265_v27, %v554_v5  ;;  %789 = vst.msk [vmem:[%s1272_s28 + $0x130] sm:$0xff] %vm750_vm2, %v739_v4  ;;  %v659_v8 = vadd.f32 %v1265_v27, %v658_v6 }
 0x108   : > { %v995_v9 = vpop.f32.mrf.mxu0  ;;  %v1047_v10 = vpop.f32.mrf.mxu1 }
 0x109   : > { %v714_v11 = vmax.f32 %v555_v7, 0.0  ;;  %v740_v12 = vmax.f32 %v659_v8, 0.0 }
 0x10a   : > { %v559_v13 = vpop.f32.mrf.mxu0  ;;  %v663_v14 = vpop.f32.mrf.mxu1 }
 0x10b   : > { %764 = vst.msk [vmem:[%s1272_s28 + $0x68] sm:$0xff] %vm750_vm2, %v714_v11  ;;  %v560_v15 = vadd.f32 %v1265_v27, %v559_v13  ;;  %790 = vst.msk [vmem:[%s1272_s28 + $0x138] sm:$0xff] %vm750_vm2, %v740_v12  ;;  %v664_v16 = vadd.f32 %v1265_v27, %v663_v14 }
 0x10c   : > { %v998_v17 = vpop.f32.mrf.mxu0  ;;  %v1050_v18 = vpop.f32.mrf.mxu1 }
 0x10d   : > { %v715_v19 = vmax.f32 %v560_v15, 0.0  ;;  %v741_v20 = vmax.f32 %v664_v16, 0.0 }
 0x10e   : > { %v562_v21 = vpop.f32.mrf.mxu0  ;;  %v666_v22 = vpop.f32.mrf.mxu1 }
 0x10f   : > { %765 = vst.msk [vmem:[%s1272_s28 + $0x70] sm:$0xff] %vm750_vm2, %v715_v19  ;;  %v563_v23 = vadd.f32 %v1265_v27, %v562_v21  ;;  %791 = vst.msk [vmem:[%s1272_s28 + $0x140] sm:$0xff] %vm750_vm2, %v741_v20  ;;  %v667_v24 = vadd.f32 %v1265_v27, %v666_v22 }
 0x110   : > { %v999_v25 = vpop.f32.mrf.mxu0  ;;  %v1051_v26 = vpop.f32.mrf.mxu1 }
 0x111   : > { %v716_v28 = vmax.f32 %v563_v23, 0.0  ;;  %v742_v29 = vmax.f32 %v667_v24, 0.0 }
 0x112   : > { %v567_v30 = vpop.f32.mrf.mxu0  ;;  %v671_v31 = vpop.f32.mrf.mxu1 }
 0x113   : > { %766 = vst.msk [vmem:[%s1272_s28 + $0x78] sm:$0xff] %vm750_vm2, %v716_v28  ;;  %v568_v32 = vadd.f32 %v1265_v27, %v567_v30  ;;  %792 = vst.msk [vmem:[%s1272_s28 + $0x148] sm:$0xff] %vm750_vm2, %v742_v29  ;;  %v672_v33 = vadd.f32 %v1265_v27, %v671_v31 }
 0x114   : > { %v1002_v34 = vpop.f32.mrf.mxu0  ;;  %v1054_v35 = vpop.f32.mrf.mxu1 }
 0x115   : > { %v717_v36 = vmax.f32 %v568_v32, 0.0  ;;  %v743_v37 = vmax.f32 %v672_v33, 0.0 }
 0x116   : > { %v570_v38 = vpop.f32.mrf.mxu0  ;;  %v674_v39 = vpop.f32.mrf.mxu1 }
 0x117   : > { %767 = vst.msk [vmem:[%s1272_s28 + $0x80] sm:$0xff] %vm750_vm2, %v717_v36  ;;  %v571_v40 = vadd.f32 %v1265_v27, %v570_v38  ;;  %793 = vst.msk [vmem:[%s1272_s28 + $0x150] sm:$0xff] %vm750_vm2, %v743_v37  ;;  %v675_v41 = vadd.f32 %v1265_v27, %v674_v39 }
 0x118   : > { %v1003_v42 = vpop.f32.mrf.mxu0  ;;  %v1055_v43 = vpop.f32.mrf.mxu1 }
 0x119   : > { %v718_v44 = vmax.f32 %v571_v40, 0.0  ;;  %v744_v45 = vmax.f32 %v675_v41, 0.0 }
 0x11a   : > { %v575_v46 = vpop.f32.mrf.mxu0  ;;  %v679_v47 = vpop.f32.mrf.mxu1 }
 0x11b   : > { %768 = vst.msk [vmem:[%s1272_s28 + $0x88] sm:$0xff] %vm750_vm2, %v718_v44  ;;  %v576_v48 = vadd.f32 %v1265_v27, %v575_v46  ;;  %794 = vst.msk [vmem:[%s1272_s28 + $0x158] sm:$0xff] %vm750_vm2, %v744_v45  ;;  %v680_v49 = vadd.f32 %v1265_v27, %v679_v47 }
 0x11c   : > { %v1006_v50 = vpop.f32.mrf.mxu0  ;;  %v1058_v51 = vpop.f32.mrf.mxu1 }
 0x11d   : > { %v719_v52 = vmax.f32 %v576_v48, 0.0  ;;  %v745_v53 = vmax.f32 %v680_v49, 0.0 }
 0x11e   : > { %v578_v54 = vpop.f32.mrf.mxu0  ;;  %v682_v55 = vpop.f32.mrf.mxu1 }
 0x11f   : > { %769 = vst.msk [vmem:[%s1272_s28 + $0x90] sm:$0xff] %vm750_vm2, %v719_v52  ;;  %v579_v56 = vadd.f32 %v1265_v27, %v578_v54  ;;  %795 = vst.msk [vmem:[%s1272_s28 + $0x160] sm:$0xff] %vm750_vm2, %v745_v53  ;;  %v683_v57 = vadd.f32 %v1265_v27, %v682_v55 }
 0x120   : > { %v1007_v58 = vpop.f32.mrf.mxu0  ;;  %v1059_v59 = vpop.f32.mrf.mxu1 }
 0x121   : > { %v720_v60 = vmax.f32 %v579_v56, 0.0  ;;  %v746_v61 = vmax.f32 %v683_v57, 0.0 }
 0x122   : > { %v583_v62 = vpop.f32.mrf.mxu0  ;;  %v687_v63 = vpop.f32.mrf.mxu1 }
 0x123   : > { %770 = vst.msk [vmem:[%s1272_s28 + $0x98] sm:$0xff] %vm750_vm2, %v720_v60  ;;  %v584_v0 = vadd.f32 %v1265_v27, %v583_v62  ;;  %796 = vst.msk [vmem:[%s1272_s28 + $0x168] sm:$0xff] %vm750_vm2, %v746_v61  ;;  %v688_v1 = vadd.f32 %v1265_v27, %v687_v63 }
 0x124   : > { %v1010_v2 = vpop.f32.mrf.mxu0  ;;  %v1062_v3 = vpop.f32.mrf.mxu1 }
 0x125   : > { %v721_v4 = vmax.f32 %v584_v0, 0.0  ;;  %v747_v5 = vmax.f32 %v688_v1, 0.0 }
 0x126   : > { %v586_v6 = vpop.f32.mrf.mxu0  ;;  %v690_v7 = vpop.f32.mrf.mxu1 }
 0x127   : > { %771 = vst.msk [vmem:[%s1272_s28 + $0xa0] sm:$0xff] %vm750_vm2, %v721_v4  ;;  %v587_v8 = vadd.f32 %v1265_v27, %v586_v6  ;;  %797 = vst.msk [vmem:[%s1272_s28 + $0x170] sm:$0xff] %vm750_vm2, %v747_v5  ;;  %v691_v9 = vadd.f32 %v1265_v27, %v690_v7 }
 0x128   : > { %v1011_v10 = vpop.f32.mrf.mxu0  ;;  %v1063_v11 = vpop.f32.mrf.mxu1 }
 0x129   : > { %v722_v12 = vmax.f32 %v587_v8, 0.0  ;;  %v748_v13 = vmax.f32 %v691_v9, 0.0 }
 0x12a   : > { %v591_v14 = vpop.f32.mrf.mxu0  ;;  %v695_v15 = vpop.f32.mrf.mxu1 }
 0x12b   : > { %772 = vst.msk [vmem:[%s1272_s28 + $0xa8] sm:$0xff] %vm750_vm2, %v722_v12  ;;  %v592_v16 = vadd.f32 %v1265_v27, %v591_v14  ;;  %798 = vst.msk [vmem:[%s1272_s28 + $0x178] sm:$0xff] %vm750_vm2, %v748_v13  ;;  %v696_v17 = vadd.f32 %v1265_v27, %v695_v15 }
 0x12c   : > { %v1014_v18 = vpop.f32.mrf.mxu0  ;;  %v1066_v19 = vpop.f32.mrf.mxu1 }
 0x12d   : > { %v723_v20 = vmax.f32 %v592_v16, 0.0  ;;  %v749_v21 = vmax.f32 %v696_v17, 0.0 }
 0x12e   : > { %v594_v22 = vpop.f32.mrf.mxu0  ;;  %v698_v23 = vpop.f32.mrf.mxu1 }
 0x12f   : > { %773 = vst.msk [vmem:[%s1272_s28 + $0xb0] sm:$0xff] %vm750_vm2, %v723_v20  ;;  %v595_v24 = vadd.f32 %v1265_v27, %v594_v22  ;;  %799 = vst.msk [vmem:[%s1272_s28 + $0x180] sm:$0xff] %vm750_vm2, %v749_v21 }
 0x130   : > { %v1015_v25 = vpop.f32.mrf.mxu0  ;;  %v1067_v26 = vpop.f32.mrf.mxu1 }
 0x131   : > { %v724_v28 = vmax.f32 %v595_v24, 0.0 }
 0x132   : > { %v599_v29 = vpop.f32.mrf.mxu0 }
 0x133   : > { %774 = vst.msk [vmem:[%s1272_s28 + $0xb8] sm:$0xff] %vm750_vm2, %v724_v28  ;;  %v600_v30 = vadd.f32 %v1265_v27, %v599_v29 }
 0x134   : > { %v1018_v31 = vpop.f32.mrf.mxu0 }
 0x135   : > { %v725_v32 = vmax.f32 %v600_v30, 0.0 }
 0x136   : > { %v602_v33 = vpop.f32.mrf.mxu0 }
 0x137   : > { %775 = vst.msk [vmem:[%s1272_s28 + $0xc0] sm:$0xff] %vm750_vm2, %v725_v32  ;;  %v603_v34 = vadd.f32 %v1265_v27, %v602_v33 }
 0x138   : > { %v1019_v35 = vpop.f32.mrf.mxu0 }
 0x139   : > { %v726_v36 = vmax.f32 %v603_v34, 0.0 }
 0x13b   : > { %776 = vst.msk [vmem:[%s1272_s28 + $0xc8] sm:$0xff] %vm750_vm2, %v726_v36 }
 0x13c PF: > { %s13_s12 = sadd.s32 1, %s1114_s12  }
 0x13d   : > { %p10_p4 = scmp.ge.s32.totalorder %s13_s12, 4  }
 0x13f   :  { %12 = sbr.rel (!%p10_p4) target bundleno = 1 (0x1), region = 68 }

// kernel: networks_forward.7
= control target key start
LH: loop header
LB: loop body
LE: loop exit
PB: predicated region body
PF: predicated region fallthrough
CT: control target
= control target key end

     0   :  { %s1215_s12 = smov 0   ;;  %s1509_s0 = inlined_call_operand.vmem [shape: bf16[2,392,90], index: 0, kind: input, shape index: {}]   ;;  %s1510_s1 = inlined_call_operand.vmem [shape: bf16[2,90,20], index: 1, kind: input, shape index: {}]   ;;  %s1511_s2 = inlined_call_operand.vmem [shape: f32[2,1,20], index: 2, kind: input, shape index: {}]   ;;  %s1512_s3 = inlined_call_operand.vmem [shape: f32[2,392,20], index: 3, kind: output, shape index: {}]  }
   0x1 LB: > { %s919_s13 = sadd.s32 4294967295, %s1191_s12   ;;  %p923_p0 = scmp.ge.s32.totalorder %s1191_s12, 1  ;;  %s1191_s12 = sphi %s1215_s12, %s13_s12  }
   0x2   : > { %p155_p1 = scmp.lt.s32.totalorder %s1191_s12, 3 }
   0x4   : > { %p156_p2 = pnand %p923_p0, %p155_p1 }
   0x5   : > { %p187_p3 = scmp.lt.s32.totalorder (!%p156_p2), %s919_s13, 1 }
   0x6   : > { %159 = sbr.rel (%p156_p2) target bundleno = 338 (0x152), region = 32 }
   0xb   : > { %v1193_v0 = vmov 0.0   ;;  %s1514_s13 = smov (!%p187_p3, %s919_s13), 1  ;;  %vm1194_vm0 = vmmov 0   ;;  %vm508_vm1 = vcmask 1044480   ;;  %vm432_vm2 = vcmask 736256  }
   0xc   : > { %1017 = vmatprep.subr.bf16.mxu0 %v1193_v0  ;;  %1129 = vmatprep.subr.bf16.mxu1 %v1193_v0  ;;  %s1142_s14 = smul.u32 48, %s1514_s13  ;;  %s199_s24 = scalar_lea.vmem %s1511_s2, %s1514_s13  ;;  %vm793_vm3 = vcmask 162816  }
   0xd   : > { %1029 = vmatprep.mubr.msk.bf16.mxu0 %vm1194_vm0, %v1193_v0  ;;  %1081 = vmatprep.mubr.msk.bf16.mxu1 %vm1194_vm0, %v1193_v0  ;;  %s1141_s18 = smul.u32 196, %s1514_s13  ;;  %v1352_v33 = vld [vmem:[%s199_s24] ss:$0 sm:$0xff] }
   0xe   : > { %s196_s17 = scalar_lea.vmem %s1510_s1, %s1142_s14  ;;  %s1143_s25 = smul.u32 392, %s1514_s13 }
   0xf   : > { %v1154_v1 = vld [vmem:[%s196_s17 + $0x28] sm:$0x1f]   ;;  %v1155_v3 = vld [vmem:[%s196_s17 + $0x20] sm:$0xff]   ;;  %s1241_s21 = scalar_lea.vmem %s1509_s0, %s1141_s18  ;;  %v1156_v4 = vld [vmem:[%s196_s17 + $0x18] sm:$0xff]  }
  0x10   : > { %v510_v2 = vsel %vm508_vm1, %v1154_v1, 0  ;;  %v1157_v5 = vld [vmem:[%s196_s17 + $0x10] sm:$0xff]   ;;  %v1158_v6 = vld [vmem:[%s196_s17 + $0x8] sm:$0xff]   ;;  %v1159_v7 = vld [vmem:[%s196_s17] sm:$0xff]   ;;  %s1359_s28 = scalar_lea.vmem %s1512_s3, %s1143_s25 }
  0x11   : > { %1018 = vmatpush3.bf16.msra.mxu0 %v510_v2  ;;  %1135 = vmatpush3.bf16.msra.mxu1 %v510_v2  ;;  %v1160_v8 = vld [vmem:[%s1241_s21] sm:$0xff]   ;;  %v1161_v9 = vld [vmem:[%s1241_s21 + $0x68] sm:$0xff]   ;;  %v1163_v11 = vld [vmem:[%s1241_s21 + $0x70] sm:$0xff]  }
  0x12   : > { %1019 = vmatprep.subr.bf16.mxu0 %v1193_v0  ;;  %1130 = vmatprep.subr.bf16.mxu1 %v1193_v0  ;;  %v1162_v10 = vld [vmem:[%s1241_s21 + $0x8] sm:$0xff]   ;;  %v1164_v12 = vld [vmem:[%s1241_s21 + $0x10] sm:$0xff]   ;;  %v1165_v13 = vld [vmem:[%s1241_s21 + $0x78] sm:$0xff]  }
  0x13   : > { %v1166_v14 = vld [vmem:[%s1241_s21 + $0x18] sm:$0xff]   ;;  %v1167_v15 = vld [vmem:[%s1241_s21 + $0x80] sm:$0xff]   ;;  %v1169_v17 = vld [vmem:[%s1241_s21 + $0x88] sm:$0xff]  }
  0x14   : > { %v1168_v16 = vld [vmem:[%s1241_s21 + $0x20] sm:$0xff]   ;;  %v1170_v18 = vld [vmem:[%s1241_s21 + $0x28] sm:$0xff]   ;;  %v1171_v19 = vld [vmem:[%s1241_s21 + $0x90] sm:$0xff]  }
  0x15   : > { %1020 = vmatpush3.bf16.msra.mxu0 %v1155_v3  ;;  %1136 = vmatpush3.bf16.msra.mxu1 %v1155_v3  ;;  %v1172_v20 = vld [vmem:[%s1241_s21 + $0x30] sm:$0xff]   ;;  %v1173_v21 = vld [vmem:[%s1241_s21 + $0x98] sm:$0xff]   ;;  %v1175_v23 = vld [vmem:[%s1241_s21 + $0xa0] sm:$0xff]  }
  0x16   : > { %1021 = vmatprep.subr.bf16.mxu0 %v1193_v0  ;;  %1131 = vmatprep.subr.bf16.mxu1 %v1193_v0  ;;  %v1174_v22 = vld [vmem:[%s1241_s21 + $0x38] sm:$0xff]   ;;  %v1176_v24 = vld [vmem:[%s1241_s21 + $0x40] sm:$0xff]   ;;  %v1177_v25 = vld [vmem:[%s1241_s21 + $0xa8] sm:$0xff]  }
  0x17   : > { %v1178_v26 = vld [vmem:[%s1241_s21 + $0x48] sm:$0xff]   ;;  %v1179_v27 = vld [vmem:[%s1241_s21 + $0xb0] sm:$0xff]   ;;  %v1181_v29 = vld [vmem:[%s1241_s21 + $0xb8] sm:$0xff]  }
  0x18   : > { %v1180_v28 = vld [vmem:[%s1241_s21 + $0x50] sm:$0xff]   ;;  %v1182_v30 = vld [vmem:[%s1241_s21 + $0x58] sm:$0xff]   ;;  %v1183_v31 = vld [vmem:[%s1241_s21 + $0xc0] ss:$0 sps:$4 sm:$0xff]  }
  0x19   : > { %1022 = vmatpush3.bf16.msra.mxu0 %v1156_v4  ;;  %1137 = vmatpush3.bf16.msra.mxu1 %v1156_v4  ;;  %v1184_v32 = vld [vmem:[%s1241_s21 + $0x60] sm:$0xff]  }
  0x1a   : > { %1023 = vmatprep.subr.bf16.mxu0 %v1193_v0  ;;  %1132 = vmatprep.subr.bf16.mxu1 %v1193_v0 }
  0x1d   : > { %1024 = vmatpush3.bf16.msra.mxu0 %v1157_v5  ;;  %1138 = vmatpush3.bf16.msra.mxu1 %v1157_v5 }
  0x1e   : > { %1025 = vmatprep.subr.bf16.mxu0 %v1193_v0  ;;  %1133 = vmatprep.subr.bf16.mxu1 %v1193_v0 }
  0x21   : > { %1026 = vmatpush3.bf16.msra.mxu0 %v1158_v6  ;;  %1139 = vmatpush3.bf16.msra.mxu1 %v1158_v6 }
  0x22   : > { %1027 = vmatprep.subr.bf16.mxu0 %v1193_v0  ;;  %1134 = vmatprep.subr.bf16.mxu1 %v1193_v0 }
  0x25   : > { %1028 = vmatpush3.bf16.msra.mxu0 %v1159_v7  ;;  %1140 = vmatpush3.bf16.msra.mxu1 %v1159_v7 }
  0x28   : > { %1030 = vmatmul.mubr.msk.bf16.vlgmr.msra.gmra.mxu0 %vm432_vm2, %v1160_v8  ;;  %1082 = vmatmul.mubr.msk.bf16.vlgmr.msra.gmra.mxu1 %vm432_vm2, %v1161_v9 }
  0x29   : > { %1033 = vmatprep.mubr.msk.bf16.mxu0 %vm1194_vm0, %v1193_v0  ;;  %1085 = vmatprep.mubr.msk.bf16.mxu1 %vm1194_vm0, %v1193_v0 }
  0x30   : > { %1034 = vmatmul.mubr.msk.bf16.gmra.mxu0 %vm432_vm2, %v1162_v10  ;;  %1086 = vmatmul.mubr.msk.bf16.gmra.mxu1 %vm432_vm2, %v1163_v11 }
  0x31   : > { %1037 = vmatprep.mubr.msk.bf16.mxu0 %vm1194_vm0, %v1193_v0  ;;  %1089 = vmatprep.mubr.msk.bf16.mxu1 %vm1194_vm0, %v1193_v0 }
  0x38   : > { %1038 = vmatmul.mubr.msk.bf16.gmra.mxu0 %vm432_vm2, %v1164_v12  ;;  %1090 = vmatmul.mubr.msk.bf16.gmra.mxu1 %vm432_vm2, %v1165_v13 }
  0x39   : > { %1041 = vmatprep.mubr.msk.bf16.mxu0 %vm1194_vm0, %v1193_v0  ;;  %1093 = vmatprep.mubr.msk.bf16.mxu1 %vm1194_vm0, %v1193_v0 }
  0x40   : > { %1042 = vmatmul.mubr.msk.bf16.gmra.mxu0 %vm432_vm2, %v1166_v14  ;;  %1094 = vmatmul.mubr.msk.bf16.gmra.mxu1 %vm432_vm2, %v1167_v15 }
  0x41   : > { %1045 = vmatprep.mubr.msk.bf16.mxu0 %vm1194_vm0, %v1193_v0  ;;  %1097 = vmatprep.mubr.msk.bf16.mxu1 %vm1194_vm0, %v1193_v0 }
  0x48   : > { %1046 = vmatmul.mubr.msk.bf16.gmra.mxu0 %vm432_vm2, %v1168_v16  ;;  %1098 = vmatmul.mubr.msk.bf16.gmra.mxu1 %vm432_vm2, %v1169_v17 }
  0x49   : > { %1049 = vmatprep.mubr.msk.bf16.mxu0 %vm1194_vm0, %v1193_v0  ;;  %1101 = vmatprep.mubr.msk.bf16.mxu1 %vm1194_vm0, %v1193_v0 }
  0x50   : > { %1050 = vmatmul.mubr.msk.bf16.gmra.mxu0 %vm432_vm2, %v1170_v18  ;;  %1102 = vmatmul.mubr.msk.bf16.gmra.mxu1 %vm432_vm2, %v1171_v19 }
  0x51   : > { %1053 = vmatprep.mubr.msk.bf16.mxu0 %vm1194_vm0, %v1193_v0  ;;  %1105 = vmatprep.mubr.msk.bf16.mxu1 %vm1194_vm0, %v1193_v0 }
  0x58   : > { %1054 = vmatmul.mubr.msk.bf16.gmra.mxu0 %vm432_vm2, %v1172_v20  ;;  %1106 = vmatmul.mubr.msk.bf16.gmra.mxu1 %vm432_vm2, %v1173_v21 }
  0x59   : > { %1057 = vmatprep.mubr.msk.bf16.mxu0 %vm1194_vm0, %v1193_v0  ;;  %1109 = vmatprep.mubr.msk.bf16.mxu1 %vm1194_vm0, %v1193_v0 }
  0x60   : > { %1058 = vmatmul.mubr.msk.bf16.gmra.mxu0 %vm432_vm2, %v1174_v22  ;;  %1110 = vmatmul.mubr.msk.bf16.gmra.mxu1 %vm432_vm2, %v1175_v23 }
  0x61   : > { %1061 = vmatprep.mubr.msk.bf16.mxu0 %vm1194_vm0, %v1193_v0  ;;  %1113 = vmatprep.mubr.msk.bf16.mxu1 %vm1194_vm0, %v1193_v0 }
  0x68   : > { %1062 = vmatmul.mubr.msk.bf16.gmra.mxu0 %vm432_vm2, %v1176_v24  ;;  %1114 = vmatmul.mubr.msk.bf16.gmra.mxu1 %vm432_vm2, %v1177_v25 }
  0x69   : > { %1065 = vmatprep.mubr.msk.bf16.mxu0 %vm1194_vm0, %v1193_v0  ;;  %1117 = vmatprep.mubr.msk.bf16.mxu1 %vm1194_vm0, %v1193_v0 }
  0x70   : > { %1066 = vmatmul.mubr.msk.bf16.gmra.mxu0 %vm432_vm2, %v1178_v26  ;;  %1118 = vmatmul.mubr.msk.bf16.gmra.mxu1 %vm432_vm2, %v1179_v27 }
  0x71   : > { %1069 = vmatprep.mubr.msk.bf16.mxu0 %vm1194_vm0, %v1193_v0  ;;  %1121 = vmatprep.mubr.msk.bf16.mxu1 %vm1194_vm0, %v1193_v0 }
  0x78   : > { %1070 = vmatmul.mubr.msk.bf16.gmra.mxu0 %vm432_vm2, %v1180_v28  ;;  %1122 = vmatmul.mubr.msk.bf16.gmra.mxu1 %vm432_vm2, %v1181_v29 }
  0x79   : > { %1073 = vmatprep.mubr.msk.bf16.mxu0 %vm1194_vm0, %v1193_v0  ;;  %1125 = vmatprep.mubr.msk.bf16.mxu1 %vm1194_vm0, %v1193_v0 }
  0x80   : > { %1074 = vmatmul.mubr.msk.bf16.gmra.mxu0 %vm432_vm2, %v1182_v30  ;;  %1126 = vmatmul.mubr.msk.bf16.gmra.mxu1 %vm432_vm2, %v1183_v31 }
  0x81   : > { %1077 = vmatprep.mubr.msk.bf16.mxu0 %vm1194_vm0, %v1193_v0 }
  0x88   : > { %1078 = vmatmul.mubr.msk.bf16.gmra.mxu0 %vm432_vm2, %v1184_v32 }
  0xe8   : > { %v546_v34 = vpop.f32.mrf.mxu0  ;;  %v650_v35 = vpop.f32.mrf.mxu1 }
  0xe9   : > { %v547_v36 = vadd.f32 %v1352_v33, %v546_v34  ;;  %v651_v37 = vadd.f32 %v1352_v33, %v650_v35 }
  0xea   : > { %v1031_v38 = vpop.f32.mrf.mxu0  ;;  %v1083_v39 = vpop.f32.mrf.mxu1 }
  0xeb   : > { %v744_v40 = vmax.f32 %v547_v36, 0.0  ;;  %v770_v41 = vmax.f32 %v651_v37, 0.0 }
  0xec   : > { %v549_v42 = vpop.f32.mrf.mxu0  ;;  %v653_v43 = vpop.f32.mrf.mxu1 }
  0xed   : > { %794 = vst.msk [vmem:[%s1359_s28] sm:$0xff] %vm793_vm3, %v744_v40  ;;  %v550_v44 = vadd.f32 %v1352_v33, %v549_v42  ;;  %820 = vst.msk [vmem:[%s1359_s28 + $0xd0] sm:$0xff] %vm793_vm3, %v770_v41  ;;  %v654_v45 = vadd.f32 %v1352_v33, %v653_v43 }
  0xee   : > { %v1032_v46 = vpop.f32.mrf.mxu0  ;;  %v1084_v47 = vpop.f32.mrf.mxu1 }
  0xef   : > { %v745_v48 = vmax.f32 %v550_v44, 0.0  ;;  %v771_v49 = vmax.f32 %v654_v45, 0.0 }
  0xf0   : > { %v554_v50 = vpop.f32.mrf.mxu0  ;;  %v658_v51 = vpop.f32.mrf.mxu1 }
  0xf1   : > { %795 = vst.msk [vmem:[%s1359_s28 + $0x8] sm:$0xff] %vm793_vm3, %v745_v48  ;;  %v555_v52 = vadd.f32 %v1352_v33, %v554_v50  ;;  %821 = vst.msk [vmem:[%s1359_s28 + $0xd8] sm:$0xff] %vm793_vm3, %v771_v49  ;;  %v659_v53 = vadd.f32 %v1352_v33, %v658_v51 }
  0xf2   : > { %v1035_v54 = vpop.f32.mrf.mxu0  ;;  %v1087_v55 = vpop.f32.mrf.mxu1 }
  0xf3   : > { %v746_v56 = vmax.f32 %v555_v52, 0.0  ;;  %v772_v57 = vmax.f32 %v659_v53, 0.0 }
  0xf4   : > { %v557_v58 = vpop.f32.mrf.mxu0  ;;  %v661_v59 = vpop.f32.mrf.mxu1 }
  0xf5   : > { %796 = vst.msk [vmem:[%s1359_s28 + $0x10] sm:$0xff] %vm793_vm3, %v746_v56  ;;  %v558_v60 = vadd.f32 %v1352_v33, %v557_v58  ;;  %822 = vst.msk [vmem:[%s1359_s28 + $0xe0] sm:$0xff] %vm793_vm3, %v772_v57  ;;  %v662_v61 = vadd.f32 %v1352_v33, %v661_v59 }
  0xf6   : > { %v1036_v62 = vpop.f32.mrf.mxu0  ;;  %v1088_v63 = vpop.f32.mrf.mxu1 }
  0xf7   : > { %v747_v0 = vmax.f32 %v558_v60, 0.0  ;;  %v773_v1 = vmax.f32 %v662_v61, 0.0 }
  0xf8   : > { %v562_v2 = vpop.f32.mrf.mxu0  ;;  %v666_v3 = vpop.f32.mrf.mxu1 }
  0xf9   : > { %797 = vst.msk [vmem:[%s1359_s28 + $0x18] sm:$0xff] %vm793_vm3, %v747_v0  ;;  %v563_v4 = vadd.f32 %v1352_v33, %v562_v2  ;;  %823 = vst.msk [vmem:[%s1359_s28 + $0xe8] sm:$0xff] %vm793_vm3, %v773_v1  ;;  %v667_v5 = vadd.f32 %v1352_v33, %v666_v3 }
  0xfa   : > { %v1039_v6 = vpop.f32.mrf.mxu0  ;;  %v1091_v7 = vpop.f32.mrf.mxu1 }
  0xfb   : > { %v748_v8 = vmax.f32 %v563_v4, 0.0  ;;  %v774_v9 = vmax.f32 %v667_v5, 0.0 }
  0xfc   : > { %v565_v10 = vpop.f32.mrf.mxu0  ;;  %v669_v11 = vpop.f32.mrf.mxu1 }
  0xfd   : > { %798 = vst.msk [vmem:[%s1359_s28 + $0x20] sm:$0xff] %vm793_vm3, %v748_v8  ;;  %v566_v12 = vadd.f32 %v1352_v33, %v565_v10  ;;  %824 = vst.msk [vmem:[%s1359_s28 + $0xf0] sm:$0xff] %vm793_vm3, %v774_v9  ;;  %v670_v13 = vadd.f32 %v1352_v33, %v669_v11 }
  0xfe   : > { %v1040_v14 = vpop.f32.mrf.mxu0  ;;  %v1092_v15 = vpop.f32.mrf.mxu1 }
  0xff   : > { %v749_v16 = vmax.f32 %v566_v12, 0.0  ;;  %v775_v17 = vmax.f32 %v670_v13, 0.0 }
 0x100   : > { %v570_v18 = vpop.f32.mrf.mxu0  ;;  %v674_v19 = vpop.f32.mrf.mxu1 }
 0x101   : > { %799 = vst.msk [vmem:[%s1359_s28 + $0x28] sm:$0xff] %vm793_vm3, %v749_v16  ;;  %v571_v20 = vadd.f32 %v1352_v33, %v570_v18  ;;  %825 = vst.msk [vmem:[%s1359_s28 + $0xf8] sm:$0xff] %vm793_vm3, %v775_v17  ;;  %v675_v21 = vadd.f32 %v1352_v33, %v674_v19 }
 0x102   : > { %v1043_v22 = vpop.f32.mrf.mxu0  ;;  %v1095_v23 = vpop.f32.mrf.mxu1 }
 0x103   : > { %v750_v24 = vmax.f32 %v571_v20, 0.0  ;;  %v776_v25 = vmax.f32 %v675_v21, 0.0 }
 0x104   : > { %v573_v26 = vpop.f32.mrf.mxu0  ;;  %v677_v27 = vpop.f32.mrf.mxu1 }
 0x105   : > { %800 = vst.msk [vmem:[%s1359_s28 + $0x30] sm:$0xff] %vm793_vm3, %v750_v24  ;;  %v574_v28 = vadd.f32 %v1352_v33, %v573_v26  ;;  %826 = vst.msk [vmem:[%s1359_s28 + $0x100] sm:$0xff] %vm793_vm3, %v776_v25  ;;  %v678_v29 = vadd.f32 %v1352_v33, %v677_v27 }
 0x106   : > { %v1044_v30 = vpop.f32.mrf.mxu0  ;;  %v1096_v31 = vpop.f32.mrf.mxu1 }
 0x107   : > { %v751_v32 = vmax.f32 %v574_v28, 0.0  ;;  %v777_v34 = vmax.f32 %v678_v29, 0.0 }
 0x108   : > { %v578_v35 = vpop.f32.mrf.mxu0  ;;  %v682_v36 = vpop.f32.mrf.mxu1 }
 0x109   : > { %801 = vst.msk [vmem:[%s1359_s28 + $0x38] sm:$0xff] %vm793_vm3, %v751_v32  ;;  %v579_v37 = vadd.f32 %v1352_v33, %v578_v35  ;;  %827 = vst.msk [vmem:[%s1359_s28 + $0x108] sm:$0xff] %vm793_vm3, %v777_v34  ;;  %v683_v38 = vadd.f32 %v1352_v33, %v682_v36 }
 0x10a   : > { %v1047_v39 = vpop.f32.mrf.mxu0  ;;  %v1099_v40 = vpop.f32.mrf.mxu1 }
 0x10b   : > { %v752_v41 = vmax.f32 %v579_v37, 0.0  ;;  %v778_v42 = vmax.f32 %v683_v38, 0.0 }
 0x10c   : > { %v581_v43 = vpop.f32.mrf.mxu0  ;;  %v685_v44 = vpop.f32.mrf.mxu1 }
 0x10d   : > { %802 = vst.msk [vmem:[%s1359_s28 + $0x40] sm:$0xff] %vm793_vm3, %v752_v41  ;;  %v582_v45 = vadd.f32 %v1352_v33, %v581_v43  ;;  %828 = vst.msk [vmem:[%s1359_s28 + $0x110] sm:$0xff] %vm793_vm3, %v778_v42  ;;  %v686_v46 = vadd.f32 %v1352_v33, %v685_v44 }
 0x10e   : > { %v1048_v47 = vpop.f32.mrf.mxu0  ;;  %v1100_v48 = vpop.f32.mrf.mxu1 }
 0x10f   : > { %v753_v49 = vmax.f32 %v582_v45, 0.0  ;;  %v779_v50 = vmax.f32 %v686_v46, 0.0 }
 0x110   : > { %v586_v51 = vpop.f32.mrf.mxu0  ;;  %v690_v52 = vpop.f32.mrf.mxu1 }
 0x111   : > { %803 = vst.msk [vmem:[%s1359_s28 + $0x48] sm:$0xff] %vm793_vm3, %v753_v49  ;;  %v587_v53 = vadd.f32 %v1352_v33, %v586_v51  ;;  %829 = vst.msk [vmem:[%s1359_s28 + $0x118] sm:$0xff] %vm793_vm3, %v779_v50  ;;  %v691_v54 = vadd.f32 %v1352_v33, %v690_v52 }
 0x112   : > { %v1051_v55 = vpop.f32.mrf.mxu0  ;;  %v1103_v56 = vpop.f32.mrf.mxu1 }
 0x113   : > { %v754_v57 = vmax.f32 %v587_v53, 0.0  ;;  %v780_v58 = vmax.f32 %v691_v54, 0.0 }
 0x114   : > { %v589_v59 = vpop.f32.mrf.mxu0  ;;  %v693_v60 = vpop.f32.mrf.mxu1 }
 0x115   : > { %804 = vst.msk [vmem:[%s1359_s28 + $0x50] sm:$0xff] %vm793_vm3, %v754_v57  ;;  %v590_v61 = vadd.f32 %v1352_v33, %v589_v59  ;;  %830 = vst.msk [vmem:[%s1359_s28 + $0x120] sm:$0xff] %vm793_vm3, %v780_v58  ;;  %v694_v62 = vadd.f32 %v1352_v33, %v693_v60 }
 0x116   : > { %v1052_v63 = vpop.f32.mrf.mxu0  ;;  %v1104_v0 = vpop.f32.mrf.mxu1 }
 0x117   : > { %v755_v1 = vmax.f32 %v590_v61, 0.0  ;;  %v781_v2 = vmax.f32 %v694_v62, 0.0 }
 0x118   : > { %v594_v3 = vpop.f32.mrf.mxu0  ;;  %v698_v4 = vpop.f32.mrf.mxu1 }
 0x119   : > { %805 = vst.msk [vmem:[%s1359_s28 + $0x58] sm:$0xff] %vm793_vm3, %v755_v1  ;;  %v595_v5 = vadd.f32 %v1352_v33, %v594_v3  ;;  %831 = vst.msk [vmem:[%s1359_s28 + $0x128] sm:$0xff] %vm793_vm3, %v781_v2  ;;  %v699_v6 = vadd.f32 %v1352_v33, %v698_v4 }
 0x11a   : > { %v1055_v7 = vpop.f32.mrf.mxu0  ;;  %v1107_v8 = vpop.f32.mrf.mxu1 }
 0x11b   : > { %v756_v9 = vmax.f32 %v595_v5, 0.0  ;;  %v782_v10 = vmax.f32 %v699_v6, 0.0 }
 0x11c   : > { %v597_v11 = vpop.f32.mrf.mxu0  ;;  %v701_v12 = vpop.f32.mrf.mxu1 }
 0x11d   : > { %806 = vst.msk [vmem:[%s1359_s28 + $0x60] sm:$0xff] %vm793_vm3, %v756_v9  ;;  %v598_v13 = vadd.f32 %v1352_v33, %v597_v11  ;;  %832 = vst.msk [vmem:[%s1359_s28 + $0x130] sm:$0xff] %vm793_vm3, %v782_v10  ;;  %v702_v14 = vadd.f32 %v1352_v33, %v701_v12 }
 0x11e   : > { %v1056_v15 = vpop.f32.mrf.mxu0  ;;  %v1108_v16 = vpop.f32.mrf.mxu1 }
 0x11f   : > { %v757_v17 = vmax.f32 %v598_v13, 0.0  ;;  %v783_v18 = vmax.f32 %v702_v14, 0.0 }
 0x120   : > { %v602_v19 = vpop.f32.mrf.mxu0  ;;  %v706_v20 = vpop.f32.mrf.mxu1 }
 0x121   : > { %807 = vst.msk [vmem:[%s1359_s28 + $0x68] sm:$0xff] %vm793_vm3, %v757_v17  ;;  %v603_v21 = vadd.f32 %v1352_v33, %v602_v19  ;;  %833 = vst.msk [vmem:[%s1359_s28 + $0x138] sm:$0xff] %vm793_vm3, %v783_v18  ;;  %v707_v22 = vadd.f32 %v1352_v33, %v706_v20 }
 0x122   : > { %v1059_v23 = vpop.f32.mrf.mxu0  ;;  %v1111_v24 = vpop.f32.mrf.mxu1 }
 0x123   : > { %v758_v25 = vmax.f32 %v603_v21, 0.0  ;;  %v784_v26 = vmax.f32 %v707_v22, 0.0 }
 0x124   : > { %v605_v27 = vpop.f32.mrf.mxu0  ;;  %v709_v28 = vpop.f32.mrf.mxu1 }
 0x125   : > { %808 = vst.msk [vmem:[%s1359_s28 + $0x70] sm:$0xff] %vm793_vm3, %v758_v25  ;;  %v606_v29 = vadd.f32 %v1352_v33, %v605_v27  ;;  %834 = vst.msk [vmem:[%s1359_s28 + $0x140] sm:$0xff] %vm793_vm3, %v784_v26  ;;  %v710_v30 = vadd.f32 %v1352_v33, %v709_v28 }
 0x126   : > { %v1060_v31 = vpop.f32.mrf.mxu0  ;;  %v1112_v32 = vpop.f32.mrf.mxu1 }
 0x127   : > { %v759_v34 = vmax.f32 %v606_v29, 0.0  ;;  %v785_v35 = vmax.f32 %v710_v30, 0.0 }
 0x128   : > { %v610_v36 = vpop.f32.mrf.mxu0  ;;  %v714_v37 = vpop.f32.mrf.mxu1 }
 0x129   : > { %809 = vst.msk [vmem:[%s1359_s28 + $0x78] sm:$0xff] %vm793_vm3, %v759_v34  ;;  %v611_v38 = vadd.f32 %v1352_v33, %v610_v36  ;;  %835 = vst.msk [vmem:[%s1359_s28 + $0x148] sm:$0xff] %vm793_vm3, %v785_v35  ;;  %v715_v39 = vadd.f32 %v1352_v33, %v714_v37 }
 0x12a   : > { %v1063_v40 = vpop.f32.mrf.mxu0  ;;  %v1115_v41 = vpop.f32.mrf.mxu1 }
 0x12b   : > { %v760_v42 = vmax.f32 %v611_v38, 0.0  ;;  %v786_v43 = vmax.f32 %v715_v39, 0.0 }
 0x12c   : > { %v613_v44 = vpop.f32.mrf.mxu0  ;;  %v717_v45 = vpop.f32.mrf.mxu1 }
 0x12d   : > { %810 = vst.msk [vmem:[%s1359_s28 + $0x80] sm:$0xff] %vm793_vm3, %v760_v42  ;;  %v614_v46 = vadd.f32 %v1352_v33, %v613_v44  ;;  %836 = vst.msk [vmem:[%s1359_s28 + $0x150] sm:$0xff] %vm793_vm3, %v786_v43  ;;  %v718_v47 = vadd.f32 %v1352_v33, %v717_v45 }
 0x12e   : > { %v1064_v48 = vpop.f32.mrf.mxu0  ;;  %v1116_v49 = vpop.f32.mrf.mxu1 }
 0x12f   : > { %v761_v50 = vmax.f32 %v614_v46, 0.0  ;;  %v787_v51 = vmax.f32 %v718_v47, 0.0 }
 0x130   : > { %v618_v52 = vpop.f32.mrf.mxu0  ;;  %v722_v53 = vpop.f32.mrf.mxu1 }
 0x131   : > { %811 = vst.msk [vmem:[%s1359_s28 + $0x88] sm:$0xff] %vm793_vm3, %v761_v50  ;;  %v619_v54 = vadd.f32 %v1352_v33, %v618_v52  ;;  %837 = vst.msk [vmem:[%s1359_s28 + $0x158] sm:$0xff] %vm793_vm3, %v787_v51  ;;  %v723_v55 = vadd.f32 %v1352_v33, %v722_v53 }
 0x132   : > { %v1067_v56 = vpop.f32.mrf.mxu0  ;;  %v1119_v57 = vpop.f32.mrf.mxu1 }
 0x133   : > { %v762_v58 = vmax.f32 %v619_v54, 0.0  ;;  %v788_v59 = vmax.f32 %v723_v55, 0.0 }
 0x134   : > { %v621_v60 = vpop.f32.mrf.mxu0  ;;  %v725_v61 = vpop.f32.mrf.mxu1 }
 0x135   : > { %812 = vst.msk [vmem:[%s1359_s28 + $0x90] sm:$0xff] %vm793_vm3, %v762_v58  ;;  %v622_v62 = vadd.f32 %v1352_v33, %v621_v60  ;;  %838 = vst.msk [vmem:[%s1359_s28 + $0x160] sm:$0xff] %vm793_vm3, %v788_v59  ;;  %v726_v63 = vadd.f32 %v1352_v33, %v725_v61 }
 0x136   : > { %v1068_v0 = vpop.f32.mrf.mxu0  ;;  %v1120_v1 = vpop.f32.mrf.mxu1 }
 0x137   : > { %v763_v2 = vmax.f32 %v622_v62, 0.0  ;;  %v789_v3 = vmax.f32 %v726_v63, 0.0 }
 0x138   : > { %v626_v4 = vpop.f32.mrf.mxu0  ;;  %v730_v5 = vpop.f32.mrf.mxu1 }
 0x139   : > { %813 = vst.msk [vmem:[%s1359_s28 + $0x98] sm:$0xff] %vm793_vm3, %v763_v2  ;;  %v627_v6 = vadd.f32 %v1352_v33, %v626_v4  ;;  %839 = vst.msk [vmem:[%s1359_s28 + $0x168] sm:$0xff] %vm793_vm3, %v789_v3  ;;  %v731_v7 = vadd.f32 %v1352_v33, %v730_v5 }
 0x13a   : > { %v1071_v8 = vpop.f32.mrf.mxu0  ;;  %v1123_v9 = vpop.f32.mrf.mxu1 }
 0x13b   : > { %v764_v10 = vmax.f32 %v627_v6, 0.0  ;;  %v790_v11 = vmax.f32 %v731_v7, 0.0 }
 0x13c   : > { %v629_v12 = vpop.f32.mrf.mxu0  ;;  %v733_v13 = vpop.f32.mrf.mxu1 }
 0x13d   : > { %814 = vst.msk [vmem:[%s1359_s28 + $0xa0] sm:$0xff] %vm793_vm3, %v764_v10  ;;  %v630_v14 = vadd.f32 %v1352_v33, %v629_v12  ;;  %840 = vst.msk [vmem:[%s1359_s28 + $0x170] sm:$0xff] %vm793_vm3, %v790_v11  ;;  %v734_v15 = vadd.f32 %v1352_v33, %v733_v13 }
 0x13e   : > { %v1072_v16 = vpop.f32.mrf.mxu0  ;;  %v1124_v17 = vpop.f32.mrf.mxu1 }
 0x13f   : > { %v765_v18 = vmax.f32 %v630_v14, 0.0  ;;  %v791_v19 = vmax.f32 %v734_v15, 0.0 }
 0x140   : > { %v634_v20 = vpop.f32.mrf.mxu0  ;;  %v738_v21 = vpop.f32.mrf.mxu1 }
 0x141   : > { %815 = vst.msk [vmem:[%s1359_s28 + $0xa8] sm:$0xff] %vm793_vm3, %v765_v18  ;;  %v635_v22 = vadd.f32 %v1352_v33, %v634_v20  ;;  %841 = vst.msk [vmem:[%s1359_s28 + $0x178] sm:$0xff] %vm793_vm3, %v791_v19  ;;  %v739_v23 = vadd.f32 %v1352_v33, %v738_v21 }
 0x142   : > { %v1075_v24 = vpop.f32.mrf.mxu0  ;;  %v1127_v25 = vpop.f32.mrf.mxu1 }
 0x143   : > { %v766_v26 = vmax.f32 %v635_v22, 0.0  ;;  %v792_v27 = vmax.f32 %v739_v23, 0.0 }
 0x144   : > { %v637_v28 = vpop.f32.mrf.mxu0  ;;  %v741_v29 = vpop.f32.mrf.mxu1 }
 0x145   : > { %816 = vst.msk [vmem:[%s1359_s28 + $0xb0] sm:$0xff] %vm793_vm3, %v766_v26  ;;  %v638_v30 = vadd.f32 %v1352_v33, %v637_v28  ;;  %842 = vst.msk [vmem:[%s1359_s28 + $0x180] sm:$0xff] %vm793_vm3, %v792_v27 }
 0x146   : > { %v1076_v31 = vpop.f32.mrf.mxu0  ;;  %v1128_v32 = vpop.f32.mrf.mxu1 }
 0x147   : > { %v767_v34 = vmax.f32 %v638_v30, 0.0 }
 0x148   : > { %v642_v35 = vpop.f32.mrf.mxu0 }
 0x149   : > { %817 = vst.msk [vmem:[%s1359_s28 + $0xb8] sm:$0xff] %vm793_vm3, %v767_v34  ;;  %v643_v36 = vadd.f32 %v1352_v33, %v642_v35 }
 0x14a   : > { %v1079_v37 = vpop.f32.mrf.mxu0 }
 0x14b   : > { %v768_v38 = vmax.f32 %v643_v36, 0.0 }
 0x14c   : > { %v645_v39 = vpop.f32.mrf.mxu0 }
 0x14d   : > { %818 = vst.msk [vmem:[%s1359_s28 + $0xc0] sm:$0xff] %vm793_vm3, %v768_v38  ;;  %v646_v40 = vadd.f32 %v1352_v33, %v645_v39 }
 0x14e   : > { %v1080_v41 = vpop.f32.mrf.mxu0 }
 0x14f   : > { %v769_v42 = vmax.f32 %v646_v40, 0.0 }
 0x151   : > { %819 = vst.msk [vmem:[%s1359_s28 + $0xc8] sm:$0xff] %vm793_vm3, %v769_v42 }
 0x152 PF: > { %s13_s12 = sadd.s32 1, %s1191_s12  }
 0x153   : > { %p10_p4 = scmp.ge.s32.totalorder %s13_s12, 4  }
 0x155   :  { %12 = sbr.rel (!%p10_p4) target bundleno = 1 (0x1), region = 68 }

// kernel: networks_forward.8
= control target key start
LH: loop header
LB: loop body
LE: loop exit
PB: predicated region body
PF: predicated region fallthrough
CT: control target
= control target key end

     0   :  { %s1055_s12 = smov 0   ;;  %s1195_s0 = inlined_call_operand.vmem [shape: bf16[2,98,320], index: 0, kind: input, shape index: {}]   ;;  %s1196_s1 = inlined_call_operand.vmem [shape: bf16[2,320,30], index: 1, kind: input, shape index: {}]   ;;  %s1197_s2 = inlined_call_operand.vmem [shape: f32[2,1,30], index: 2, kind: input, shape index: {}]   ;;  %s1198_s3 = inlined_call_operand.vmem [shape: f32[2,98,30], index: 3, kind: output, shape index: {}]  }
   0x1 LB: > { %s801_s13 = sadd.s32 4294967295, %s1031_s12   ;;  %p805_p0 = scmp.ge.s32.totalorder %s1031_s12, 1  ;;  %s1031_s12 = sphi %s1055_s12, %s13_s12  }
   0x2   : > { %p155_p1 = scmp.lt.s32.totalorder %s1031_s12, 3 }
   0x4   : > { %p156_p2 = pnand %p805_p0, %p155_p1 }
   0x5   : > { %p187_p3 = scmp.lt.s32.totalorder (!%p156_p2), %s801_s13, 1 }
   0x6   : > { %159 = sbr.rel (%p156_p2) target bundleno = 300 (0x12c), region = 32 }
   0xb   : > { %v1033_v0 = vmov 0.0   ;;  %vm1034_vm0 = vmmov 0   ;;  %s1200_s13 = smov (!%p187_p3, %s801_s13), 1  ;;  %vm499_vm1 = vcmask 523264   ;;  %vm710_vm2 = vcmask 244736  }
   0xc   : > { %929 = vmatprep.subr.bf16.mxu1 %v1033_v0  ;;  %937 = vmatprep.mubr.msk.bf16.mxu1 %vm1034_vm0, %v1033_v0  ;;  %s966_s14 = smul.u32 160, %s1200_s13  ;;  %s199_s24 = scalar_lea.vmem %s1197_s2, %s1200_s13  ;;  %vm723_vm3 = vcmask 238592  }
   0xd   : > { %s965_s18 = smul.u32 156, %s1200_s13  ;;  %v1146_v49 = vld [vmem:[%s199_s24] ss:$0 sm:$0xff] }
   0xe   : > { %s1072_s17 = scalar_lea.vmem %s1196_s1, %s966_s14  ;;  %s967_s25 = smul.u32 104, %s1200_s13 }
   0xf   : > { %v978_v1 = vld [vmem:[%s1072_s17 + $0x78] sm:$0xff]   ;;  %v980_v3 = vld [vmem:[%s1072_s17 + $0x70] sm:$0xff]   ;;  %v982_v5 = vld [vmem:[%s1072_s17 + $0x68] sm:$0xff]   ;;  %s1095_s21 = scalar_lea.vmem %s1195_s0, %s965_s18 }
  0x10   : > { %v979_v2 = vld [vmem:[%s1072_s17 + $0x38] sm:$0xff]   ;;  %860 = vmatprep.subr.bf16.mxu0 %v978_v1  ;;  %v981_v4 = vld [vmem:[%s1072_s17 + $0x30] sm:$0xff]   ;;  %v983_v6 = vld [vmem:[%s1072_s17 + $0x28] sm:$0xff]   ;;  %s1153_s28 = scalar_lea.vmem %s1198_s3, %s967_s25 }
  0x11   : > { %861 = vmatpush3.bf16.msra.mxu0 %v979_v2  ;;  %v984_v7 = vld [vmem:[%s1072_s17 + $0x60] sm:$0xff]   ;;  %v987_v8 = vld [vmem:[%s1072_s17 + $0x98] sm:$0xff]   ;;  %v990_v11 = vld [vmem:[%s1072_s17 + $0x90] sm:$0xff]  }
  0x12   : > { %862 = vmatprep.subr.bf16.mxu0 %v980_v3  ;;  %v985_v9 = vld [vmem:[%s1072_s17 + $0x20] sm:$0xff]   ;;  %v986_v10 = vld [vmem:[%s1072_s17 + $0x58] sm:$0xff]   ;;  %930 = vmatpush3.bf16.msra.mxu1 %v987_v8  ;;  %v993_v13 = vld [vmem:[%s1072_s17 + $0x88] sm:$0xff]  }
  0x13   : > { %931 = vmatprep.subr.bf16.mxu1 %v1033_v0  ;;  %v988_v12 = vld [vmem:[%s1072_s17 + $0x18] sm:$0xff]   ;;  %v989_v14 = vld [vmem:[%s1072_s17 + $0x50] sm:$0xff]   ;;  %v996_v16 = vld [vmem:[%s1072_s17 + $0x80] sm:$0xff]  }
  0x14   : > { %v991_v15 = vld [vmem:[%s1072_s17 + $0x10] sm:$0xff]   ;;  %v992_v17 = vld [vmem:[%s1072_s17 + $0x48] sm:$0xff]   ;;  %v995_v21 = vld [vmem:[%s1072_s17 + $0x40] sm:$0xff]  }
  0x15   : > { %863 = vmatpush3.bf16.msra.mxu0 %v981_v4  ;;  %v1000_v18 = vld [vmem:[%s1095_s21 + $0x4] ss:$12 sps:$4 sm:$0xff]   ;;  %v1001_v19 = vld [vmem:[%s1095_s21 + $0x8] ss:$12 sps:$4 sm:$0xff]   ;;  %v998_v23 = vld [vmem:[%s1095_s21] ss:$12 sps:$4 sm:$0xff]  }
  0x16   : > { %864 = vmatprep.subr.bf16.mxu0 %v982_v5  ;;  %932 = vmatpush3.bf16.msra.mxu1 %v990_v11  ;;  %v994_v20 = vld [vmem:[%s1072_s17 + $0x8] sm:$0xff]   ;;  %v997_v22 = vld [vmem:[%s1072_s17] sm:$0xff]   ;;  %v1009_v29 = vld [vmem:[%s1095_s21 + $0x30] ss:$12 sps:$4 sm:$0xff]  }
  0x17   : > { %933 = vmatprep.subr.bf16.mxu1 %v1033_v0  ;;  %553 = vmatprep.mubr.bf16.mxu0 %v1000_v18  ;;  %v1004_v24 = vld [vmem:[%s1095_s21 + $0x20] ss:$12 sps:$4 sm:$0xff]   ;;  %v1002_v25 = vld [vmem:[%s1095_s21 + $0x1c] ss:$12 sps:$4 sm:$0xff]   ;;  %v1005_v26 = vld [vmem:[%s1095_s21 + $0x18] ss:$12 sps:$4 sm:$0xff]  }
  0x18   : > { %v1008_v27 = vld [vmem:[%s1095_s21 + $0x38] ss:$12 sps:$4 sm:$0xff]   ;;  %v1006_v28 = vld [vmem:[%s1095_s21 + $0x34] ss:$12 sps:$4 sm:$0xff]   ;;  %v1012_v30 = vld [vmem:[%s1095_s21 + $0x50] ss:$12 sps:$4 sm:$0xff]  }
  0x19   : > { %865 = vmatpush3.bf16.msra.mxu0 %v983_v6  ;;  %v1010_v31 = vld [vmem:[%s1095_s21 + $0x4c] ss:$12 sps:$4 sm:$0xff]   ;;  %v1013_v32 = vld [vmem:[%s1095_s21 + $0x48] ss:$12 sps:$4 sm:$0xff]   ;;  %v1014_v34 = vld [vmem:[%s1095_s21 + $0x64] ss:$12 sps:$4 sm:$0xff]  }
  0x1a   : > { %866 = vmatprep.subr.bf16.mxu0 %v984_v7  ;;  %934 = vmatpush3.bf16.msra.mxu1 %v993_v13  ;;  %v1016_v33 = vld [vmem:[%s1095_s21 + $0x68] ss:$12 sps:$4 sm:$0xff]   ;;  %v1017_v35 = vld [vmem:[%s1095_s21 + $0x60] ss:$12 sps:$4 sm:$0xff]   ;;  %v1021_v39 = vld [vmem:[%s1095_s21 + $0x78] ss:$12 sps:$4 sm:$0xff]  }
  0x1b   : > { %935 = vmatprep.subr.bf16.mxu1 %v1033_v0  ;;  %v1020_v36 = vld [vmem:[%s1095_s21 + $0x80] ss:$12 sps:$4 sm:$0xff]   ;;  %v1018_v37 = vld [vmem:[%s1095_s21 + $0x7c] ss:$12 sps:$4 sm:$0xff]   ;;  %v230_v38 = vld [vmem:[%s1095_s21 + $0x90] sm:$0x11] }
  0x1c   : > { %v1023_v40 = vld [vmem:[%s1095_s21 + $0x98] ss:$0 sps:$4 sm:$0x11]   ;;  %v829_v41 = vcombine.high %v230_v38, %v230_v38  ;;  %v828_v42 = vcombine.low %v230_v38, %v230_v38 }
  0x1d   : > { %867 = vmatpush3.bf16.msra.mxu0 %v985_v9 }
  0x1e   : > { %868 = vmatprep.subr.bf16.mxu0 %v986_v10  ;;  %936 = vmatpush3.bf16.msra.mxu1 %v996_v16 }
  0x21   : > { %869 = vmatpush3.bf16.msra.mxu0 %v988_v12  ;;  %938 = vmatmul.mubr.msk.bf16.vlgmr.msra.gmra.mxu1 %vm499_vm1, %v1001_v19 }
  0x22   : > { %870 = vmatprep.subr.bf16.mxu0 %v989_v14  ;;  %941 = vmatprep.mubr.msk.bf16.mxu1 %vm1034_vm0, %v1033_v0 }
  0x25   : > { %871 = vmatpush3.bf16.msra.mxu0 %v991_v15 }
  0x26   : > { %872 = vmatprep.subr.bf16.mxu0 %v992_v17 }
  0x29   : > { %873 = vmatpush3.bf16.msra.mxu0 %v994_v20  ;;  %942 = vmatmul.mubr.msk.bf16.gmra.mxu1 %vm499_vm1, %v1004_v24 }
  0x2a   : > { %874 = vmatprep.subr.bf16.mxu0 %v995_v21  ;;  %945 = vmatprep.mubr.msk.bf16.mxu1 %vm1034_vm0, %v1033_v0 }
  0x2d   : > { %875 = vmatpush3.bf16.msra.mxu0 %v997_v22 }
  0x30   : > { %554 = vmatmul.mubr.bf16.vlgmr.msra.gmra.mxu0 %v998_v23 }
  0x31   : > { %561 = vmatprep.mubr.bf16.mxu0 %v1002_v25  ;;  %946 = vmatmul.mubr.msk.bf16.gmra.mxu1 %vm499_vm1, %v1008_v27 }
  0x32   : > { %949 = vmatprep.mubr.msk.bf16.mxu1 %vm1034_vm0, %v1033_v0 }
  0x38   : > { %562 = vmatmul.mubr.bf16.gmra.mxu0 %v1005_v26 }
  0x39   : > { %569 = vmatprep.mubr.bf16.mxu0 %v1006_v28  ;;  %950 = vmatmul.mubr.msk.bf16.gmra.mxu1 %vm499_vm1, %v1012_v30 }
  0x3a   : > { %953 = vmatprep.mubr.msk.bf16.mxu1 %vm1034_vm0, %v1033_v0 }
  0x40   : > { %570 = vmatmul.mubr.bf16.gmra.mxu0 %v1009_v29 }
  0x41   : > { %577 = vmatprep.mubr.bf16.mxu0 %v1010_v31  ;;  %954 = vmatmul.mubr.msk.bf16.gmra.mxu1 %vm499_vm1, %v1016_v33 }
  0x42   : > { %957 = vmatprep.mubr.msk.bf16.mxu1 %vm1034_vm0, %v1033_v0 }
  0x48   : > { %578 = vmatmul.mubr.bf16.gmra.mxu0 %v1013_v32 }
  0x49   : > { %585 = vmatprep.mubr.bf16.mxu0 %v1014_v34  ;;  %958 = vmatmul.mubr.msk.bf16.gmra.mxu1 %vm499_vm1, %v1020_v36 }
  0x4a   : > { %961 = vmatprep.mubr.msk.bf16.mxu1 %vm1034_vm0, %v1033_v0 }
  0x50   : > { %586 = vmatmul.mubr.bf16.gmra.mxu0 %v1017_v35 }
  0x51   : > { %593 = vmatprep.mubr.bf16.mxu0 %v1018_v37  ;;  %962 = vmatmul.mubr.msk.bf16.gmra.mxu1 %vm499_vm1, %v1023_v40 }
  0x58   : > { %594 = vmatmul.mubr.bf16.gmra.mxu0 %v1021_v39 }
  0x59   : > { %601 = vmatprep.mubr.bf16.mxu0 %v829_v41 }
  0x60   : > { %602 = vmatmul.mubr.bf16.gmra.mxu0 %v828_v42 }
  0xe1   : > { %v643_v43 = vpop.f32.mrf.mxu1 }
  0xe3   : > { %v939_v44 = vpop.f32.mrf.mxu1 }
  0xe5   : > { %v646_v45 = vpop.f32.mrf.mxu1 }
  0xe7   : > { %v940_v46 = vpop.f32.mrf.mxu1 }
  0xe9   : > { %v651_v48 = vpop.f32.mrf.mxu1 }
  0xeb   : > { %v943_v51 = vpop.f32.mrf.mxu1 }
  0xed   : > { %v654_v54 = vpop.f32.mrf.mxu1 }
  0xef   : > { %v944_v57 = vpop.f32.mrf.mxu1 }
  0xf0   : > { %v876_v47 = vpop.f32.mrf.mxu0 }
  0xf1   : > { %v659_v61 = vpop.f32.mrf.mxu1 }
  0xf2   : > { %v877_v50 = vpop.f32.mrf.mxu0 }
  0xf3   : > { %v878_v52 = vadd.f32 %v877_v50, %v876_v47  ;;  %v947_v1 = vpop.f32.mrf.mxu1 }
  0xf4   : > { %v879_v53 = vpop.f32.mrf.mxu0 }
  0xf5   : > { %v556_v55 = vadd.f32 %v878_v52, %v1146_v49  ;;  %v662_v5 = vpop.f32.mrf.mxu1 }
  0xf6   : > { %v880_v56 = vpop.f32.mrf.mxu0 }
  0xf7   : > { %v644_v58 = vadd.f32 %v643_v43, %v556_v55  ;;  %v881_v59 = vadd.f32 %v880_v56, %v879_v53  ;;  %v948_v9 = vpop.f32.mrf.mxu1 }
  0xf8   : > { %v882_v60 = vpop.f32.mrf.mxu0 }
  0xf9   : > { %v697_v62 = vmax.f32 %v644_v58, 0.0  ;;  %v559_v63 = vadd.f32 %v881_v59, %v1146_v49  ;;  %v667_v13 = vpop.f32.mrf.mxu1 }
  0xfa   : > { %v883_v0 = vpop.f32.mrf.mxu0 }
  0xfb   : > { %711 = vst.msk [vmem:[%s1153_s28] sm:$0xff] %vm710_vm2, %v697_v62  ;;  %v647_v2 = vadd.f32 %v646_v45, %v559_v63  ;;  %v884_v3 = vadd.f32 %v883_v0, %v882_v60  ;;  %v951_v17 = vpop.f32.mrf.mxu1 }
  0xfc   : > { %v885_v4 = vpop.f32.mrf.mxu0 }
  0xfd   : > { %v698_v6 = vmax.f32 %v647_v2, 0.0  ;;  %v564_v7 = vadd.f32 %v884_v3, %v1146_v49  ;;  %v670_v21 = vpop.f32.mrf.mxu1 }
  0xfe   : > { %v886_v8 = vpop.f32.mrf.mxu0 }
  0xff   : > { %712 = vst.msk [vmem:[%s1153_s28 + $0x8] sm:$0xff] %vm710_vm2, %v698_v6  ;;  %v652_v10 = vadd.f32 %v651_v48, %v564_v7  ;;  %v887_v11 = vadd.f32 %v886_v8, %v885_v4  ;;  %v952_v25 = vpop.f32.mrf.mxu1 }
 0x100   : > { %v888_v12 = vpop.f32.mrf.mxu0 }
 0x101   : > { %v699_v14 = vmax.f32 %v652_v10, 0.0  ;;  %v567_v15 = vadd.f32 %v887_v11, %v1146_v49  ;;  %v675_v29 = vpop.f32.mrf.mxu1 }
 0x102   : > { %v889_v16 = vpop.f32.mrf.mxu0 }
 0x103   : > { %713 = vst.msk [vmem:[%s1153_s28 + $0x10] sm:$0xff] %vm710_vm2, %v699_v14  ;;  %v655_v18 = vadd.f32 %v654_v54, %v567_v15  ;;  %v890_v19 = vadd.f32 %v889_v16, %v888_v12  ;;  %v955_v33 = vpop.f32.mrf.mxu1 }
 0x104   : > { %v891_v20 = vpop.f32.mrf.mxu0 }
 0x105   : > { %v700_v22 = vmax.f32 %v655_v18, 0.0  ;;  %v572_v23 = vadd.f32 %v890_v19, %v1146_v49  ;;  %v678_v37 = vpop.f32.mrf.mxu1 }
 0x106   : > { %v892_v24 = vpop.f32.mrf.mxu0 }
 0x107   : > { %714 = vst.msk [vmem:[%s1153_s28 + $0x18] sm:$0xff] %vm710_vm2, %v700_v22  ;;  %v660_v26 = vadd.f32 %v659_v61, %v572_v23  ;;  %v893_v27 = vadd.f32 %v892_v24, %v891_v20  ;;  %v956_v41 = vpop.f32.mrf.mxu1 }
 0x108   : > { %v894_v28 = vpop.f32.mrf.mxu0 }
 0x109   : > { %v701_v30 = vmax.f32 %v660_v26, 0.0  ;;  %v575_v31 = vadd.f32 %v893_v27, %v1146_v49  ;;  %v683_v45 = vpop.f32.mrf.mxu1 }
 0x10a   : > { %v895_v32 = vpop.f32.mrf.mxu0 }
 0x10b   : > { %715 = vst.msk [vmem:[%s1153_s28 + $0x20] sm:$0xff] %vm710_vm2, %v701_v30  ;;  %v663_v34 = vadd.f32 %v662_v5, %v575_v31  ;;  %v896_v35 = vadd.f32 %v895_v32, %v894_v28  ;;  %v959_v50 = vpop.f32.mrf.mxu1 }
 0x10c   : > { %v897_v36 = vpop.f32.mrf.mxu0 }
 0x10d   : > { %v702_v38 = vmax.f32 %v663_v34, 0.0  ;;  %v580_v39 = vadd.f32 %v896_v35, %v1146_v49  ;;  %v686_v54 = vpop.f32.mrf.mxu1 }
 0x10e   : > { %v898_v40 = vpop.f32.mrf.mxu0 }
 0x10f   : > { %716 = vst.msk [vmem:[%s1153_s28 + $0x28] sm:$0xff] %vm710_vm2, %v702_v38  ;;  %v668_v42 = vadd.f32 %v667_v13, %v580_v39  ;;  %v899_v43 = vadd.f32 %v898_v40, %v897_v36  ;;  %v960_v58 = vpop.f32.mrf.mxu1 }
 0x110   : > { %v900_v44 = vpop.f32.mrf.mxu0 }
 0x111   : > { %v703_v46 = vmax.f32 %v668_v42, 0.0  ;;  %v583_v47 = vadd.f32 %v899_v43, %v1146_v49  ;;  %v691_v62 = vpop.f32.mrf.mxu1 }
 0x112   : > { %v901_v48 = vpop.f32.mrf.mxu0 }
 0x113   : > { %717 = vst.msk [vmem:[%s1153_s28 + $0x30] sm:$0xff] %vm710_vm2, %v703_v46  ;;  %v671_v51 = vadd.f32 %v670_v21, %v583_v47  ;;  %v902_v52 = vadd.f32 %v901_v48, %v900_v44  ;;  %v963_v2 = vpop.f32.mrf.mxu1 }
 0x114   : > { %v903_v53 = vpop.f32.mrf.mxu0 }
 0x115   : > { %v704_v55 = vmax.f32 %v671_v51, 0.0  ;;  %v588_v56 = vadd.f32 %v902_v52, %v1146_v49  ;;  %v694_v6 = vpop.f32.mrf.mxu1 }
 0x116   : > { %v904_v57 = vpop.f32.mrf.mxu0 }
 0x117   : > { %718 = vst.msk [vmem:[%s1153_s28 + $0x38] sm:$0xff] %vm710_vm2, %v704_v55  ;;  %v676_v59 = vadd.f32 %v675_v29, %v588_v56  ;;  %v905_v60 = vadd.f32 %v904_v57, %v903_v53  ;;  %v964_v10 = vpop.f32.mrf.mxu1 }
 0x118   : > { %v906_v61 = vpop.f32.mrf.mxu0 }
 0x119   : > { %v705_v63 = vmax.f32 %v676_v59, 0.0  ;;  %v591_v0 = vadd.f32 %v905_v60, %v1146_v49 }
 0x11a   : > { %v907_v1 = vpop.f32.mrf.mxu0 }
 0x11b   : > { %719 = vst.msk [vmem:[%s1153_s28 + $0x40] sm:$0xff] %vm710_vm2, %v705_v63  ;;  %v679_v3 = vadd.f32 %v678_v37, %v591_v0  ;;  %v908_v4 = vadd.f32 %v907_v1, %v906_v61 }
 0x11c   : > { %v909_v5 = vpop.f32.mrf.mxu0 }
 0x11d   : > { %v706_v7 = vmax.f32 %v679_v3, 0.0  ;;  %v596_v8 = vadd.f32 %v908_v4, %v1146_v49 }
 0x11e   : > { %v910_v9 = vpop.f32.mrf.mxu0 }
 0x11f   : > { %720 = vst.msk [vmem:[%s1153_s28 + $0x48] sm:$0xff] %vm710_vm2, %v706_v7  ;;  %v684_v11 = vadd.f32 %v683_v45, %v596_v8  ;;  %v911_v12 = vadd.f32 %v910_v9, %v909_v5 }
 0x120   : > { %v912_v13 = vpop.f32.mrf.mxu0 }
 0x121   : > { %v707_v14 = vmax.f32 %v684_v11, 0.0  ;;  %v599_v15 = vadd.f32 %v911_v12, %v1146_v49 }
 0x122   : > { %v913_v16 = vpop.f32.mrf.mxu0 }
 0x123   : > { %721 = vst.msk [vmem:[%s1153_s28 + $0x50] sm:$0xff] %vm710_vm2, %v707_v14  ;;  %v687_v17 = vadd.f32 %v686_v54, %v599_v15  ;;  %v914_v18 = vadd.f32 %v913_v16, %v912_v13 }
 0x124   : > { %v915_v19 = vpop.f32.mrf.mxu0 }
 0x125   : > { %v708_v20 = vmax.f32 %v687_v17, 0.0  ;;  %v604_v21 = vadd.f32 %v914_v18, %v1146_v49 }
 0x126   : > { %v916_v22 = vpop.f32.mrf.mxu0 }
 0x127   : > { %722 = vst.msk [vmem:[%s1153_s28 + $0x58] sm:$0xff] %vm710_vm2, %v708_v20  ;;  %v692_v23 = vadd.f32 %v691_v62, %v604_v21 }
 0x129   : > { %v709_v24 = vmax.f32 %v692_v23, 0.0 }
 0x12b   : > { %724 = vst.msk [vmem:[%s1153_s28 + $0x60] sm:$0x3] %vm723_vm3, %v709_v24 }
 0x12c PF: > { %s13_s12 = sadd.s32 1, %s1031_s12  }
 0x12d   : > { %p10_p4 = scmp.ge.s32.totalorder %s13_s12, 4  }
 0x12f   :  { %12 = sbr.rel (!%p10_p4) target bundleno = 1 (0x1), region = 68 }

// kernel: networks_forward.9
= control target key start
LH: loop header
LB: loop body
LE: loop exit
PB: predicated region body
PF: predicated region fallthrough
CT: control target
= control target key end

     0   :  { %s867_s12 = smov 0   ;;  %s869_s13 = smov 0   ;;  %s1031_s0 = inlined_call_operand.vmem [shape: bf16[2,4,98,120], index: 0, kind: input, shape index: {}]   ;;  %s1032_s1 = inlined_call_operand.vmem [shape: bf16[2,4,120,20], index: 1, kind: input, shape index: {}]   ;;  %s1033_s2 = inlined_call_operand.vmem [shape: f32[2,1,20], index: 2, kind: input, shape index: {}]   ;;  %s1034_s3 = inlined_call_operand.vmem [shape: f32[2,4,98,20], index: 3, kind: output, shape index: {}]  }
   0x1   :  { %s871_s14 = smov 0   ;;  %s873_s15 = smov 0  }
   0x2   :  { %s875_s16 = smov 0  }
   0x3 LB: > { %s22_s17 = sadd.s32 1, %s835_s14  ;;  %s25_s18 = sadd.s32 1, %s839_s15  ;;  %s843_s16 = sphi %s875_s16, %s13_s16   ;;  %s839_s15 = sphi %s873_s15, %s1038_s15   ;;  %s835_s14 = sphi %s871_s14, %s1037_s14   ;;  %s831_s13 = sphi %s869_s13, %s1036_s13   ;;  %s827_s12 = sphi %s867_s12, %s1035_s12  }
   0x4   : > { %p23_p0 = scmp.ge.s32.totalorder %s22_s17, 4  ;;  %p640_p1 = scmp.ge.s32.totalorder %s843_s16, 1 }
   0x5   : > { %p181_p2 = scmp.lt.s32.totalorder %s843_s16, 9 }
   0x6   : > { %s1040_s17 = smov (%p23_p0, %s22_s17), 0  ;;  %s1042_s18 = smov (!%p23_p0, %s25_s18), %s839_s15 }
   0x7   : > { %p182_p3 = pnand %p640_p1, %p181_p2  ;;  %p27_p4 = scmp.ge.s32.totalorder %s1042_s18, 2 }
   0x8   : > { %p225_p5 = scmp.lt.s32.totalorder (!%p182_p3), %s831_s13, 1  ;;  %p227_p6 = scmp.lt.s32.totalorder (!%p182_p3), %s827_s12, 3 }
   0x9   : > { %s1044_s18 = smov (%p27_p4, %s1042_s18), 0  ;;  %185 = sbr.rel (%p182_p3) target bundleno = 280 (0x118), region = 32 }
   0xe   : > { %v845_v0 = vmov 0.0   ;;  %s1046_s13 = smov (!%p225_p5, %s831_s13), 1  ;;  %vm846_vm0 = vmmov 0   ;;  %s1048_s12 = smov (!%p227_p6, %s827_s12), 3  ;;  %vm391_vm1 = vcmask 1043456   ;;  %vm369_vm2 = vcmask 982016  }
   0xf   : > { %684 = vmatprep.subr.bf16.mxu0 %v845_v0  ;;  %728 = vmatprep.subr.bf16.mxu1 %v845_v0  ;;  %s747_s19 = smul.u32 60, %s1046_s13  ;;  %s245_s8 = scalar_lea.vmem %s1033_s2, %s1046_s13  ;;  %vm496_vm3 = vcmask 162816   ;;  %vm509_vm4 = vcmask 156672  }
  0x10   : > { %700 = vmatprep.mubr.msk.bf16.mxu0 %vm846_vm0, %v845_v0  ;;  %716 = vmatprep.mubr.msk.bf16.mxu1 %vm846_vm0, %v845_v0  ;;  %s746_s20 = smul.u32 15, %s1048_s12  ;;  %v970_v17 = vld [vmem:[%s245_s8] ss:$0 sm:$0xff] }
  0x11   : > { %s744_s21 = smul.u32 13, %s1048_s12 }
  0x12   : > { %s240_s22 = sadd.s32 %s747_s19, %s746_s20  ;;  %s745_s23 = smul.u32 52, %s1046_s13 }
  0x13   : > { %s642_s24 = sshll.u32 %s240_s22, 2 }
  0x14   : > { %s910_s27 = scalar_lea.vmem %s1032_s1, %s642_s24  ;;  %s913_s28 = sadd.s32 %s745_s23, %s744_s21 }
  0x15   : > { %v790_v1 = vld [vmem:[%s910_s27 + $0x38] ss:$0 sps:$4 sm:$0xff]   ;;  %v791_v3 = vld [vmem:[%s910_s27 + $0x30] sm:$0xff]   ;;  %s641_s29 = sshll.u32 %s913_s28, 2  ;;  %v792_v4 = vld [vmem:[%s910_s27 + $0x28] sm:$0xff]   ;;  %s643_s9 = sshll.u32 %s913_s28, 3 }
  0x16   : > { %v393_v2 = vsel %vm391_vm1, %v790_v1, 0  ;;  %s922_s5 = scalar_lea.vmem %s1031_s0, %s641_s29  ;;  %v793_v5 = vld [vmem:[%s910_s27 + $0x20] sm:$0xff]   ;;  %v794_v6 = vld [vmem:[%s910_s27 + $0x18] sm:$0xff]   ;;  %v795_v7 = vld [vmem:[%s910_s27 + $0x10] sm:$0xff]   ;;  %s978_s12 = scalar_lea.vmem %s1034_s3, %s643_s9 }
  0x17   : > { %685 = vmatpush3.bf16.msra.mxu0 %v393_v2  ;;  %736 = vmatpush3.bf16.msra.mxu1 %v393_v2  ;;  %v796_v8 = vld [vmem:[%s910_s27 + $0x8] sm:$0xff]   ;;  %v797_v9 = vld [vmem:[%s910_s27] sm:$0xff]   ;;  %v802_v14 = vld [vmem:[%s922_s5 + $0x10] sm:$0xff]  }
  0x18   : > { %686 = vmatprep.subr.bf16.mxu0 %v845_v0  ;;  %729 = vmatprep.subr.bf16.mxu1 %v845_v0  ;;  %v798_v10 = vld [vmem:[%s922_s5] sm:$0xff]   ;;  %v800_v12 = vld [vmem:[%s922_s5 + $0x8] sm:$0xff]   ;;  %v803_v15 = vld [vmem:[%s922_s5 + $0x30] ss:$0 sps:$4 sm:$0x11]  }
  0x19   : > { %v799_v11 = vld [vmem:[%s922_s5 + $0x20] sm:$0xff]   ;;  %v801_v13 = vld [vmem:[%s922_s5 + $0x28] sm:$0xff]   ;;  %v804_v16 = vld [vmem:[%s922_s5 + $0x18] sm:$0xff]  }
  0x1b   : > { %687 = vmatpush3.bf16.msra.mxu0 %v791_v3  ;;  %737 = vmatpush3.bf16.msra.mxu1 %v791_v3 }
  0x1c   : > { %688 = vmatprep.subr.bf16.mxu0 %v845_v0  ;;  %730 = vmatprep.subr.bf16.mxu1 %v845_v0 }
  0x1f   : > { %689 = vmatpush3.bf16.msra.mxu0 %v792_v4  ;;  %738 = vmatpush3.bf16.msra.mxu1 %v792_v4 }
  0x20   : > { %690 = vmatprep.subr.bf16.mxu0 %v845_v0  ;;  %731 = vmatprep.subr.bf16.mxu1 %v845_v0 }
  0x23   : > { %691 = vmatpush3.bf16.msra.mxu0 %v793_v5  ;;  %739 = vmatpush3.bf16.msra.mxu1 %v793_v5 }
  0x24   : > { %692 = vmatprep.subr.bf16.mxu0 %v845_v0  ;;  %732 = vmatprep.subr.bf16.mxu1 %v845_v0 }
  0x27   : > { %693 = vmatpush3.bf16.msra.mxu0 %v794_v6  ;;  %740 = vmatpush3.bf16.msra.mxu1 %v794_v6 }
  0x28   : > { %694 = vmatprep.subr.bf16.mxu0 %v845_v0  ;;  %733 = vmatprep.subr.bf16.mxu1 %v845_v0 }
  0x2b   : > { %695 = vmatpush3.bf16.msra.mxu0 %v795_v7  ;;  %741 = vmatpush3.bf16.msra.mxu1 %v795_v7 }
  0x2c   : > { %696 = vmatprep.subr.bf16.mxu0 %v845_v0  ;;  %734 = vmatprep.subr.bf16.mxu1 %v845_v0 }
  0x2f   : > { %697 = vmatpush3.bf16.msra.mxu0 %v796_v8  ;;  %742 = vmatpush3.bf16.msra.mxu1 %v796_v8 }
  0x30   : > { %698 = vmatprep.subr.bf16.mxu0 %v845_v0  ;;  %735 = vmatprep.subr.bf16.mxu1 %v845_v0 }
  0x33   : > { %699 = vmatpush3.bf16.msra.mxu0 %v797_v9  ;;  %743 = vmatpush3.bf16.msra.mxu1 %v797_v9 }
  0x36   : > { %701 = vmatmul.mubr.msk.bf16.vlgmr.msra.gmra.mxu0 %vm369_vm2, %v798_v10  ;;  %717 = vmatmul.mubr.msk.bf16.vlgmr.msra.gmra.mxu1 %vm369_vm2, %v799_v11 }
  0x37   : > { %704 = vmatprep.mubr.msk.bf16.mxu0 %vm846_vm0, %v845_v0  ;;  %720 = vmatprep.mubr.msk.bf16.mxu1 %vm846_vm0, %v845_v0 }
  0x3e   : > { %705 = vmatmul.mubr.msk.bf16.gmra.mxu0 %vm369_vm2, %v800_v12  ;;  %721 = vmatmul.mubr.msk.bf16.gmra.mxu1 %vm369_vm2, %v801_v13 }
  0x3f   : > { %708 = vmatprep.mubr.msk.bf16.mxu0 %vm846_vm0, %v845_v0  ;;  %724 = vmatprep.mubr.msk.bf16.mxu1 %vm846_vm0, %v845_v0 }
  0x46   : > { %709 = vmatmul.mubr.msk.bf16.gmra.mxu0 %vm369_vm2, %v802_v14  ;;  %725 = vmatmul.mubr.msk.bf16.gmra.mxu1 %vm369_vm2, %v803_v15 }
  0x47   : > { %712 = vmatprep.mubr.msk.bf16.mxu0 %vm846_vm0, %v845_v0 }
  0x4e   : > { %713 = vmatmul.mubr.msk.bf16.gmra.mxu0 %vm369_vm2, %v804_v16 }
  0xf6   : > { %v429_v18 = vpop.f32.mrf.mxu0  ;;  %v461_v19 = vpop.f32.mrf.mxu1 }
  0xf7   : > { %v430_v20 = vadd.f32 %v970_v17, %v429_v18  ;;  %v462_v21 = vadd.f32 %v970_v17, %v461_v19 }
  0xf8   : > { %v702_v22 = vpop.f32.mrf.mxu0  ;;  %v718_v23 = vpop.f32.mrf.mxu1 }
  0xf9   : > { %v483_v24 = vmax.f32 %v430_v20, 0.0  ;;  %v491_v25 = vmax.f32 %v462_v21, 0.0 }
  0xfa   : > { %v432_v26 = vpop.f32.mrf.mxu0  ;;  %v464_v27 = vpop.f32.mrf.mxu1 }
  0xfb   : > { %497 = vst.msk [vmem:[%s978_s12] sm:$0xff] %vm496_vm3, %v483_v24  ;;  %v433_v28 = vadd.f32 %v970_v17, %v432_v26  ;;  %505 = vst.msk [vmem:[%s978_s12 + $0x40] sm:$0xff] %vm496_vm3, %v491_v25  ;;  %v465_v29 = vadd.f32 %v970_v17, %v464_v27 }
  0xfc   : > { %v703_v30 = vpop.f32.mrf.mxu0  ;;  %v719_v31 = vpop.f32.mrf.mxu1 }
  0xfd   : > { %v484_v32 = vmax.f32 %v433_v28, 0.0  ;;  %v492_v33 = vmax.f32 %v465_v29, 0.0 }
  0xfe   : > { %v437_v34 = vpop.f32.mrf.mxu0  ;;  %v469_v35 = vpop.f32.mrf.mxu1 }
  0xff   : > { %498 = vst.msk [vmem:[%s978_s12 + $0x8] sm:$0xff] %vm496_vm3, %v484_v32  ;;  %v438_v36 = vadd.f32 %v970_v17, %v437_v34  ;;  %506 = vst.msk [vmem:[%s978_s12 + $0x48] sm:$0xff] %vm496_vm3, %v492_v33  ;;  %v470_v37 = vadd.f32 %v970_v17, %v469_v35 }
 0x100   : > { %v706_v38 = vpop.f32.mrf.mxu0  ;;  %v722_v39 = vpop.f32.mrf.mxu1 }
 0x101   : > { %v485_v40 = vmax.f32 %v438_v36, 0.0  ;;  %v493_v41 = vmax.f32 %v470_v37, 0.0 }
 0x102   : > { %v440_v42 = vpop.f32.mrf.mxu0  ;;  %v472_v43 = vpop.f32.mrf.mxu1 }
 0x103   : > { %499 = vst.msk [vmem:[%s978_s12 + $0x10] sm:$0xff] %vm496_vm3, %v485_v40  ;;  %v441_v44 = vadd.f32 %v970_v17, %v440_v42  ;;  %507 = vst.msk [vmem:[%s978_s12 + $0x50] sm:$0xff] %vm496_vm3, %v493_v41  ;;  %v473_v45 = vadd.f32 %v970_v17, %v472_v43 }
 0x104   : > { %v707_v46 = vpop.f32.mrf.mxu0  ;;  %v723_v47 = vpop.f32.mrf.mxu1 }
 0x105   : > { %v486_v48 = vmax.f32 %v441_v44, 0.0  ;;  %v494_v49 = vmax.f32 %v473_v45, 0.0 }
 0x106   : > { %v445_v50 = vpop.f32.mrf.mxu0  ;;  %v477_v51 = vpop.f32.mrf.mxu1 }
 0x107   : > { %500 = vst.msk [vmem:[%s978_s12 + $0x18] sm:$0xff] %vm496_vm3, %v486_v48  ;;  %v446_v52 = vadd.f32 %v970_v17, %v445_v50  ;;  %508 = vst.msk [vmem:[%s978_s12 + $0x58] sm:$0xff] %vm496_vm3, %v494_v49  ;;  %v478_v53 = vadd.f32 %v970_v17, %v477_v51 }
 0x108   : > { %v710_v54 = vpop.f32.mrf.mxu0  ;;  %v726_v55 = vpop.f32.mrf.mxu1 }
 0x109   : > { %v487_v56 = vmax.f32 %v446_v52, 0.0  ;;  %v495_v57 = vmax.f32 %v478_v53, 0.0 }
 0x10a   : > { %v448_v58 = vpop.f32.mrf.mxu0  ;;  %v480_v59 = vpop.f32.mrf.mxu1 }
 0x10b   : > { %501 = vst.msk [vmem:[%s978_s12 + $0x20] sm:$0xff] %vm496_vm3, %v487_v56  ;;  %v449_v60 = vadd.f32 %v970_v17, %v448_v58 }
 0x10c   : > { %510 = vst.msk [vmem:[%s978_s12 + $0x60] sm:$0x3] %vm509_vm4, %v495_v57  ;;  %v711_v61 = vpop.f32.mrf.mxu0  ;;  %v727_v62 = vpop.f32.mrf.mxu1 }
 0x10d   : > { %v488_v63 = vmax.f32 %v449_v60, 0.0 }
 0x10e   : > { %v453_v0 = vpop.f32.mrf.mxu0 }
 0x10f   : > { %502 = vst.msk [vmem:[%s978_s12 + $0x28] sm:$0xff] %vm496_vm3, %v488_v63  ;;  %v454_v1 = vadd.f32 %v970_v17, %v453_v0 }
 0x110   : > { %v714_v2 = vpop.f32.mrf.mxu0 }
 0x111   : > { %v489_v3 = vmax.f32 %v454_v1, 0.0 }
 0x112   : > { %v456_v4 = vpop.f32.mrf.mxu0 }
 0x113   : > { %503 = vst.msk [vmem:[%s978_s12 + $0x30] sm:$0xff] %vm496_vm3, %v489_v3  ;;  %v457_v5 = vadd.f32 %v970_v17, %v456_v4 }
 0x114   : > { %v715_v6 = vpop.f32.mrf.mxu0 }
 0x115   : > { %v490_v7 = vmax.f32 %v457_v5, 0.0 }
 0x117   : > { %504 = vst.msk [vmem:[%s978_s12 + $0x38] sm:$0xff] %vm496_vm3, %v490_v7 }
 0x118 PF: > { %s13_s16 = sadd.s32 1, %s843_s16   ;;  %s1035_s12 = smov %s835_s14 }
 0x119   : > { %p10_p7 = scmp.ge.s32.totalorder %s13_s16, 10   ;;  %s1036_s13 = smov %s839_s15 }
 0x11a   : > { %s1037_s14 = smov %s1040_s17  ;;  %s1038_s15 = smov %s1044_s18 }
 0x11b   :  { %12 = sbr.rel (!%p10_p7) target bundleno = 3 (0x3), region = 68 }

// kernel: networks_forward.10
= control target key start
LH: loop header
LB: loop body
LE: loop exit
PB: predicated region body
PF: predicated region fallthrough
CT: control target
= control target key end

     0   :  { %s1311_s12 = smov 0   ;;  %s1608_s0 = inlined_call_operand.vmem [shape: bf16[2,392,180], index: 0, kind: input, shape index: {}]   ;;  %s1609_s1 = inlined_call_operand.vmem [shape: bf16[2,180,10], index: 1, kind: input, shape index: {}]   ;;  %s1610_s2 = inlined_call_operand.vmem [shape: f32[2,1,10], index: 2, kind: input, shape index: {}]   ;;  %s1611_s3 = inlined_call_operand.vmem [shape: f32[2,392,10], index: 3, kind: output, shape index: {}]  }
   0x1 LB: > { %s1063_s13 = sadd.s32 4294967295, %s1288_s12   ;;  %p1067_p0 = scmp.ge.s32.totalorder %s1288_s12, 1  ;;  %s1288_s12 = sphi %s1311_s12, %s13_s12  }
   0x2   : > { %p155_p1 = scmp.lt.s32.totalorder %s1288_s12, 3 }
   0x4   : > { %p156_p2 = pnand %p1067_p0, %p155_p1 }
   0x5   : > { %p187_p3 = scmp.lt.s32.totalorder (!%p156_p2), %s1063_s13, 1 }
   0x6   : > { %159 = sbr.rel (%p156_p2) target bundleno = 362 (0x16a), region = 32 }
   0xb   : > { %v1290_v0 = vmov 0   ;;  %s1613_s13 = smov (!%p187_p3, %s1063_s13), 1  ;;  %vm576_vm0 = vcmask 424960   ;;  %vm652_vm1 = vcmask 1041408   ;;  %vm937_vm2 = vcmask 80896  }
   0xc   : > { %656 = vmatprep.subr.bf16.mxu0 %v1290_v0  ;;  %1161 = vmatprep.subr.bf16.mxu1 %v1290_v0  ;;  %s1185_s14 = smul.u32 392, %s1613_s13  ;;  %s199_s24 = scalar_lea.vmem %s1610_s2, %s1613_s13 }
   0xd   : > { %s1186_s15 = smul.u32 92, %s1613_s13 }
   0xe   : > { %s1330_s18 = scalar_lea.vmem %s1608_s0, %s1185_s14  ;;  %s1458_s27 = scalar_lea.vmem %s1611_s3, %s1185_s14 }
   0xf   : > { %s1335_s21 = scalar_lea.vmem %s1609_s1, %s1186_s15  ;;  %v1210_v5 = vld [vmem:[%s1330_s18 + $0x4] ss:$8 sps:$4 sm:$0xff]   ;;  %v1213_v6 = vld [vmem:[%s1330_s18 + $0xd4] ss:$8 sps:$4 sm:$0xff]   ;;  %v1208_v16 = vld [vmem:[%s1330_s18] ss:$8 sps:$4 sm:$0xff]  }
  0x10   : > { %v1196_v1 = vld [vmem:[%s1335_s21 + $0x38] sm:$0xff]   ;;  %v1197_v2 = vld [vmem:[%s1335_s21 + $0x30] sm:$0xff]   ;;  %v1198_v3 = vld [vmem:[%s1335_s21 + $0x28] sm:$0xff]   ;;  %1134 = vmatprep.mubr.msk.bf16.mxu0 %vm576_vm0, %v1210_v5  ;;  %1147 = vmatprep.mubr.msk.bf16.mxu1 %vm576_vm0, %v1213_v6 }
  0x11   : > { %657 = vmatpush1.bf16.msra.mxu0 %v1196_v1  ;;  %1173 = vmatpush1.bf16.msra.mxu1 %v1196_v1  ;;  %v1199_v4 = vld [vmem:[%s1335_s21 + $0x20] sm:$0xff]   ;;  %v1200_v7 = vld [vmem:[%s1335_s21 + $0x18] sm:$0xff]   ;;  %v1201_v8 = vld [vmem:[%s1335_s21 + $0x10] sm:$0xff]  }
  0x12   : > { %658 = vmatprep.subr.bf16.mxu0 %v1290_v0  ;;  %1162 = vmatprep.subr.bf16.mxu1 %v1290_v0  ;;  %v1202_v9 = vld [vmem:[%s1335_s21 + $0x8] sm:$0xff]   ;;  %v1203_v10 = vld [vmem:[%s1335_s21] sm:$0xff]   ;;  %v1204_v11 = vld [vmem:[%s1335_s21 + $0x58] ss:$0 sps:$4 sm:$0x33]  }
  0x13   : > { %v654_v12 = vsel %vm652_vm1, %v1204_v11, 0  ;;  %v1205_v13 = vld [vmem:[%s1335_s21 + $0x50] sm:$0xff]   ;;  %v1206_v14 = vld [vmem:[%s1335_s21 + $0x48] sm:$0xff]   ;;  %v1207_v15 = vld [vmem:[%s1335_s21 + $0x40] sm:$0xff]  }
  0x14   : > { %v1211_v17 = vld [vmem:[%s1330_s18 + $0xd0] ss:$8 sps:$4 sm:$0xff]   ;;  %v1214_v18 = vld [vmem:[%s1330_s18 + $0x14] ss:$8 sps:$4 sm:$0xff]   ;;  %v1217_v19 = vld [vmem:[%s1330_s18 + $0xe4] ss:$8 sps:$4 sm:$0xff]  }
  0x15   : > { %659 = vmatpush1.bf16.msra.mxu0 %v1197_v2  ;;  %1174 = vmatpush1.bf16.msra.mxu1 %v1197_v2  ;;  %v1216_v20 = vld [vmem:[%s1330_s18 + $0x10] ss:$8 sps:$4 sm:$0xff]   ;;  %v1219_v21 = vld [vmem:[%s1330_s18 + $0xe0] ss:$8 sps:$4 sm:$0xff]   ;;  %v1220_v22 = vld [vmem:[%s1330_s18 + $0x24] ss:$8 sps:$4 sm:$0xff]  }
  0x16   : > { %660 = vmatprep.subr.bf16.mxu0 %v1290_v0  ;;  %1163 = vmatprep.subr.bf16.mxu1 %v1290_v0  ;;  %v1223_v23 = vld [vmem:[%s1330_s18 + $0xf4] ss:$8 sps:$4 sm:$0xff]   ;;  %v1222_v24 = vld [vmem:[%s1330_s18 + $0x20] ss:$8 sps:$4 sm:$0xff]   ;;  %v1225_v25 = vld [vmem:[%s1330_s18 + $0xf0] ss:$8 sps:$4 sm:$0xff]  }
  0x17   : > { %v1226_v26 = vld [vmem:[%s1330_s18 + $0x34] ss:$8 sps:$4 sm:$0xff]   ;;  %v1229_v27 = vld [vmem:[%s1330_s18 + $0x104] ss:$8 sps:$4 sm:$0xff]   ;;  %v1228_v28 = vld [vmem:[%s1330_s18 + $0x30] ss:$8 sps:$4 sm:$0xff]  }
  0x18   : > { %v1231_v29 = vld [vmem:[%s1330_s18 + $0x100] ss:$8 sps:$4 sm:$0xff]   ;;  %v1232_v30 = vld [vmem:[%s1330_s18 + $0x44] ss:$8 sps:$4 sm:$0xff]   ;;  %v1235_v31 = vld [vmem:[%s1330_s18 + $0x114] ss:$8 sps:$4 sm:$0xff]  }
  0x19   : > { %661 = vmatpush1.bf16.msra.mxu0 %v1198_v3  ;;  %1175 = vmatpush1.bf16.msra.mxu1 %v1198_v3  ;;  %v1234_v32 = vld [vmem:[%s1330_s18 + $0x40] ss:$8 sps:$4 sm:$0xff]   ;;  %v1237_v33 = vld [vmem:[%s1330_s18 + $0x110] ss:$8 sps:$4 sm:$0xff]   ;;  %v1238_v34 = vld [vmem:[%s1330_s18 + $0x54] ss:$8 sps:$4 sm:$0xff]  }
  0x1a   : > { %662 = vmatprep.subr.bf16.mxu0 %v1290_v0  ;;  %1164 = vmatprep.subr.bf16.mxu1 %v1290_v0  ;;  %v1241_v35 = vld [vmem:[%s1330_s18 + $0x124] ss:$8 sps:$4 sm:$0xff]   ;;  %v1240_v36 = vld [vmem:[%s1330_s18 + $0x50] ss:$8 sps:$4 sm:$0xff]   ;;  %v1243_v37 = vld [vmem:[%s1330_s18 + $0x120] ss:$8 sps:$4 sm:$0xff]  }
  0x1b   : > { %v1244_v38 = vld [vmem:[%s1330_s18 + $0x64] ss:$8 sps:$4 sm:$0xff]   ;;  %v1247_v39 = vld [vmem:[%s1330_s18 + $0x134] ss:$8 sps:$4 sm:$0xff]   ;;  %v1246_v40 = vld [vmem:[%s1330_s18 + $0x60] ss:$8 sps:$4 sm:$0xff]  }
  0x1c   : > { %v1249_v41 = vld [vmem:[%s1330_s18 + $0x130] ss:$8 sps:$4 sm:$0xff]   ;;  %v1250_v42 = vld [vmem:[%s1330_s18 + $0x74] ss:$8 sps:$4 sm:$0xff]   ;;  %v1253_v43 = vld [vmem:[%s1330_s18 + $0x144] ss:$8 sps:$4 sm:$0xff]  }
  0x1d   : > { %663 = vmatpush1.bf16.msra.mxu0 %v1199_v4  ;;  %1176 = vmatpush1.bf16.msra.mxu1 %v1199_v4  ;;  %v1252_v44 = vld [vmem:[%s1330_s18 + $0x70] ss:$8 sps:$4 sm:$0xff]   ;;  %v1255_v45 = vld [vmem:[%s1330_s18 + $0x140] ss:$8 sps:$4 sm:$0xff]   ;;  %v1256_v46 = vld [vmem:[%s1330_s18 + $0x84] ss:$8 sps:$4 sm:$0xff]  }
  0x1e   : > { %664 = vmatprep.subr.bf16.mxu0 %v1290_v0  ;;  %1165 = vmatprep.subr.bf16.mxu1 %v1290_v0  ;;  %v1259_v47 = vld [vmem:[%s1330_s18 + $0x154] ss:$8 sps:$4 sm:$0xff]   ;;  %v1258_v48 = vld [vmem:[%s1330_s18 + $0x80] ss:$8 sps:$4 sm:$0xff]   ;;  %v1261_v49 = vld [vmem:[%s1330_s18 + $0x150] ss:$8 sps:$4 sm:$0xff]  }
  0x1f   : > { %v1262_v50 = vld [vmem:[%s1330_s18 + $0x94] ss:$8 sps:$4 sm:$0xff]   ;;  %v1265_v51 = vld [vmem:[%s1330_s18 + $0x164] ss:$8 sps:$4 sm:$0xff]   ;;  %v1264_v52 = vld [vmem:[%s1330_s18 + $0x90] ss:$8 sps:$4 sm:$0xff]  }
  0x20   : > { %v1267_v53 = vld [vmem:[%s1330_s18 + $0x160] ss:$8 sps:$4 sm:$0xff]   ;;  %v1268_v54 = vld [vmem:[%s1330_s18 + $0xa4] ss:$8 sps:$4 sm:$0xff]   ;;  %v1271_v55 = vld [vmem:[%s1330_s18 + $0x174] ss:$8 sps:$4 sm:$0xff]  }
  0x21   : > { %665 = vmatpush1.bf16.msra.mxu0 %v1200_v7  ;;  %1177 = vmatpush1.bf16.msra.mxu1 %v1200_v7  ;;  %v254_v56 = vld [vmem:[%s1330_s18 + $0x180] sm:$0xff]  ;;  %v1273_v58 = vld [vmem:[%s1330_s18 + $0x170] ss:$8 sps:$4 sm:$0xff]   ;;  %v1274_v59 = vld [vmem:[%s1330_s18 + $0xb4] ss:$8 sps:$4 sm:$0xff]  }
  0x22   : > { %666 = vmatprep.subr.bf16.mxu0 %v1290_v0  ;;  %1166 = vmatprep.subr.bf16.mxu1 %v1290_v0  ;;  %v1270_v57 = vld [vmem:[%s1330_s18 + $0xa0] ss:$8 sps:$4 sm:$0xff]   ;;  %v1121_v60 = vcombine.high %v254_v56, %v254_v56  ;;  %v1276_v61 = vld [vmem:[%s1330_s18 + $0xb0] ss:$8 sps:$4 sm:$0xff]   ;;  %v1120_v62 = vcombine.low %v254_v56, %v254_v56  ;;  %v1279_v63 = vld [vmem:[%s1330_s18 + $0xc4] ss:$8 sps:$4 sm:$0xff]  }
  0x23   : > { %v1449_v1 = vld [vmem:[%s199_s24] ss:$0 sm:$0xff] }
  0x25   : > { %667 = vmatpush1.bf16.msra.mxu0 %v1201_v8  ;;  %1178 = vmatpush1.bf16.msra.mxu1 %v1201_v8 }
  0x26   : > { %668 = vmatprep.subr.bf16.mxu0 %v1290_v0  ;;  %1167 = vmatprep.subr.bf16.mxu1 %v1290_v0 }
  0x29   : > { %669 = vmatpush1.bf16.msra.mxu0 %v1202_v9  ;;  %1179 = vmatpush1.bf16.msra.mxu1 %v1202_v9 }
  0x2a   : > { %670 = vmatprep.subr.bf16.mxu0 %v1290_v0  ;;  %1168 = vmatprep.subr.bf16.mxu1 %v1290_v0 }
  0x2d   : > { %671 = vmatpush1.bf16.msra.mxu0 %v1203_v10  ;;  %1180 = vmatpush1.bf16.msra.mxu1 %v1203_v10 }
  0x2e   : > { %680 = vmatprep.subr.bf16.mxu0 %v1290_v0  ;;  %1169 = vmatprep.subr.bf16.mxu1 %v1290_v0 }
  0x31   : > { %681 = vmatpush2.bf16.msra.mxu0 %v654_v12  ;;  %1181 = vmatpush2.bf16.msra.mxu1 %v654_v12 }
  0x32   : > { %682 = vmatprep.subr.bf16.mxu0 %v1290_v0  ;;  %1170 = vmatprep.subr.bf16.mxu1 %v1290_v0 }
  0x35   : > { %683 = vmatpush2.bf16.msra.mxu0 %v1205_v13  ;;  %1182 = vmatpush2.bf16.msra.mxu1 %v1205_v13 }
  0x36   : > { %684 = vmatprep.subr.bf16.mxu0 %v1290_v0  ;;  %1171 = vmatprep.subr.bf16.mxu1 %v1290_v0 }
  0x39   : > { %685 = vmatpush2.bf16.msra.mxu0 %v1206_v14  ;;  %1183 = vmatpush2.bf16.msra.mxu1 %v1206_v14 }
  0x3a   : > { %686 = vmatprep.subr.bf16.mxu0 %v1290_v0  ;;  %1172 = vmatprep.subr.bf16.mxu1 %v1290_v0  ;;  %v1281_v0 = vld [vmem:[%s1330_s18 + $0xc0] ss:$8 sps:$4 sm:$0xff]  }
  0x3d   : > { %687 = vmatpush2.bf16.msra.mxu0 %v1207_v15  ;;  %1184 = vmatpush2.bf16.msra.mxu1 %v1207_v15 }
  0x40   : > { %689 = vmatmul.mubr.bf16.vlgmr.msra.gmra.mxu0 %v1208_v16  ;;  %793 = vmatmul.mubr.bf16.vlgmr.msra.gmra.mxu1 %v1211_v17 }
  0x41   : > { %1135 = vmatprep.mubr.msk.bf16.mxu0 %vm576_vm0, %v1214_v18  ;;  %1148 = vmatprep.mubr.msk.bf16.mxu1 %vm576_vm0, %v1217_v19 }
  0x48   : > { %697 = vmatmul.mubr.bf16.gmra.mxu0 %v1216_v20  ;;  %801 = vmatmul.mubr.bf16.gmra.mxu1 %v1219_v21 }
  0x49   : > { %1136 = vmatprep.mubr.msk.bf16.mxu0 %vm576_vm0, %v1220_v22  ;;  %1149 = vmatprep.mubr.msk.bf16.mxu1 %vm576_vm0, %v1223_v23 }
  0x50   : > { %705 = vmatmul.mubr.bf16.gmra.mxu0 %v1222_v24  ;;  %809 = vmatmul.mubr.bf16.gmra.mxu1 %v1225_v25 }
  0x51   : > { %1137 = vmatprep.mubr.msk.bf16.mxu0 %vm576_vm0, %v1226_v26  ;;  %1150 = vmatprep.mubr.msk.bf16.mxu1 %vm576_vm0, %v1229_v27 }
  0x58   : > { %713 = vmatmul.mubr.bf16.gmra.mxu0 %v1228_v28  ;;  %817 = vmatmul.mubr.bf16.gmra.mxu1 %v1231_v29 }
  0x59   : > { %1138 = vmatprep.mubr.msk.bf16.mxu0 %vm576_vm0, %v1232_v30  ;;  %1151 = vmatprep.mubr.msk.bf16.mxu1 %vm576_vm0, %v1235_v31 }
  0x60   : > { %721 = vmatmul.mubr.bf16.gmra.mxu0 %v1234_v32  ;;  %825 = vmatmul.mubr.bf16.gmra.mxu1 %v1237_v33 }
  0x61   : > { %1139 = vmatprep.mubr.msk.bf16.mxu0 %vm576_vm0, %v1238_v34  ;;  %1152 = vmatprep.mubr.msk.bf16.mxu1 %vm576_vm0, %v1241_v35 }
  0x68   : > { %729 = vmatmul.mubr.bf16.gmra.mxu0 %v1240_v36  ;;  %833 = vmatmul.mubr.bf16.gmra.mxu1 %v1243_v37 }
  0x69   : > { %1140 = vmatprep.mubr.msk.bf16.mxu0 %vm576_vm0, %v1244_v38  ;;  %1153 = vmatprep.mubr.msk.bf16.mxu1 %vm576_vm0, %v1247_v39 }
  0x70   : > { %737 = vmatmul.mubr.bf16.gmra.mxu0 %v1246_v40  ;;  %841 = vmatmul.mubr.bf16.gmra.mxu1 %v1249_v41 }
  0x71   : > { %1141 = vmatprep.mubr.msk.bf16.mxu0 %vm576_vm0, %v1250_v42  ;;  %1154 = vmatprep.mubr.msk.bf16.mxu1 %vm576_vm0, %v1253_v43 }
  0x78   : > { %745 = vmatmul.mubr.bf16.gmra.mxu0 %v1252_v44  ;;  %849 = vmatmul.mubr.bf16.gmra.mxu1 %v1255_v45 }
  0x79   : > { %1142 = vmatprep.mubr.msk.bf16.mxu0 %vm576_vm0, %v1256_v46  ;;  %1155 = vmatprep.mubr.msk.bf16.mxu1 %vm576_vm0, %v1259_v47 }
  0x80   : > { %753 = vmatmul.mubr.bf16.gmra.mxu0 %v1258_v48  ;;  %857 = vmatmul.mubr.bf16.gmra.mxu1 %v1261_v49 }
  0x81   : > { %1143 = vmatprep.mubr.msk.bf16.mxu0 %vm576_vm0, %v1262_v50  ;;  %1156 = vmatprep.mubr.msk.bf16.mxu1 %vm576_vm0, %v1265_v51 }
  0x88   : > { %761 = vmatmul.mubr.bf16.gmra.mxu0 %v1264_v52  ;;  %865 = vmatmul.mubr.bf16.gmra.mxu1 %v1267_v53 }
  0x89   : > { %1144 = vmatprep.mubr.msk.bf16.mxu0 %vm576_vm0, %v1268_v54  ;;  %1157 = vmatprep.mubr.msk.bf16.mxu1 %vm576_vm0, %v1271_v55 }
  0x90   : > { %769 = vmatmul.mubr.bf16.gmra.mxu0 %v1270_v57  ;;  %873 = vmatmul.mubr.bf16.gmra.mxu1 %v1273_v58 }
  0x91   : > { %1145 = vmatprep.mubr.msk.bf16.mxu0 %vm576_vm0, %v1274_v59  ;;  %1158 = vmatprep.mubr.msk.bf16.mxu1 %vm576_vm0, %v1121_v60 }
  0x98   : > { %777 = vmatmul.mubr.bf16.gmra.mxu0 %v1276_v61  ;;  %881 = vmatmul.mubr.bf16.gmra.mxu1 %v1120_v62 }
  0x99   : > { %1146 = vmatprep.mubr.msk.bf16.mxu0 %vm576_vm0, %v1279_v63 }
  0xa0   : > { %785 = vmatmul.mubr.bf16.gmra.mxu0 %v1281_v0 }
 0x100   : > { %v690_v2 = vpop.f32.mrf.mxu0  ;;  %v794_v3 = vpop.f32.mrf.mxu1 }
 0x101   : > { %v691_v4 = vadd.f32 %v1449_v1, %v690_v2  ;;  %v795_v5 = vadd.f32 %v1449_v1, %v794_v3 }
 0x102   : > { %v692_v6 = vpop.f32.mrf.mxu0  ;;  %v796_v7 = vpop.f32.mrf.mxu1 }
 0x103   : > { %v888_v8 = vmax.f32 %v691_v4, 0.0  ;;  %v914_v9 = vmax.f32 %v795_v5, 0.0 }
 0x104   : > { %v693_v10 = vpop.f32.mrf.mxu0  ;;  %v797_v11 = vpop.f32.mrf.mxu1 }
 0x105   : > { %938 = vst.msk [vmem:[%s1458_s27] sm:$0xff] %vm937_vm2, %v888_v8  ;;  %v694_v12 = vadd.f32 %v1449_v1, %v693_v10  ;;  %964 = vst.msk [vmem:[%s1458_s27 + $0xd0] sm:$0xff] %vm937_vm2, %v914_v9  ;;  %v798_v13 = vadd.f32 %v1449_v1, %v797_v11 }
 0x106   : > { %v695_v14 = vpop.f32.mrf.mxu0  ;;  %v799_v15 = vpop.f32.mrf.mxu1 }
 0x107   : > { %v889_v16 = vmax.f32 %v694_v12, 0.0  ;;  %v915_v17 = vmax.f32 %v798_v13, 0.0 }
 0x108   : > { %v698_v18 = vpop.f32.mrf.mxu0  ;;  %v802_v19 = vpop.f32.mrf.mxu1 }
 0x109   : > { %939 = vst.msk [vmem:[%s1458_s27 + $0x8] sm:$0xff] %vm937_vm2, %v889_v16  ;;  %v699_v20 = vadd.f32 %v1449_v1, %v698_v18  ;;  %965 = vst.msk [vmem:[%s1458_s27 + $0xd8] sm:$0xff] %vm937_vm2, %v915_v17  ;;  %v803_v21 = vadd.f32 %v1449_v1, %v802_v19 }
 0x10a   : > { %v700_v22 = vpop.f32.mrf.mxu0  ;;  %v804_v23 = vpop.f32.mrf.mxu1 }
 0x10b   : > { %v890_v24 = vmax.f32 %v699_v20, 0.0  ;;  %v916_v25 = vmax.f32 %v803_v21, 0.0 }
 0x10c   : > { %v701_v26 = vpop.f32.mrf.mxu0  ;;  %v805_v27 = vpop.f32.mrf.mxu1 }
 0x10d   : > { %940 = vst.msk [vmem:[%s1458_s27 + $0x10] sm:$0xff] %vm937_vm2, %v890_v24  ;;  %v702_v28 = vadd.f32 %v1449_v1, %v701_v26  ;;  %966 = vst.msk [vmem:[%s1458_s27 + $0xe0] sm:$0xff] %vm937_vm2, %v916_v25  ;;  %v806_v29 = vadd.f32 %v1449_v1, %v805_v27 }
 0x10e   : > { %v703_v30 = vpop.f32.mrf.mxu0  ;;  %v807_v31 = vpop.f32.mrf.mxu1 }
 0x10f   : > { %v891_v32 = vmax.f32 %v702_v28, 0.0  ;;  %v917_v33 = vmax.f32 %v806_v29, 0.0 }
 0x110   : > { %v706_v34 = vpop.f32.mrf.mxu0  ;;  %v810_v35 = vpop.f32.mrf.mxu1 }
 0x111   : > { %941 = vst.msk [vmem:[%s1458_s27 + $0x18] sm:$0xff] %vm937_vm2, %v891_v32  ;;  %v707_v36 = vadd.f32 %v1449_v1, %v706_v34  ;;  %967 = vst.msk [vmem:[%s1458_s27 + $0xe8] sm:$0xff] %vm937_vm2, %v917_v33  ;;  %v811_v37 = vadd.f32 %v1449_v1, %v810_v35 }
 0x112   : > { %v708_v38 = vpop.f32.mrf.mxu0  ;;  %v812_v39 = vpop.f32.mrf.mxu1 }
 0x113   : > { %v892_v40 = vmax.f32 %v707_v36, 0.0  ;;  %v918_v41 = vmax.f32 %v811_v37, 0.0 }
 0x114   : > { %v709_v42 = vpop.f32.mrf.mxu0  ;;  %v813_v43 = vpop.f32.mrf.mxu1 }
 0x115   : > { %942 = vst.msk [vmem:[%s1458_s27 + $0x20] sm:$0xff] %vm937_vm2, %v892_v40  ;;  %v710_v44 = vadd.f32 %v1449_v1, %v709_v42  ;;  %968 = vst.msk [vmem:[%s1458_s27 + $0xf0] sm:$0xff] %vm937_vm2, %v918_v41  ;;  %v814_v45 = vadd.f32 %v1449_v1, %v813_v43 }
 0x116   : > { %v711_v46 = vpop.f32.mrf.mxu0  ;;  %v815_v47 = vpop.f32.mrf.mxu1 }
 0x117   : > { %v893_v48 = vmax.f32 %v710_v44, 0.0  ;;  %v919_v49 = vmax.f32 %v814_v45, 0.0 }
 0x118   : > { %v714_v50 = vpop.f32.mrf.mxu0  ;;  %v818_v51 = vpop.f32.mrf.mxu1 }
 0x119   : > { %943 = vst.msk [vmem:[%s1458_s27 + $0x28] sm:$0xff] %vm937_vm2, %v893_v48  ;;  %v715_v52 = vadd.f32 %v1449_v1, %v714_v50  ;;  %969 = vst.msk [vmem:[%s1458_s27 + $0xf8] sm:$0xff] %vm937_vm2, %v919_v49  ;;  %v819_v53 = vadd.f32 %v1449_v1, %v818_v51 }
 0x11a   : > { %v716_v54 = vpop.f32.mrf.mxu0  ;;  %v820_v55 = vpop.f32.mrf.mxu1 }
 0x11b   : > { %v894_v56 = vmax.f32 %v715_v52, 0.0  ;;  %v920_v57 = vmax.f32 %v819_v53, 0.0 }
 0x11c   : > { %v717_v58 = vpop.f32.mrf.mxu0  ;;  %v821_v59 = vpop.f32.mrf.mxu1 }
 0x11d   : > { %944 = vst.msk [vmem:[%s1458_s27 + $0x30] sm:$0xff] %vm937_vm2, %v894_v56  ;;  %v718_v60 = vadd.f32 %v1449_v1, %v717_v58  ;;  %970 = vst.msk [vmem:[%s1458_s27 + $0x100] sm:$0xff] %vm937_vm2, %v920_v57  ;;  %v822_v61 = vadd.f32 %v1449_v1, %v821_v59 }
 0x11e   : > { %v719_v62 = vpop.f32.mrf.mxu0  ;;  %v823_v63 = vpop.f32.mrf.mxu1 }
 0x11f   : > { %v895_v0 = vmax.f32 %v718_v60, 0.0  ;;  %v921_v2 = vmax.f32 %v822_v61, 0.0 }
 0x120   : > { %v722_v3 = vpop.f32.mrf.mxu0  ;;  %v826_v4 = vpop.f32.mrf.mxu1 }
 0x121   : > { %945 = vst.msk [vmem:[%s1458_s27 + $0x38] sm:$0xff] %vm937_vm2, %v895_v0  ;;  %v723_v5 = vadd.f32 %v1449_v1, %v722_v3  ;;  %971 = vst.msk [vmem:[%s1458_s27 + $0x108] sm:$0xff] %vm937_vm2, %v921_v2  ;;  %v827_v6 = vadd.f32 %v1449_v1, %v826_v4 }
 0x122   : > { %v724_v7 = vpop.f32.mrf.mxu0  ;;  %v828_v8 = vpop.f32.mrf.mxu1 }
 0x123   : > { %v896_v9 = vmax.f32 %v723_v5, 0.0  ;;  %v922_v10 = vmax.f32 %v827_v6, 0.0 }
 0x124   : > { %v725_v11 = vpop.f32.mrf.mxu0  ;;  %v829_v12 = vpop.f32.mrf.mxu1 }
 0x125   : > { %946 = vst.msk [vmem:[%s1458_s27 + $0x40] sm:$0xff] %vm937_vm2, %v896_v9  ;;  %v726_v13 = vadd.f32 %v1449_v1, %v725_v11  ;;  %972 = vst.msk [vmem:[%s1458_s27 + $0x110] sm:$0xff] %vm937_vm2, %v922_v10  ;;  %v830_v14 = vadd.f32 %v1449_v1, %v829_v12 }
 0x126   : > { %v727_v15 = vpop.f32.mrf.mxu0  ;;  %v831_v16 = vpop.f32.mrf.mxu1 }
 0x127   : > { %v897_v17 = vmax.f32 %v726_v13, 0.0  ;;  %v923_v18 = vmax.f32 %v830_v14, 0.0 }
 0x128   : > { %v730_v19 = vpop.f32.mrf.mxu0  ;;  %v834_v20 = vpop.f32.mrf.mxu1 }
 0x129   : > { %947 = vst.msk [vmem:[%s1458_s27 + $0x48] sm:$0xff] %vm937_vm2, %v897_v17  ;;  %v731_v21 = vadd.f32 %v1449_v1, %v730_v19  ;;  %973 = vst.msk [vmem:[%s1458_s27 + $0x118] sm:$0xff] %vm937_vm2, %v923_v18  ;;  %v835_v22 = vadd.f32 %v1449_v1, %v834_v20 }
 0x12a   : > { %v732_v23 = vpop.f32.mrf.mxu0  ;;  %v836_v24 = vpop.f32.mrf.mxu1 }
 0x12b   : > { %v898_v25 = vmax.f32 %v731_v21, 0.0  ;;  %v924_v26 = vmax.f32 %v835_v22, 0.0 }
 0x12c   : > { %v733_v27 = vpop.f32.mrf.mxu0  ;;  %v837_v28 = vpop.f32.mrf.mxu1 }
 0x12d   : > { %948 = vst.msk [vmem:[%s1458_s27 + $0x50] sm:$0xff] %vm937_vm2, %v898_v25  ;;  %v734_v29 = vadd.f32 %v1449_v1, %v733_v27  ;;  %974 = vst.msk [vmem:[%s1458_s27 + $0x120] sm:$0xff] %vm937_vm2, %v924_v26  ;;  %v838_v30 = vadd.f32 %v1449_v1, %v837_v28 }
 0x12e   : > { %v735_v31 = vpop.f32.mrf.mxu0  ;;  %v839_v32 = vpop.f32.mrf.mxu1 }
 0x12f   : > { %v899_v33 = vmax.f32 %v734_v29, 0.0  ;;  %v925_v34 = vmax.f32 %v838_v30, 0.0 }
 0x130   : > { %v738_v35 = vpop.f32.mrf.mxu0  ;;  %v842_v36 = vpop.f32.mrf.mxu1 }
 0x131   : > { %949 = vst.msk [vmem:[%s1458_s27 + $0x58] sm:$0xff] %vm937_vm2, %v899_v33  ;;  %v739_v37 = vadd.f32 %v1449_v1, %v738_v35  ;;  %975 = vst.msk [vmem:[%s1458_s27 + $0x128] sm:$0xff] %vm937_vm2, %v925_v34  ;;  %v843_v38 = vadd.f32 %v1449_v1, %v842_v36 }
 0x132   : > { %v740_v39 = vpop.f32.mrf.mxu0  ;;  %v844_v40 = vpop.f32.mrf.mxu1 }
 0x133   : > { %v900_v41 = vmax.f32 %v739_v37, 0.0  ;;  %v926_v42 = vmax.f32 %v843_v38, 0.0 }
 0x134   : > { %v741_v43 = vpop.f32.mrf.mxu0  ;;  %v845_v44 = vpop.f32.mrf.mxu1 }
 0x135   : > { %950 = vst.msk [vmem:[%s1458_s27 + $0x60] sm:$0xff] %vm937_vm2, %v900_v41  ;;  %v742_v45 = vadd.f32 %v1449_v1, %v741_v43  ;;  %976 = vst.msk [vmem:[%s1458_s27 + $0x130] sm:$0xff] %vm937_vm2, %v926_v42  ;;  %v846_v46 = vadd.f32 %v1449_v1, %v845_v44 }
 0x136   : > { %v743_v47 = vpop.f32.mrf.mxu0  ;;  %v847_v48 = vpop.f32.mrf.mxu1 }
 0x137   : > { %v901_v49 = vmax.f32 %v742_v45, 0.0  ;;  %v927_v50 = vmax.f32 %v846_v46, 0.0 }
 0x138   : > { %v746_v51 = vpop.f32.mrf.mxu0  ;;  %v850_v52 = vpop.f32.mrf.mxu1 }
 0x139   : > { %951 = vst.msk [vmem:[%s1458_s27 + $0x68] sm:$0xff] %vm937_vm2, %v901_v49  ;;  %v747_v53 = vadd.f32 %v1449_v1, %v746_v51  ;;  %977 = vst.msk [vmem:[%s1458_s27 + $0x138] sm:$0xff] %vm937_vm2, %v927_v50  ;;  %v851_v54 = vadd.f32 %v1449_v1, %v850_v52 }
 0x13a   : > { %v748_v55 = vpop.f32.mrf.mxu0  ;;  %v852_v56 = vpop.f32.mrf.mxu1 }
 0x13b   : > { %v902_v57 = vmax.f32 %v747_v53, 0.0  ;;  %v928_v58 = vmax.f32 %v851_v54, 0.0 }
 0x13c   : > { %v749_v59 = vpop.f32.mrf.mxu0  ;;  %v853_v60 = vpop.f32.mrf.mxu1 }
 0x13d   : > { %952 = vst.msk [vmem:[%s1458_s27 + $0x70] sm:$0xff] %vm937_vm2, %v902_v57  ;;  %v750_v61 = vadd.f32 %v1449_v1, %v749_v59  ;;  %978 = vst.msk [vmem:[%s1458_s27 + $0x140] sm:$0xff] %vm937_vm2, %v928_v58  ;;  %v854_v62 = vadd.f32 %v1449_v1, %v853_v60 }
 0x13e   : > { %v751_v63 = vpop.f32.mrf.mxu0  ;;  %v855_v0 = vpop.f32.mrf.mxu1 }
 0x13f   : > { %v903_v2 = vmax.f32 %v750_v61, 0.0  ;;  %v929_v3 = vmax.f32 %v854_v62, 0.0 }
 0x140   : > { %v754_v4 = vpop.f32.mrf.mxu0  ;;  %v858_v5 = vpop.f32.mrf.mxu1 }
 0x141   : > { %953 = vst.msk [vmem:[%s1458_s27 + $0x78] sm:$0xff] %vm937_vm2, %v903_v2  ;;  %v755_v6 = vadd.f32 %v1449_v1, %v754_v4  ;;  %979 = vst.msk [vmem:[%s1458_s27 + $0x148] sm:$0xff] %vm937_vm2, %v929_v3  ;;  %v859_v7 = vadd.f32 %v1449_v1, %v858_v5 }
 0x142   : > { %v756_v8 = vpop.f32.mrf.mxu0  ;;  %v860_v9 = vpop.f32.mrf.mxu1 }
 0x143   : > { %v904_v10 = vmax.f32 %v755_v6, 0.0  ;;  %v930_v11 = vmax.f32 %v859_v7, 0.0 }
 0x144   : > { %v757_v12 = vpop.f32.mrf.mxu0  ;;  %v861_v13 = vpop.f32.mrf.mxu1 }
 0x145   : > { %954 = vst.msk [vmem:[%s1458_s27 + $0x80] sm:$0xff] %vm937_vm2, %v904_v10  ;;  %v758_v14 = vadd.f32 %v1449_v1, %v757_v12  ;;  %980 = vst.msk [vmem:[%s1458_s27 + $0x150] sm:$0xff] %vm937_vm2, %v930_v11  ;;  %v862_v15 = vadd.f32 %v1449_v1, %v861_v13 }
 0x146   : > { %v759_v16 = vpop.f32.mrf.mxu0  ;;  %v863_v17 = vpop.f32.mrf.mxu1 }
 0x147   : > { %v905_v18 = vmax.f32 %v758_v14, 0.0  ;;  %v931_v19 = vmax.f32 %v862_v15, 0.0 }
 0x148   : > { %v762_v20 = vpop.f32.mrf.mxu0  ;;  %v866_v21 = vpop.f32.mrf.mxu1 }
 0x149   : > { %955 = vst.msk [vmem:[%s1458_s27 + $0x88] sm:$0xff] %vm937_vm2, %v905_v18  ;;  %v763_v22 = vadd.f32 %v1449_v1, %v762_v20  ;;  %981 = vst.msk [vmem:[%s1458_s27 + $0x158] sm:$0xff] %vm937_vm2, %v931_v19  ;;  %v867_v23 = vadd.f32 %v1449_v1, %v866_v21 }
 0x14a   : > { %v764_v24 = vpop.f32.mrf.mxu0  ;;  %v868_v25 = vpop.f32.mrf.mxu1 }
 0x14b   : > { %v906_v26 = vmax.f32 %v763_v22, 0.0  ;;  %v932_v27 = vmax.f32 %v867_v23, 0.0 }
 0x14c   : > { %v765_v28 = vpop.f32.mrf.mxu0  ;;  %v869_v29 = vpop.f32.mrf.mxu1 }
 0x14d   : > { %956 = vst.msk [vmem:[%s1458_s27 + $0x90] sm:$0xff] %vm937_vm2, %v906_v26  ;;  %v766_v30 = vadd.f32 %v1449_v1, %v765_v28  ;;  %982 = vst.msk [vmem:[%s1458_s27 + $0x160] sm:$0xff] %vm937_vm2, %v932_v27  ;;  %v870_v31 = vadd.f32 %v1449_v1, %v869_v29 }
 0x14e   : > { %v767_v32 = vpop.f32.mrf.mxu0  ;;  %v871_v33 = vpop.f32.mrf.mxu1 }
 0x14f   : > { %v907_v34 = vmax.f32 %v766_v30, 0.0  ;;  %v933_v35 = vmax.f32 %v870_v31, 0.0 }
 0x150   : > { %v770_v36 = vpop.f32.mrf.mxu0  ;;  %v874_v37 = vpop.f32.mrf.mxu1 }
 0x151   : > { %957 = vst.msk [vmem:[%s1458_s27 + $0x98] sm:$0xff] %vm937_vm2, %v907_v34  ;;  %v771_v38 = vadd.f32 %v1449_v1, %v770_v36  ;;  %983 = vst.msk [vmem:[%s1458_s27 + $0x168] sm:$0xff] %vm937_vm2, %v933_v35  ;;  %v875_v39 = vadd.f32 %v1449_v1, %v874_v37 }
 0x152   : > { %v772_v40 = vpop.f32.mrf.mxu0  ;;  %v876_v41 = vpop.f32.mrf.mxu1 }
 0x153   : > { %v908_v42 = vmax.f32 %v771_v38, 0.0  ;;  %v934_v43 = vmax.f32 %v875_v39, 0.0 }
 0x154   : > { %v773_v44 = vpop.f32.mrf.mxu0  ;;  %v877_v45 = vpop.f32.mrf.mxu1 }
 0x155   : > { %958 = vst.msk [vmem:[%s1458_s27 + $0xa0] sm:$0xff] %vm937_vm2, %v908_v42  ;;  %v774_v46 = vadd.f32 %v1449_v1, %v773_v44  ;;  %984 = vst.msk [vmem:[%s1458_s27 + $0x170] sm:$0xff] %vm937_vm2, %v934_v43  ;;  %v878_v47 = vadd.f32 %v1449_v1, %v877_v45 }
 0x156   : > { %v775_v48 = vpop.f32.mrf.mxu0  ;;  %v879_v49 = vpop.f32.mrf.mxu1 }
 0x157   : > { %v909_v50 = vmax.f32 %v774_v46, 0.0  ;;  %v935_v51 = vmax.f32 %v878_v47, 0.0 }
 0x158   : > { %v778_v52 = vpop.f32.mrf.mxu0  ;;  %v882_v53 = vpop.f32.mrf.mxu1 }
 0x159   : > { %959 = vst.msk [vmem:[%s1458_s27 + $0xa8] sm:$0xff] %vm937_vm2, %v909_v50  ;;  %v779_v54 = vadd.f32 %v1449_v1, %v778_v52  ;;  %985 = vst.msk [vmem:[%s1458_s27 + $0x178] sm:$0xff] %vm937_vm2, %v935_v51  ;;  %v883_v55 = vadd.f32 %v1449_v1, %v882_v53 }
 0x15a   : > { %v780_v56 = vpop.f32.mrf.mxu0  ;;  %v884_v57 = vpop.f32.mrf.mxu1 }
 0x15b   : > { %v910_v58 = vmax.f32 %v779_v54, 0.0  ;;  %v936_v59 = vmax.f32 %v883_v55, 0.0 }
 0x15c   : > { %v781_v60 = vpop.f32.mrf.mxu0  ;;  %v885_v61 = vpop.f32.mrf.mxu1 }
 0x15d   : > { %960 = vst.msk [vmem:[%s1458_s27 + $0xb0] sm:$0xff] %vm937_vm2, %v910_v58  ;;  %v782_v62 = vadd.f32 %v1449_v1, %v781_v60  ;;  %986 = vst.msk [vmem:[%s1458_s27 + $0x180] sm:$0xff] %vm937_vm2, %v936_v59 }
 0x15e   : > { %v783_v63 = vpop.f32.mrf.mxu0  ;;  %v886_v0 = vpop.f32.mrf.mxu1 }
 0x15f   : > { %v911_v2 = vmax.f32 %v782_v62, 0.0 }
 0x160   : > { %v786_v3 = vpop.f32.mrf.mxu0 }
 0x161   : > { %961 = vst.msk [vmem:[%s1458_s27 + $0xb8] sm:$0xff] %vm937_vm2, %v911_v2  ;;  %v787_v4 = vadd.f32 %v1449_v1, %v786_v3 }
 0x162   : > { %v788_v5 = vpop.f32.mrf.mxu0 }
 0x163   : > { %v912_v6 = vmax.f32 %v787_v4, 0.0 }
 0x164   : > { %v789_v7 = vpop.f32.mrf.mxu0 }
 0x165   : > { %962 = vst.msk [vmem:[%s1458_s27 + $0xc0] sm:$0xff] %vm937_vm2, %v912_v6  ;;  %v790_v8 = vadd.f32 %v1449_v1, %v789_v7 }
 0x166   : > { %v791_v9 = vpop.f32.mrf.mxu0 }
 0x167   : > { %v913_v10 = vmax.f32 %v790_v8, 0.0 }
 0x169   : > { %963 = vst.msk [vmem:[%s1458_s27 + $0xc8] sm:$0xff] %vm937_vm2, %v913_v10 }
 0x16a PF: > { %s13_s12 = sadd.s32 1, %s1288_s12  }
 0x16b   : > { %p10_p4 = scmp.ge.s32.totalorder %s13_s12, 4  }
 0x16d   :  { %12 = sbr.rel (!%p10_p4) target bundleno = 1 (0x1), region = 68 }

// kernel: networks_forward.11
= control target key start
LH: loop header
LB: loop body
LE: loop exit
PB: predicated region body
PF: predicated region fallthrough
CT: control target
= control target key end

     0   :  { %s1331_s12 = smov 0   ;;  %s1333_s13 = smov 0   ;;  %s1656_s0 = inlined_call_operand.vmem [shape: bf16[2,4,392,40], index: 0, kind: input, shape index: {}]   ;;  %s1657_s1 = inlined_call_operand.vmem [shape: bf16[2,4,40,1], index: 1, kind: input, shape index: {}]   ;;  %s1658_s2 = inlined_call_operand.vmem [shape: f32[2,1,1], index: 2, kind: input, shape index: {}]   ;;  %s1659_s3 = inlined_call_operand.vmem [shape: f32[2,4,392,1], index: 3, kind: output, shape index: {}]  }
   0x1   :  { %s1335_s14 = smov 0   ;;  %s1337_s15 = smov 0  }
   0x2   :  { %s1339_s16 = smov 0  }
   0x3 LB: > { %s22_s17 = sadd.s32 1, %s1299_s14  ;;  %s25_s18 = sadd.s32 1, %s1303_s15  ;;  %s1307_s16 = sphi %s1339_s16, %s13_s16   ;;  %s1303_s15 = sphi %s1337_s15, %s1663_s15   ;;  %s1299_s14 = sphi %s1335_s14, %s1662_s14   ;;  %s1295_s13 = sphi %s1333_s13, %s1661_s13   ;;  %s1291_s12 = sphi %s1331_s12, %s1660_s12  }
   0x4   : > { %p23_p0 = scmp.ge.s32.totalorder %s22_s17, 4  ;;  %p995_p1 = scmp.ge.s32.totalorder %s1307_s16, 1 }
   0x5   : > { %p181_p2 = scmp.lt.s32.totalorder %s1307_s16, 9 }
   0x6   : > { %s1665_s17 = smov (%p23_p0, %s22_s17), 0  ;;  %s1667_s18 = smov (!%p23_p0, %s25_s18), %s1303_s15 }
   0x7   : > { %p182_p3 = pnand %p995_p1, %p181_p2  ;;  %p27_p4 = scmp.ge.s32.totalorder %s1667_s18, 2 }
   0x8   : > { %p225_p5 = scmp.lt.s32.totalorder (!%p182_p3), %s1295_s13, 1  ;;  %p227_p6 = scmp.lt.s32.totalorder (!%p182_p3), %s1291_s12, 3 }
   0x9   : > { %s1669_s18 = smov (%p27_p4, %s1667_s18), 0  ;;  %185 = sbr.rel (%p182_p3) target bundleno = 334 (0x14e), region = 32 }
   0xe   : > { %v1309_v0 = vmov 0.0   ;;  %s1671_s13 = smov (!%p225_p5, %s1295_s13), 1  ;;  %vm1310_vm0 = vmmov 0   ;;  %s1673_s12 = smov (!%p227_p6, %s1291_s12), 3  ;;  %vm531_vm1 = vcmask 1043456   ;;  %vm455_vm2 = vcmask 326656  }
   0xf   : > { %1083 = vmatprep.subr.bf16.mxu0 %v1309_v0  ;;  %1189 = vmatprep.subr.bf16.mxu1 %v1309_v0  ;;  %s1196_s19 = smul.u32 196, %s1671_s13  ;;  %s245_s8 = scalar_lea.vmem %s1658_s2, %s1671_s13  ;;  %vm816_vm3 = vcmask 7168  }
  0x10   : > { %1089 = vmatprep.mubr.msk.bf16.mxu0 %vm1310_vm0, %v1309_v0  ;;  %1141 = vmatprep.mubr.msk.bf16.mxu1 %vm1310_vm0, %v1309_v0  ;;  %s1195_s20 = smul.u32 49, %s1673_s12  ;;  %v1486_v30 = vld [vmem:[%s245_s8] ss:$0 sm:$0xff] }
  0x11   : > { %s1197_s21 = smul.u32 5, %s1673_s12 }
  0x12   : > { %s1370_s22 = sadd.s32 %s1196_s19, %s1195_s20  ;;  %s1198_s23 = smul.u32 20, %s1671_s13 }
  0x13   : > { %s996_s24 = sshll.u32 %s1370_s22, 2  ;;  %s998_s9 = sshll.u32 %s1370_s22, 3 }
  0x14   : > { %s1377_s27 = scalar_lea.vmem %s1656_s0, %s996_s24  ;;  %s240_s28 = sadd.s32 %s1198_s23, %s1197_s21 }
  0x15   : > { %s997_s29 = sshll.u32 %s240_s28, 2  ;;  %v1244_v5 = vld [vmem:[%s1377_s27] sm:$0xff]   ;;  %v1245_v6 = vld [vmem:[%s1377_s27 + $0x68] sm:$0xff]   ;;  %v1247_v8 = vld [vmem:[%s1377_s27 + $0x70] sm:$0xff]   ;;  %s1494_s12 = scalar_lea.vmem %s1659_s3, %s998_s9 }
  0x16   : > { %s242_s5 = scalar_lea.vmem %s1657_s1, %s997_s29  ;;  %v1246_v7 = vld [vmem:[%s1377_s27 + $0x8] sm:$0xff]   ;;  %v1248_v9 = vld [vmem:[%s1377_s27 + $0x10] sm:$0xff]   ;;  %v1249_v10 = vld [vmem:[%s1377_s27 + $0x78] sm:$0xff]  }
  0x17   : > { %v1241_v1 = vld [vmem:[%s242_s5 + $0x10] ss:$0 sps:$4 sm:$0xff]   ;;  %v1242_v3 = vld [vmem:[%s242_s5 + $0x8] sm:$0xff]   ;;  %v1243_v4 = vld [vmem:[%s242_s5] sm:$0xff]  }
  0x18   : > { %v533_v2 = vsel %vm531_vm1, %v1241_v1, 0  ;;  %v1250_v11 = vld [vmem:[%s1377_s27 + $0x18] sm:$0xff]   ;;  %v1251_v12 = vld [vmem:[%s1377_s27 + $0x80] sm:$0xff]   ;;  %v1253_v14 = vld [vmem:[%s1377_s27 + $0x88] sm:$0xff]  }
  0x19   : > { %1084 = vmatpush3.bf16.msra.mxu0 %v533_v2  ;;  %1192 = vmatpush3.bf16.msra.mxu1 %v533_v2  ;;  %v1252_v13 = vld [vmem:[%s1377_s27 + $0x20] sm:$0xff]   ;;  %v1254_v15 = vld [vmem:[%s1377_s27 + $0x28] sm:$0xff]   ;;  %v1255_v16 = vld [vmem:[%s1377_s27 + $0x90] sm:$0xff]  }
  0x1a   : > { %1085 = vmatprep.subr.bf16.mxu0 %v1309_v0  ;;  %1190 = vmatprep.subr.bf16.mxu1 %v1309_v0  ;;  %v1256_v17 = vld [vmem:[%s1377_s27 + $0x30] sm:$0xff]   ;;  %v1257_v18 = vld [vmem:[%s1377_s27 + $0x98] sm:$0xff]   ;;  %v1259_v20 = vld [vmem:[%s1377_s27 + $0xa0] sm:$0xff]  }
  0x1b   : > { %v1258_v19 = vld [vmem:[%s1377_s27 + $0x38] sm:$0xff]   ;;  %v1260_v21 = vld [vmem:[%s1377_s27 + $0x40] sm:$0xff]   ;;  %v1261_v22 = vld [vmem:[%s1377_s27 + $0xa8] sm:$0xff]  }
  0x1c   : > { %v1262_v23 = vld [vmem:[%s1377_s27 + $0x48] sm:$0xff]   ;;  %v1263_v24 = vld [vmem:[%s1377_s27 + $0xb0] sm:$0xff]   ;;  %v1265_v26 = vld [vmem:[%s1377_s27 + $0xb8] sm:$0xff]  }
  0x1d   : > { %1086 = vmatpush3.bf16.msra.mxu0 %v1242_v3  ;;  %1193 = vmatpush3.bf16.msra.mxu1 %v1242_v3  ;;  %v1264_v25 = vld [vmem:[%s1377_s27 + $0x50] sm:$0xff]   ;;  %v1266_v27 = vld [vmem:[%s1377_s27 + $0x58] sm:$0xff]   ;;  %v1267_v28 = vld [vmem:[%s1377_s27 + $0xc0] ss:$0 sps:$4 sm:$0xff]  }
  0x1e   : > { %1087 = vmatprep.subr.bf16.mxu0 %v1309_v0  ;;  %1191 = vmatprep.subr.bf16.mxu1 %v1309_v0  ;;  %v1268_v29 = vld [vmem:[%s1377_s27 + $0x60] sm:$0xff]  }
  0x21   : > { %1088 = vmatpush3.bf16.msra.mxu0 %v1243_v4  ;;  %1194 = vmatpush3.bf16.msra.mxu1 %v1243_v4 }
  0x24   : > { %1090 = vmatmul.mubr.msk.bf16.vlgmr.msra.gmra.mxu0 %vm455_vm2, %v1244_v5  ;;  %1142 = vmatmul.mubr.msk.bf16.vlgmr.msra.gmra.mxu1 %vm455_vm2, %v1245_v6 }
  0x25   : > { %1093 = vmatprep.mubr.msk.bf16.mxu0 %vm1310_vm0, %v1309_v0  ;;  %1145 = vmatprep.mubr.msk.bf16.mxu1 %vm1310_vm0, %v1309_v0 }
  0x2c   : > { %1094 = vmatmul.mubr.msk.bf16.gmra.mxu0 %vm455_vm2, %v1246_v7  ;;  %1146 = vmatmul.mubr.msk.bf16.gmra.mxu1 %vm455_vm2, %v1247_v8 }
  0x2d   : > { %1097 = vmatprep.mubr.msk.bf16.mxu0 %vm1310_vm0, %v1309_v0  ;;  %1149 = vmatprep.mubr.msk.bf16.mxu1 %vm1310_vm0, %v1309_v0 }
  0x34   : > { %1098 = vmatmul.mubr.msk.bf16.gmra.mxu0 %vm455_vm2, %v1248_v9  ;;  %1150 = vmatmul.mubr.msk.bf16.gmra.mxu1 %vm455_vm2, %v1249_v10 }
  0x35   : > { %1101 = vmatprep.mubr.msk.bf16.mxu0 %vm1310_vm0, %v1309_v0  ;;  %1153 = vmatprep.mubr.msk.bf16.mxu1 %vm1310_vm0, %v1309_v0 }
  0x3c   : > { %1102 = vmatmul.mubr.msk.bf16.gmra.mxu0 %vm455_vm2, %v1250_v11  ;;  %1154 = vmatmul.mubr.msk.bf16.gmra.mxu1 %vm455_vm2, %v1251_v12 }
  0x3d   : > { %1105 = vmatprep.mubr.msk.bf16.mxu0 %vm1310_vm0, %v1309_v0  ;;  %1157 = vmatprep.mubr.msk.bf16.mxu1 %vm1310_vm0, %v1309_v0 }
  0x44   : > { %1106 = vmatmul.mubr.msk.bf16.gmra.mxu0 %vm455_vm2, %v1252_v13  ;;  %1158 = vmatmul.mubr.msk.bf16.gmra.mxu1 %vm455_vm2, %v1253_v14 }
  0x45   : > { %1109 = vmatprep.mubr.msk.bf16.mxu0 %vm1310_vm0, %v1309_v0  ;;  %1161 = vmatprep.mubr.msk.bf16.mxu1 %vm1310_vm0, %v1309_v0 }
  0x4c   : > { %1110 = vmatmul.mubr.msk.bf16.gmra.mxu0 %vm455_vm2, %v1254_v15  ;;  %1162 = vmatmul.mubr.msk.bf16.gmra.mxu1 %vm455_vm2, %v1255_v16 }
  0x4d   : > { %1113 = vmatprep.mubr.msk.bf16.mxu0 %vm1310_vm0, %v1309_v0  ;;  %1165 = vmatprep.mubr.msk.bf16.mxu1 %vm1310_vm0, %v1309_v0 }
  0x54   : > { %1114 = vmatmul.mubr.msk.bf16.gmra.mxu0 %vm455_vm2, %v1256_v17  ;;  %1166 = vmatmul.mubr.msk.bf16.gmra.mxu1 %vm455_vm2, %v1257_v18 }
  0x55   : > { %1117 = vmatprep.mubr.msk.bf16.mxu0 %vm1310_vm0, %v1309_v0  ;;  %1169 = vmatprep.mubr.msk.bf16.mxu1 %vm1310_vm0, %v1309_v0 }
  0x5c   : > { %1118 = vmatmul.mubr.msk.bf16.gmra.mxu0 %vm455_vm2, %v1258_v19  ;;  %1170 = vmatmul.mubr.msk.bf16.gmra.mxu1 %vm455_vm2, %v1259_v20 }
  0x5d   : > { %1121 = vmatprep.mubr.msk.bf16.mxu0 %vm1310_vm0, %v1309_v0  ;;  %1173 = vmatprep.mubr.msk.bf16.mxu1 %vm1310_vm0, %v1309_v0 }
  0x64   : > { %1122 = vmatmul.mubr.msk.bf16.gmra.mxu0 %vm455_vm2, %v1260_v21  ;;  %1174 = vmatmul.mubr.msk.bf16.gmra.mxu1 %vm455_vm2, %v1261_v22 }
  0x65   : > { %1125 = vmatprep.mubr.msk.bf16.mxu0 %vm1310_vm0, %v1309_v0  ;;  %1177 = vmatprep.mubr.msk.bf16.mxu1 %vm1310_vm0, %v1309_v0 }
  0x6c   : > { %1126 = vmatmul.mubr.msk.bf16.gmra.mxu0 %vm455_vm2, %v1262_v23  ;;  %1178 = vmatmul.mubr.msk.bf16.gmra.mxu1 %vm455_vm2, %v1263_v24 }
  0x6d   : > { %1129 = vmatprep.mubr.msk.bf16.mxu0 %vm1310_vm0, %v1309_v0  ;;  %1181 = vmatprep.mubr.msk.bf16.mxu1 %vm1310_vm0, %v1309_v0 }
  0x74   : > { %1130 = vmatmul.mubr.msk.bf16.gmra.mxu0 %vm455_vm2, %v1264_v25  ;;  %1182 = vmatmul.mubr.msk.bf16.gmra.mxu1 %vm455_vm2, %v1265_v26 }
  0x75   : > { %1133 = vmatprep.mubr.msk.bf16.mxu0 %vm1310_vm0, %v1309_v0  ;;  %1185 = vmatprep.mubr.msk.bf16.mxu1 %vm1310_vm0, %v1309_v0 }
  0x7c   : > { %1134 = vmatmul.mubr.msk.bf16.gmra.mxu0 %vm455_vm2, %v1266_v27  ;;  %1186 = vmatmul.mubr.msk.bf16.gmra.mxu1 %vm455_vm2, %v1267_v28 }
  0x7d   : > { %1137 = vmatprep.mubr.msk.bf16.mxu0 %vm1310_vm0, %v1309_v0 }
  0x84   : > { %1138 = vmatmul.mubr.msk.bf16.gmra.mxu0 %vm455_vm2, %v1268_v29 }
  0xe4   : > { %v569_v31 = vpop.f32.mrf.mxu0  ;;  %v673_v32 = vpop.f32.mrf.mxu1 }
  0xe5   : > { %v570_v33 = vadd.f32 %v1486_v30, %v569_v31  ;;  %v674_v34 = vadd.f32 %v1486_v30, %v673_v32 }
  0xe6   : > { %v1091_v35 = vpop.f32.mrf.mxu0  ;;  %v1143_v36 = vpop.f32.mrf.mxu1 }
  0xe7   : > { %v767_v37 = vmax.f32 %v570_v33, 0.0  ;;  %v793_v38 = vmax.f32 %v674_v34, 0.0 }
  0xe8   : > { %v572_v39 = vpop.f32.mrf.mxu0  ;;  %v676_v40 = vpop.f32.mrf.mxu1 }
  0xe9   : > { %817 = vst.msk [vmem:[%s1494_s12] sm:$0xff] %vm816_vm3, %v767_v37  ;;  %v573_v41 = vadd.f32 %v1486_v30, %v572_v39  ;;  %843 = vst.msk [vmem:[%s1494_s12 + $0xd0] sm:$0xff] %vm816_vm3, %v793_v38  ;;  %v677_v42 = vadd.f32 %v1486_v30, %v676_v40 }
  0xea   : > { %v1092_v43 = vpop.f32.mrf.mxu0  ;;  %v1144_v44 = vpop.f32.mrf.mxu1 }
  0xeb   : > { %v768_v45 = vmax.f32 %v573_v41, 0.0  ;;  %v794_v46 = vmax.f32 %v677_v42, 0.0 }
  0xec   : > { %v577_v47 = vpop.f32.mrf.mxu0  ;;  %v681_v48 = vpop.f32.mrf.mxu1 }
  0xed   : > { %818 = vst.msk [vmem:[%s1494_s12 + $0x8] sm:$0xff] %vm816_vm3, %v768_v45  ;;  %v578_v49 = vadd.f32 %v1486_v30, %v577_v47  ;;  %844 = vst.msk [vmem:[%s1494_s12 + $0xd8] sm:$0xff] %vm816_vm3, %v794_v46  ;;  %v682_v50 = vadd.f32 %v1486_v30, %v681_v48 }
  0xee   : > { %v1095_v51 = vpop.f32.mrf.mxu0  ;;  %v1147_v52 = vpop.f32.mrf.mxu1 }
  0xef   : > { %v769_v53 = vmax.f32 %v578_v49, 0.0  ;;  %v795_v54 = vmax.f32 %v682_v50, 0.0 }
  0xf0   : > { %v580_v55 = vpop.f32.mrf.mxu0  ;;  %v684_v56 = vpop.f32.mrf.mxu1 }
  0xf1   : > { %819 = vst.msk [vmem:[%s1494_s12 + $0x10] sm:$0xff] %vm816_vm3, %v769_v53  ;;  %v581_v57 = vadd.f32 %v1486_v30, %v580_v55  ;;  %845 = vst.msk [vmem:[%s1494_s12 + $0xe0] sm:$0xff] %vm816_vm3, %v795_v54  ;;  %v685_v58 = vadd.f32 %v1486_v30, %v684_v56 }
  0xf2   : > { %v1096_v59 = vpop.f32.mrf.mxu0  ;;  %v1148_v60 = vpop.f32.mrf.mxu1 }
  0xf3   : > { %v770_v61 = vmax.f32 %v581_v57, 0.0  ;;  %v796_v62 = vmax.f32 %v685_v58, 0.0 }
  0xf4   : > { %v585_v63 = vpop.f32.mrf.mxu0  ;;  %v689_v0 = vpop.f32.mrf.mxu1 }
  0xf5   : > { %820 = vst.msk [vmem:[%s1494_s12 + $0x18] sm:$0xff] %vm816_vm3, %v770_v61  ;;  %v586_v1 = vadd.f32 %v1486_v30, %v585_v63  ;;  %846 = vst.msk [vmem:[%s1494_s12 + $0xe8] sm:$0xff] %vm816_vm3, %v796_v62  ;;  %v690_v2 = vadd.f32 %v1486_v30, %v689_v0 }
  0xf6   : > { %v1099_v3 = vpop.f32.mrf.mxu0  ;;  %v1151_v4 = vpop.f32.mrf.mxu1 }
  0xf7   : > { %v771_v5 = vmax.f32 %v586_v1, 0.0  ;;  %v797_v6 = vmax.f32 %v690_v2, 0.0 }
  0xf8   : > { %v588_v7 = vpop.f32.mrf.mxu0  ;;  %v692_v8 = vpop.f32.mrf.mxu1 }
  0xf9   : > { %821 = vst.msk [vmem:[%s1494_s12 + $0x20] sm:$0xff] %vm816_vm3, %v771_v5  ;;  %v589_v9 = vadd.f32 %v1486_v30, %v588_v7  ;;  %847 = vst.msk [vmem:[%s1494_s12 + $0xf0] sm:$0xff] %vm816_vm3, %v797_v6  ;;  %v693_v10 = vadd.f32 %v1486_v30, %v692_v8 }
  0xfa   : > { %v1100_v11 = vpop.f32.mrf.mxu0  ;;  %v1152_v12 = vpop.f32.mrf.mxu1 }
  0xfb   : > { %v772_v13 = vmax.f32 %v589_v9, 0.0  ;;  %v798_v14 = vmax.f32 %v693_v10, 0.0 }
  0xfc   : > { %v593_v15 = vpop.f32.mrf.mxu0  ;;  %v697_v16 = vpop.f32.mrf.mxu1 }
  0xfd   : > { %822 = vst.msk [vmem:[%s1494_s12 + $0x28] sm:$0xff] %vm816_vm3, %v772_v13  ;;  %v594_v17 = vadd.f32 %v1486_v30, %v593_v15  ;;  %848 = vst.msk [vmem:[%s1494_s12 + $0xf8] sm:$0xff] %vm816_vm3, %v798_v14  ;;  %v698_v18 = vadd.f32 %v1486_v30, %v697_v16 }
  0xfe   : > { %v1103_v19 = vpop.f32.mrf.mxu0  ;;  %v1155_v20 = vpop.f32.mrf.mxu1 }
  0xff   : > { %v773_v21 = vmax.f32 %v594_v17, 0.0  ;;  %v799_v22 = vmax.f32 %v698_v18, 0.0 }
 0x100   : > { %v596_v23 = vpop.f32.mrf.mxu0  ;;  %v700_v24 = vpop.f32.mrf.mxu1 }
 0x101   : > { %823 = vst.msk [vmem:[%s1494_s12 + $0x30] sm:$0xff] %vm816_vm3, %v773_v21  ;;  %v597_v25 = vadd.f32 %v1486_v30, %v596_v23  ;;  %849 = vst.msk [vmem:[%s1494_s12 + $0x100] sm:$0xff] %vm816_vm3, %v799_v22  ;;  %v701_v26 = vadd.f32 %v1486_v30, %v700_v24 }
 0x102   : > { %v1104_v27 = vpop.f32.mrf.mxu0  ;;  %v1156_v28 = vpop.f32.mrf.mxu1 }
 0x103   : > { %v774_v29 = vmax.f32 %v597_v25, 0.0  ;;  %v800_v31 = vmax.f32 %v701_v26, 0.0 }
 0x104   : > { %v601_v32 = vpop.f32.mrf.mxu0  ;;  %v705_v33 = vpop.f32.mrf.mxu1 }
 0x105   : > { %824 = vst.msk [vmem:[%s1494_s12 + $0x38] sm:$0xff] %vm816_vm3, %v774_v29  ;;  %v602_v34 = vadd.f32 %v1486_v30, %v601_v32  ;;  %850 = vst.msk [vmem:[%s1494_s12 + $0x108] sm:$0xff] %vm816_vm3, %v800_v31  ;;  %v706_v35 = vadd.f32 %v1486_v30, %v705_v33 }
 0x106   : > { %v1107_v36 = vpop.f32.mrf.mxu0  ;;  %v1159_v37 = vpop.f32.mrf.mxu1 }
 0x107   : > { %v775_v38 = vmax.f32 %v602_v34, 0.0  ;;  %v801_v39 = vmax.f32 %v706_v35, 0.0 }
 0x108   : > { %v604_v40 = vpop.f32.mrf.mxu0  ;;  %v708_v41 = vpop.f32.mrf.mxu1 }
 0x109   : > { %825 = vst.msk [vmem:[%s1494_s12 + $0x40] sm:$0xff] %vm816_vm3, %v775_v38  ;;  %v605_v42 = vadd.f32 %v1486_v30, %v604_v40  ;;  %851 = vst.msk [vmem:[%s1494_s12 + $0x110] sm:$0xff] %vm816_vm3, %v801_v39  ;;  %v709_v43 = vadd.f32 %v1486_v30, %v708_v41 }
 0x10a   : > { %v1108_v44 = vpop.f32.mrf.mxu0  ;;  %v1160_v45 = vpop.f32.mrf.mxu1 }
 0x10b   : > { %v776_v46 = vmax.f32 %v605_v42, 0.0  ;;  %v802_v47 = vmax.f32 %v709_v43, 0.0 }
 0x10c   : > { %v609_v48 = vpop.f32.mrf.mxu0  ;;  %v713_v49 = vpop.f32.mrf.mxu1 }
 0x10d   : > { %826 = vst.msk [vmem:[%s1494_s12 + $0x48] sm:$0xff] %vm816_vm3, %v776_v46  ;;  %v610_v50 = vadd.f32 %v1486_v30, %v609_v48  ;;  %852 = vst.msk [vmem:[%s1494_s12 + $0x118] sm:$0xff] %vm816_vm3, %v802_v47  ;;  %v714_v51 = vadd.f32 %v1486_v30, %v713_v49 }
 0x10e   : > { %v1111_v52 = vpop.f32.mrf.mxu0  ;;  %v1163_v53 = vpop.f32.mrf.mxu1 }
 0x10f   : > { %v777_v54 = vmax.f32 %v610_v50, 0.0  ;;  %v803_v55 = vmax.f32 %v714_v51, 0.0 }
 0x110   : > { %v612_v56 = vpop.f32.mrf.mxu0  ;;  %v716_v57 = vpop.f32.mrf.mxu1 }
 0x111   : > { %827 = vst.msk [vmem:[%s1494_s12 + $0x50] sm:$0xff] %vm816_vm3, %v777_v54  ;;  %v613_v58 = vadd.f32 %v1486_v30, %v612_v56  ;;  %853 = vst.msk [vmem:[%s1494_s12 + $0x120] sm:$0xff] %vm816_vm3, %v803_v55  ;;  %v717_v59 = vadd.f32 %v1486_v30, %v716_v57 }
 0x112   : > { %v1112_v60 = vpop.f32.mrf.mxu0  ;;  %v1164_v61 = vpop.f32.mrf.mxu1 }
 0x113   : > { %v778_v62 = vmax.f32 %v613_v58, 0.0  ;;  %v804_v63 = vmax.f32 %v717_v59, 0.0 }
 0x114   : > { %v617_v0 = vpop.f32.mrf.mxu0  ;;  %v721_v1 = vpop.f32.mrf.mxu1 }
 0x115   : > { %828 = vst.msk [vmem:[%s1494_s12 + $0x58] sm:$0xff] %vm816_vm3, %v778_v62  ;;  %v618_v2 = vadd.f32 %v1486_v30, %v617_v0  ;;  %854 = vst.msk [vmem:[%s1494_s12 + $0x128] sm:$0xff] %vm816_vm3, %v804_v63  ;;  %v722_v3 = vadd.f32 %v1486_v30, %v721_v1 }
 0x116   : > { %v1115_v4 = vpop.f32.mrf.mxu0  ;;  %v1167_v5 = vpop.f32.mrf.mxu1 }
 0x117   : > { %v779_v6 = vmax.f32 %v618_v2, 0.0  ;;  %v805_v7 = vmax.f32 %v722_v3, 0.0 }
 0x118   : > { %v620_v8 = vpop.f32.mrf.mxu0  ;;  %v724_v9 = vpop.f32.mrf.mxu1 }
 0x119   : > { %829 = vst.msk [vmem:[%s1494_s12 + $0x60] sm:$0xff] %vm816_vm3, %v779_v6  ;;  %v621_v10 = vadd.f32 %v1486_v30, %v620_v8  ;;  %855 = vst.msk [vmem:[%s1494_s12 + $0x130] sm:$0xff] %vm816_vm3, %v805_v7  ;;  %v725_v11 = vadd.f32 %v1486_v30, %v724_v9 }
 0x11a   : > { %v1116_v12 = vpop.f32.mrf.mxu0  ;;  %v1168_v13 = vpop.f32.mrf.mxu1 }
 0x11b   : > { %v780_v14 = vmax.f32 %v621_v10, 0.0  ;;  %v806_v15 = vmax.f32 %v725_v11, 0.0 }
 0x11c   : > { %v625_v16 = vpop.f32.mrf.mxu0  ;;  %v729_v17 = vpop.f32.mrf.mxu1 }
 0x11d   : > { %830 = vst.msk [vmem:[%s1494_s12 + $0x68] sm:$0xff] %vm816_vm3, %v780_v14  ;;  %v626_v18 = vadd.f32 %v1486_v30, %v625_v16  ;;  %856 = vst.msk [vmem:[%s1494_s12 + $0x138] sm:$0xff] %vm816_vm3, %v806_v15  ;;  %v730_v19 = vadd.f32 %v1486_v30, %v729_v17 }
 0x11e   : > { %v1119_v20 = vpop.f32.mrf.mxu0  ;;  %v1171_v21 = vpop.f32.mrf.mxu1 }
 0x11f   : > { %v781_v22 = vmax.f32 %v626_v18, 0.0  ;;  %v807_v23 = vmax.f32 %v730_v19, 0.0 }
 0x120   : > { %v628_v24 = vpop.f32.mrf.mxu0  ;;  %v732_v25 = vpop.f32.mrf.mxu1 }
 0x121   : > { %831 = vst.msk [vmem:[%s1494_s12 + $0x70] sm:$0xff] %vm816_vm3, %v781_v22  ;;  %v629_v26 = vadd.f32 %v1486_v30, %v628_v24  ;;  %857 = vst.msk [vmem:[%s1494_s12 + $0x140] sm:$0xff] %vm816_vm3, %v807_v23  ;;  %v733_v27 = vadd.f32 %v1486_v30, %v732_v25 }
 0x122   : > { %v1120_v28 = vpop.f32.mrf.mxu0  ;;  %v1172_v29 = vpop.f32.mrf.mxu1 }
 0x123   : > { %v782_v31 = vmax.f32 %v629_v26, 0.0  ;;  %v808_v32 = vmax.f32 %v733_v27, 0.0 }
 0x124   : > { %v633_v33 = vpop.f32.mrf.mxu0  ;;  %v737_v34 = vpop.f32.mrf.mxu1 }
 0x125   : > { %832 = vst.msk [vmem:[%s1494_s12 + $0x78] sm:$0xff] %vm816_vm3, %v782_v31  ;;  %v634_v35 = vadd.f32 %v1486_v30, %v633_v33  ;;  %858 = vst.msk [vmem:[%s1494_s12 + $0x148] sm:$0xff] %vm816_vm3, %v808_v32  ;;  %v738_v36 = vadd.f32 %v1486_v30, %v737_v34 }
 0x126   : > { %v1123_v37 = vpop.f32.mrf.mxu0  ;;  %v1175_v38 = vpop.f32.mrf.mxu1 }
 0x127   : > { %v783_v39 = vmax.f32 %v634_v35, 0.0  ;;  %v809_v40 = vmax.f32 %v738_v36, 0.0 }
 0x128   : > { %v636_v41 = vpop.f32.mrf.mxu0  ;;  %v740_v42 = vpop.f32.mrf.mxu1 }
 0x129   : > { %833 = vst.msk [vmem:[%s1494_s12 + $0x80] sm:$0xff] %vm816_vm3, %v783_v39  ;;  %v637_v43 = vadd.f32 %v1486_v30, %v636_v41  ;;  %859 = vst.msk [vmem:[%s1494_s12 + $0x150] sm:$0xff] %vm816_vm3, %v809_v40  ;;  %v741_v44 = vadd.f32 %v1486_v30, %v740_v42 }
 0x12a   : > { %v1124_v45 = vpop.f32.mrf.mxu0  ;;  %v1176_v46 = vpop.f32.mrf.mxu1 }
 0x12b   : > { %v784_v47 = vmax.f32 %v637_v43, 0.0  ;;  %v810_v48 = vmax.f32 %v741_v44, 0.0 }
 0x12c   : > { %v641_v49 = vpop.f32.mrf.mxu0  ;;  %v745_v50 = vpop.f32.mrf.mxu1 }
 0x12d   : > { %834 = vst.msk [vmem:[%s1494_s12 + $0x88] sm:$0xff] %vm816_vm3, %v784_v47  ;;  %v642_v51 = vadd.f32 %v1486_v30, %v641_v49  ;;  %860 = vst.msk [vmem:[%s1494_s12 + $0x158] sm:$0xff] %vm816_vm3, %v810_v48  ;;  %v746_v52 = vadd.f32 %v1486_v30, %v745_v50 }
 0x12e   : > { %v1127_v53 = vpop.f32.mrf.mxu0  ;;  %v1179_v54 = vpop.f32.mrf.mxu1 }
 0x12f   : > { %v785_v55 = vmax.f32 %v642_v51, 0.0  ;;  %v811_v56 = vmax.f32 %v746_v52, 0.0 }
 0x130   : > { %v644_v57 = vpop.f32.mrf.mxu0  ;;  %v748_v58 = vpop.f32.mrf.mxu1 }
 0x131   : > { %835 = vst.msk [vmem:[%s1494_s12 + $0x90] sm:$0xff] %vm816_vm3, %v785_v55  ;;  %v645_v59 = vadd.f32 %v1486_v30, %v644_v57  ;;  %861 = vst.msk [vmem:[%s1494_s12 + $0x160] sm:$0xff] %vm816_vm3, %v811_v56  ;;  %v749_v60 = vadd.f32 %v1486_v30, %v748_v58 }
 0x132   : > { %v1128_v61 = vpop.f32.mrf.mxu0  ;;  %v1180_v62 = vpop.f32.mrf.mxu1 }
 0x133   : > { %v786_v63 = vmax.f32 %v645_v59, 0.0  ;;  %v812_v0 = vmax.f32 %v749_v60, 0.0 }
 0x134   : > { %v649_v1 = vpop.f32.mrf.mxu0  ;;  %v753_v2 = vpop.f32.mrf.mxu1 }
 0x135   : > { %836 = vst.msk [vmem:[%s1494_s12 + $0x98] sm:$0xff] %vm816_vm3, %v786_v63  ;;  %v650_v3 = vadd.f32 %v1486_v30, %v649_v1  ;;  %862 = vst.msk [vmem:[%s1494_s12 + $0x168] sm:$0xff] %vm816_vm3, %v812_v0  ;;  %v754_v4 = vadd.f32 %v1486_v30, %v753_v2 }
 0x136   : > { %v1131_v5 = vpop.f32.mrf.mxu0  ;;  %v1183_v6 = vpop.f32.mrf.mxu1 }
 0x137   : > { %v787_v7 = vmax.f32 %v650_v3, 0.0  ;;  %v813_v8 = vmax.f32 %v754_v4, 0.0 }
 0x138   : > { %v652_v9 = vpop.f32.mrf.mxu0  ;;  %v756_v10 = vpop.f32.mrf.mxu1 }
 0x139   : > { %837 = vst.msk [vmem:[%s1494_s12 + $0xa0] sm:$0xff] %vm816_vm3, %v787_v7  ;;  %v653_v11 = vadd.f32 %v1486_v30, %v652_v9  ;;  %863 = vst.msk [vmem:[%s1494_s12 + $0x170] sm:$0xff] %vm816_vm3, %v813_v8  ;;  %v757_v12 = vadd.f32 %v1486_v30, %v756_v10 }
 0x13a   : > { %v1132_v13 = vpop.f32.mrf.mxu0  ;;  %v1184_v14 = vpop.f32.mrf.mxu1 }
 0x13b   : > { %v788_v15 = vmax.f32 %v653_v11, 0.0  ;;  %v814_v16 = vmax.f32 %v757_v12, 0.0 }
 0x13c   : > { %v657_v17 = vpop.f32.mrf.mxu0  ;;  %v761_v18 = vpop.f32.mrf.mxu1 }
 0x13d   : > { %838 = vst.msk [vmem:[%s1494_s12 + $0xa8] sm:$0xff] %vm816_vm3, %v788_v15  ;;  %v658_v19 = vadd.f32 %v1486_v30, %v657_v17  ;;  %864 = vst.msk [vmem:[%s1494_s12 + $0x178] sm:$0xff] %vm816_vm3, %v814_v16  ;;  %v762_v20 = vadd.f32 %v1486_v30, %v761_v18 }
 0x13e   : > { %v1135_v21 = vpop.f32.mrf.mxu0  ;;  %v1187_v22 = vpop.f32.mrf.mxu1 }
 0x13f   : > { %v789_v23 = vmax.f32 %v658_v19, 0.0  ;;  %v815_v24 = vmax.f32 %v762_v20, 0.0 }
 0x140   : > { %v660_v25 = vpop.f32.mrf.mxu0  ;;  %v764_v26 = vpop.f32.mrf.mxu1 }
 0x141   : > { %839 = vst.msk [vmem:[%s1494_s12 + $0xb0] sm:$0xff] %vm816_vm3, %v789_v23  ;;  %v661_v27 = vadd.f32 %v1486_v30, %v660_v25  ;;  %865 = vst.msk [vmem:[%s1494_s12 + $0x180] sm:$0xff] %vm816_vm3, %v815_v24 }
 0x142   : > { %v1136_v28 = vpop.f32.mrf.mxu0  ;;  %v1188_v29 = vpop.f32.mrf.mxu1 }
 0x143   : > { %v790_v31 = vmax.f32 %v661_v27, 0.0 }
 0x144   : > { %v665_v32 = vpop.f32.mrf.mxu0 }
 0x145   : > { %840 = vst.msk [vmem:[%s1494_s12 + $0xb8] sm:$0xff] %vm816_vm3, %v790_v31  ;;  %v666_v33 = vadd.f32 %v1486_v30, %v665_v32 }
 0x146   : > { %v1139_v34 = vpop.f32.mrf.mxu0 }
 0x147   : > { %v791_v35 = vmax.f32 %v666_v33, 0.0 }
 0x148   : > { %v668_v36 = vpop.f32.mrf.mxu0 }
 0x149   : > { %841 = vst.msk [vmem:[%s1494_s12 + $0xc0] sm:$0xff] %vm816_vm3, %v791_v35  ;;  %v669_v37 = vadd.f32 %v1486_v30, %v668_v36 }
 0x14a   : > { %v1140_v38 = vpop.f32.mrf.mxu0 }
 0x14b   : > { %v792_v39 = vmax.f32 %v669_v37, 0.0 }
 0x14d   : > { %842 = vst.msk [vmem:[%s1494_s12 + $0xc8] sm:$0xff] %vm816_vm3, %v792_v39 }
 0x14e PF: > { %s13_s16 = sadd.s32 1, %s1307_s16   ;;  %s1660_s12 = smov %s1299_s14 }
 0x14f   : > { %p10_p7 = scmp.ge.s32.totalorder %s13_s16, 10   ;;  %s1661_s13 = smov %s1303_s15 }
 0x150   : > { %s1662_s14 = smov %s1665_s17  ;;  %s1663_s15 = smov %s1669_s18 }
 0x151   :  { %12 = sbr.rel (!%p10_p7) target bundleno = 3 (0x3), region = 68 }

</bundles_post_ra>
